<compile_context>
chip_gen: v6e
topology: v6e:2x2x1
jax: 0.10.0
libtpu: 0.0.40
codegen_flags: <defaults>
</compile_context>

<pallas_src>
import math

import numpy as np
import jax
import jax.numpy as jnp
from jax import lax
from jax.experimental import pallas as pl
from jax.experimental.pallas import tpu as pltpu

EPS = 1e-8      # GlobalLayerNorm eps
LN_EPS = 1e-5   # nn.LayerNorm eps
BN_EPS = 1e-5   # nn.BatchNorm1d eps

# MXU input dtype (accumulation is always f32); VPU math stays f32.
MXU_DTYPE = jnp.bfloat16

# Batch axis is independent -> "parallel" (megacore sharding on v7x).
_PAR = pltpu.CompilerParams(
    dimension_semantics=("parallel",),
    vmem_limit_bytes=64 * 1024 * 1024,
)


# ----------------------------------------------------------------------------
# In-kernel helpers (operate on values already loaded into vregs).
# ----------------------------------------------------------------------------
def _mm(a, b):
    """MXU matmul, bf16 inputs, f32 accumulation."""
    return jnp.dot(a.astype(MXU_DTYPE), b.astype(MXU_DTYPE),
                   preferred_element_type=jnp.float32)


def _prelu(h, alpha):
    return jnp.where(h >= 0, h, alpha * h)


def _gln(h, gamma, beta):
    """Global layer norm over the full (C, K) slab: single-pass stats + rsqrt."""
    n = h.shape[0] * h.shape[1]
    s1 = jnp.sum(h, axis=1, keepdims=True)
    s2 = jnp.sum(h * h, axis=1, keepdims=True)
    mean = jnp.sum(s1, axis=0, keepdims=True) / n
    ex2 = jnp.sum(s2, axis=0, keepdims=True) / n
    var = jnp.maximum(ex2 - mean * mean, 0.0)
    return gamma * (h - mean) * lax.rsqrt(var + EPS) + beta


def _shift_rows(h, offset):
    """g[t, :] = h[t+offset, :] (zero outside).  Sublane shift, tiny T."""
    if offset == 0:
        return h
    T = h.shape[0]
    z = jnp.zeros((abs(offset), h.shape[1]), h.dtype)
    if offset > 0:
        return jnp.concatenate([h[offset:], z], axis=0)
    return jnp.concatenate([z, h[:T + offset]], axis=0)


def _shift_lanes(h, offset, iota):
    """g[:, k] = h[:, k+offset] (zero outside).  XLU roll + iota mask:
    no padded VMEM slab, no unaligned lane slices."""
    if offset == 0:
        return h
    K = h.shape[-1]
    g = pltpu.roll(h, shift=(-offset) % K, axis=1)
    if offset > 0:
        mask = iota < (K - offset)
    else:
        mask = iota >= (-offset)
    return jnp.where(mask, g, 0.0)


def _dw_conv_lanes(h, taps, dilation, pad, iota):
    """Depthwise conv along the lane (time) axis.  taps: [C, P]."""
    P = taps.shape[-1]
    acc = None
    for p in range(P):
        off = p * dilation - pad
        term = taps[:, p:p + 1] * _shift_lanes(h, off, iota)
        acc = term if acc is None else acc + term
    return acc


# ----------------------------------------------------------------------------
# Fused pallas_call wrappers.
# ----------------------------------------------------------------------------
def visual_frontend(visual, vec_pack, pw_pack):
    """All 5 VisualConv1D layers fused, channels-last.
    visual: [M, T, 512];  vec_pack: [5, 8, 512] f32 (bn1_s, bn1_b, dw0..dw2,
    prelu, bn2_s, bn2_b);  pw_pack: [5, 512, 512] bf16 (transposed pw weights).
    """
    M, T, C = visual.shape
    L = vec_pack.shape[0]

    def kernel(vec_ref, pw_ref, v_ref, o_ref):
        v = v_ref[0]                                            # [T, C] f32
        for l in range(L):
            p = vec_ref[l]                                      # [8, C]
            h = jnp.maximum(v, 0.0) * p[0:1] + p[1:2]           # ReLU + BN1
            h = (p[2:3] * _shift_rows(h, -1)                    # dwconv k=3,p=1
                 + p[3:4] * h
                 + p[4:5] * _shift_rows(h, 1))
            h = _prelu(h, p[5:6])                               # PReLU
            h = h * p[6:7] + p[7:8]                             # BN2
            v = _mm(h, pw_ref[l]) + v                           # pwconv + res
        o_ref[0] = v

    return pl.pallas_call(
        kernel,
        out_shape=jax.ShapeDtypeStruct((M, T, C), jnp.float32),
        grid=(M,),
        in_specs=[pl.BlockSpec((L, 8, C), lambda m: (0, 0, 0)),
                  pl.BlockSpec((L, C, C), lambda m: (0, 0, 0)),
                  pl.BlockSpec((1, T, C), lambda m: (m, 0, 0))],
        out_specs=pl.BlockSpec((1, T, C), lambda m: (m, 0, 0)),
        compiler_params=_PAR,
    )(vec_pack, pw_pack, visual)


def cln_bottleneck(x, ln_pack, bw):
    """Channel-wise LayerNorm (over channels, per time step) fused with the
    bottleneck 1x1 conv.  x: [M, N, K]; ln_pack: [N, 2]; bw: [B, N]."""
    M, N, K = x.shape
    Bc = bw.shape[0]

    def kernel(ln_ref, bw_ref, x_ref, o_ref):
        xv = x_ref[0]                                           # [N, K]
        mean = jnp.sum(xv, axis=0, keepdims=True) / N
        ex2 = jnp.sum(xv * xv, axis=0, keepdims=True) / N
        var = jnp.maximum(ex2 - mean * mean, 0.0)
        xn = ((xv - mean) * lax.rsqrt(var + LN_EPS) * ln_ref[:, 0:1]
              + ln_ref[:, 1:2])
        o_ref[0] = _mm(bw_ref[...], xn)

    return pl.pallas_call(
        kernel,
        out_shape=jax.ShapeDtypeStruct((M, Bc, K), jnp.float32),
        grid=(M,),
        in_specs=[pl.BlockSpec((N, 2), lambda m: (0, 0)),
                  pl.BlockSpec((Bc, N), lambda m: (0, 0)),
                  pl.BlockSpec((1, N, K), lambda m: (m, 0, 0))],
        out_specs=pl.BlockSpec((1, Bc, K), lambda m: (m, 0, 0)),
        compiler_params=_PAR,
    )(ln_pack, bw, x)


def make_repeat_call(M, Bc, K, T, C, H, P, X, dilations, paddings):
    """One pallas_call per TCN repeat: the concat-free split head
    (x = Wx@x + (Wv@ve_w)@visual^T@interp) followed by all X TemporalBlocks,
    with x kept in vregs/VMEM across the whole repeat."""
    n_vec = P + 6

    def kernel(wve_ref, wx_ref, interp_ref, c1_ref, pw_ref, vec_ref,
               x_ref, v_ref, o_ref):
        xv = x_ref[0]                                           # [B, K] f32
        V = v_ref[0]                                            # [T, C] f32
        iota = lax.broadcasted_iota(jnp.int32, (H, K), 1)       # hoisted once

        # ---- head: ve_conv1x1 + linear interp + Conv1d(2B->B) (folded) ----
        a = lax.dot_general(                                    # [B, T]
            wve_ref[...].astype(MXU_DTYPE), V.astype(MXU_DTYPE),
            dimension_numbers=(((1,), (1,)), ((), ())),
            preferred_element_type=jnp.float32)
        # TODO(synk): T is tiny; a VPU lerp would avoid this fill/drain matmul.
        vi = _mm(a, interp_ref[...])                            # [B, K]
        xv = _mm(wx_ref[...], xv) + vi

        # ---- X fused TemporalBlocks (static loop, static dilations) ----
        for xb in range(X):
            d, pad = dilations[xb], paddings[xb]
            vec = vec_ref[xb]                                   # [H, P+6]
            h = _mm(c1_ref[xb], xv)                             # 1x1 conv
            h = _prelu(h, vec[:, P:P + 1])
            h = _gln(h, vec[:, P + 1:P + 2], vec[:, P + 2:P + 3])
            h = _dw_conv_lanes(h, vec[:, 0:P], d, pad, iota)    # depthwise
            h = _prelu(h, vec[:, P + 3:P + 4])
            h = _gln(h, vec[:, P + 4:P + 5], vec[:, P + 5:P + 6])
            xv = _mm(pw_ref[xb], h) + xv                        # pwconv + res
        o_ref[0] = xv

    cst2 = lambda shape: pl.BlockSpec(shape, lambda m: (0, 0))
    cst3 = lambda shape: pl.BlockSpec(shape, lambda m: (0, 0, 0))
    return pl.pallas_call(
        kernel,
        out_shape=jax.ShapeDtypeStruct((M, Bc, K), jnp.float32),
        grid=(M,),
        in_specs=[cst2((Bc, C)),                # wve = head_wv @ ve_w
                  cst2((Bc, Bc)),               # wx
                  cst2((T, K)),                 # interp matrix
                  cst3((X, H, Bc)),             # conv1x1 stack
                  cst3((X, Bc, H)),             # pointwise stack
                  cst3((X, H, n_vec)),          # packed per-channel params
                  pl.BlockSpec((1, Bc, K), lambda m: (m, 0, 0)),
                  pl.BlockSpec((1, T, C), lambda m: (m, 0, 0))],
        out_specs=pl.BlockSpec((1, Bc, K), lambda m: (m, 0, 0)),
        compiler_params=_PAR,
    )


def mask_conv(x, w):
    """Final 1x1 conv fused with ReLU.  x: [M, B, K]; w: [N*num_channels, B]."""
    M, Bc, K = x.shape
    Cout = w.shape[0]

    def kernel(w_ref, x_ref, o_ref):
        o_ref[0] = jnp.maximum(_mm(w_ref[...], x_ref[0]), 0.0)

    return pl.pallas_call(
        kernel,
        out_shape=jax.ShapeDtypeStruct((M, Cout, K), jnp.float32),
        grid=(M,),
        in_specs=[pl.BlockSpec((Cout, Bc), lambda m: (0, 0)),
                  pl.BlockSpec((1, Bc, K), lambda m: (m, 0, 0))],
        out_specs=pl.BlockSpec((1, Cout, K), lambda m: (m, 0, 0)),
        compiler_params=_PAR,
    )(w, x)


# ----------------------------------------------------------------------------
# Glue: interpolation matrix + parameter init + full forward.
# ----------------------------------------------------------------------------
def make_interp_matrix(t_in, upscale, k_out):
    """Dense matrix reproducing F.interpolate(size=upscale*t_in, mode='linear',
    align_corners=False) followed by F.pad(..., (0, k_out - upscale*t_in))."""
    l_out = t_in * upscale
    assert k_out >= l_out
    A = np.zeros((t_in, k_out), dtype=np.float32)
    scale = t_in / l_out
    for j in range(l_out):
        src = max((j + 0.5) * scale - 0.5, 0.0)
        i0 = min(int(math.floor(src)), t_in - 1)
        i1 = min(i0 + 1, t_in - 1)
        lam = src - i0
        A[i0, j] += 1.0 - lam
        A[i1, j] += lam
    return jnp.asarray(A)


def init_params(key, N, B, H, P, X, R, num_channels, Tv, K):
    keys = iter(jax.random.split(key, 256))

    def w_init(shape, scale=0.1):
        return scale * jax.random.normal(next(keys), shape, jnp.float32)

    # Eval-mode BatchNorm1d folded to per-channel affine (fresh module stats:
    # weight=1, bias=0, running_mean=0, running_var=1).
    bn_scale = jnp.full((512,), 1.0 / math.sqrt(1.0 + BN_EPS), jnp.float32)
    bn_shift = jnp.zeros((512,), jnp.float32)
    prelu_v = jnp.full((512,), 0.25, jnp.float32)

    vis_vec, vis_pw = [], []
    for _ in range(5):
        dw = w_init((512, 3))
        vis_vec.append(jnp.stack([bn_scale, bn_shift,
                                  dw[:, 0], dw[:, 1], dw[:, 2],
                                  prelu_v, bn_scale, bn_shift]))      # [8, 512]
        vis_pw.append(w_init((512, 512)).T)     # store transposed [Cin, Cout]

    params = {
        "vis_vec": jnp.stack(vis_vec),                                # f32
        "vis_pw": jnp.stack(vis_pw).astype(jnp.bfloat16),             # bf16
        "ln_pack": jnp.stack([jnp.ones((N,), jnp.float32),
                              jnp.zeros((N,), jnp.float32)], axis=1), # [N, 2]
        "bottleneck_w": w_init((B, N)).astype(jnp.bfloat16),
        "interp": make_interp_matrix(Tv, 32, K),                      # [Tv, K]
        "mask_w": w_init((N * num_channels, B)).astype(jnp.bfloat16),
        "reps": [],
    }

    for _ in range(R):
        ve_w = w_init((B, 512))
        head_w = w_init((B, 2 * B))   # Conv1d(2B->B,1): [:, :B]->x, [:, B:]->v
        wve = head_w[:, B:] @ ve_w    # fold head_wv @ ve_conv1x1 -> [B, 512]
        c1s, pws, vecs = [], [], []
        for _ in range(X):
            c1s.append(w_init((H, B)))
            pws.append(w_init((B, H)))
            dw = w_init((H, P))
            vecs.append(jnp.concatenate(
                [dw,
                 jnp.full((H, 1), 0.25, jnp.float32),   # prelu1
                 jnp.ones((H, 1), jnp.float32),         # gln1 gamma
                 jnp.zeros((H, 1), jnp.float32),        # gln1 beta
                 jnp.full((H, 1), 0.25, jnp.float32),   # prelu2
                 jnp.ones((H, 1), jnp.float32),         # gln2 gamma
                 jnp.zeros((H, 1), jnp.float32)],       # gln2 beta
                axis=1))                                # [H, P+6]
        params["reps"].append({
            "wve": wve.astype(jnp.bfloat16),                 # [B, 512]
            "wx": head_w[:, :B].astype(jnp.bfloat16),        # [B, B]
            "conv1": jnp.stack(c1s).astype(jnp.bfloat16),    # [X, H, B]
            "pw": jnp.stack(pws).astype(jnp.bfloat16),       # [X, B, H]
            "vec": jnp.stack(vecs),                          # [X, H, P+6] f32
        })
    return params


def temporal_conv_net_forward(params, x, visual, *, num_channels):
    """x: [M, N, K] audio features; visual: [M, Tv, 512] (channels-last —
    the PyTorch transpose to [M, 512, Tv] is absorbed into the matmul layout)."""
    M, Tv, C = visual.shape
    visual = visual_frontend(visual, params["vis_vec"], params["vis_pw"])

    x = cln_bottleneck(x, params["ln_pack"], params["bottleneck_w"])
    _, Bc, K = x.shape

    rep0 = params["reps"][0]
    X, H, _ = rep0["conv1"].shape
    P = rep0["vec"].shape[-1] - 6
    dilations = tuple(2 ** xb for xb in range(X))
    paddings = tuple((P - 1) * d // 2 for d in dilations)
    for d, pad in zip(dilations, paddings):
        assert K + 2 * pad - d * (P - 1) == K   # residual add needs same length

    repeat_call = make_repeat_call(M, Bc, K, Tv, C, H, P, X, dilations, paddings)
    for rep in params["reps"]:
        x = repeat_call(rep["wve"], rep["wx"], params["interp"],
                        rep["conv1"], rep["pw"], rep["vec"], x, visual)

    x = mask_conv(x, params["mask_w"])
    # Final reshape assumes N == B (as in the PyTorch module).
    return x.reshape(M, num_channels, Bc, K)


if __name__ == "__main__":
    # Small config (requires N == B for the final reshape, as in the module).
    N, B, H, P, X, R, C = 16, 16, 32, 3, 2, 2, 1
    num_channels = 2
    Tv = 4                 # visual time steps
    K = 32 * Tv            # audio time steps (128)
    M = 2                  # batch

    key = jax.random.PRNGKey(0)
    kx, kv, kp = jax.random.split(key, 3)
    x = jax.random.normal(kx, (M, N, K), jnp.float32)
    visual = jax.random.normal(kv, (M, Tv, 512), jnp.float32)

    params = init_params(kp, N, B, H, P, X, R, num_channels, Tv, K)
    out = temporal_conv_net_forward(params, x, visual, num_channels=num_channels)
    out = jax.block_until_ready(out)

    assert out.shape == (M, num_channels, B, K), out.shape
    assert out.dtype == jnp.float32
    assert bool(jnp.all(jnp.isfinite(out)))
    assert bool(jnp.all(out >= 0))   # final ReLU
    print("KERNEL_OK")
</pallas_src>

<mosaic_0001>
module attributes {stable_mosaic.version = 11 : i64} {
  func.func @kernel(%arg0: i32, %arg1: memref<5x8x512xf32, #tpu.memory_space<vmem>>, %arg2: memref<5x512x512xbf16, #tpu.memory_space<vmem>>, %arg3: memref<1x4x512xf32, #tpu.memory_space<vmem>>, %arg4: memref<1x4x512xf32, #tpu.memory_space<vmem>>) attributes {dimension_semantics = [#tpu.dimension_semantics<parallel>], iteration_bounds = array<i64: 2>, scalar_prefetch = 0 : i64, scratch_operands = 0 : i64, tpu.core_type = #tpu.core_type<tc>, window_params = [{pipeline_mode = #tpu.pipeline_mode<synchronous>, transform_indices = @transform_0, window_bounds = array<i64: 5, 8, 512>}, {pipeline_mode = #tpu.pipeline_mode<synchronous>, transform_indices = @transform_1, window_bounds = array<i64: 5, 512, 512>}, {transform_indices = @transform_2, window_bounds = array<i64: 1, 4, 512>}, {transform_indices = @transform_3, window_bounds = array<i64: 1, 4, 512>}]} {
    %c0 = arith.constant 0 : index
    %c0_0 = arith.constant 0 : index
    %c0_1 = arith.constant 0 : index
    %0 = vector.load %arg3[%c0, %c0_0, %c0_1] : memref<1x4x512xf32, #tpu.memory_space<vmem>>, vector<1x4x512xf32>
    %1 = vector.shape_cast %0 : vector<1x4x512xf32> to vector<4x512xf32>
    %c0_2 = arith.constant 0 : index
    %c0_3 = arith.constant 0 : index
    %c0_4 = arith.constant 0 : index
    %2 = vector.load %arg1[%c0_2, %c0_3, %c0_4] : memref<5x8x512xf32, #tpu.memory_space<vmem>>, vector<1x8x512xf32>
    %3 = vector.shape_cast %2 : vector<1x8x512xf32> to vector<8x512xf32>
    %cst = arith.constant 0.000000e+00 : f32
    %4 = vector.broadcast %cst : f32 to vector<4x512xf32>
    %5 = arith.maximumf %1, %4 : vector<4x512xf32>
    %6 = vector.extract_strided_slice %3 {offsets = [0, 0], sizes = [1, 512], strides = [1, 1]} : vector<8x512xf32> to vector<1x512xf32>
    %7 = vector.broadcast %6 : vector<1x512xf32> to vector<4x512xf32>
    %8 = arith.mulf %5, %7 : vector<4x512xf32>
    %9 = vector.extract_strided_slice %3 {offsets = [1, 0], sizes = [1, 512], strides = [1, 1]} : vector<8x512xf32> to vector<1x512xf32>
    %10 = vector.broadcast %9 : vector<1x512xf32> to vector<4x512xf32>
    %11 = arith.addf %8, %10 : vector<4x512xf32>
    %12 = vector.extract_strided_slice %3 {offsets = [2, 0], sizes = [1, 512], strides = [1, 1]} : vector<8x512xf32> to vector<1x512xf32>
    %cst_5 = arith.constant 0.000000e+00 : f32
    %13 = vector.broadcast %cst_5 : f32 to vector<1x512xf32>
    %14 = vector.extract_strided_slice %11 {offsets = [0, 0], sizes = [3, 512], strides = [1, 1]} : vector<4x512xf32> to vector<3x512xf32>
    %15 = tpu.concatenate %13, %14 in 0 : vector<1x512xf32>, vector<3x512xf32> -> vector<4x512xf32>
    %16 = vector.broadcast %12 : vector<1x512xf32> to vector<4x512xf32>
    %17 = arith.mulf %16, %15 : vector<4x512xf32>
    %18 = vector.extract_strided_slice %3 {offsets = [3, 0], sizes = [1, 512], strides = [1, 1]} : vector<8x512xf32> to vector<1x512xf32>
    %19 = vector.broadcast %18 : vector<1x512xf32> to vector<4x512xf32>
    %20 = arith.mulf %19, %11 : vector<4x512xf32>
    %21 = arith.addf %17, %20 : vector<4x512xf32>
    %22 = vector.extract_strided_slice %3 {offsets = [4, 0], sizes = [1, 512], strides = [1, 1]} : vector<8x512xf32> to vector<1x512xf32>
    %cst_6 = arith.constant 0.000000e+00 : f32
    %23 = vector.broadcast %cst_6 : f32 to vector<1x512xf32>
    %24 = vector.extract_strided_slice %11 {offsets = [1, 0], sizes = [3, 512], strides = [1, 1]} : vector<4x512xf32> to vector<3x512xf32>
    %25 = tpu.concatenate %24, %23 in 0 : vector<3x512xf32>, vector<1x512xf32> -> vector<4x512xf32>
    %26 = vector.broadcast %22 : vector<1x512xf32> to vector<4x512xf32>
    %27 = arith.mulf %26, %25 : vector<4x512xf32>
    %28 = arith.addf %21, %27 : vector<4x512xf32>
    %29 = vector.extract_strided_slice %3 {offsets = [5, 0], sizes = [1, 512], strides = [1, 1]} : vector<8x512xf32> to vector<1x512xf32>
    %cst_7 = arith.constant 0.000000e+00 : f32
    %30 = vector.broadcast %cst_7 : f32 to vector<4x512xf32>
    %31 = arith.cmpf oge, %28, %30 : vector<4x512xf32>
    %32 = vector.broadcast %29 : vector<1x512xf32> to vector<4x512xf32>
    %33 = arith.mulf %32, %28 : vector<4x512xf32>
    %34 = arith.select %31, %28, %33 : vector<4x512xi1>, vector<4x512xf32>
    %35 = vector.extract_strided_slice %3 {offsets = [6, 0], sizes = [1, 512], strides = [1, 1]} : vector<8x512xf32> to vector<1x512xf32>
    %36 = vector.broadcast %35 : vector<1x512xf32> to vector<4x512xf32>
    %37 = arith.mulf %34, %36 : vector<4x512xf32>
    %38 = vector.extract_strided_slice %3 {offsets = [7, 0], sizes = [1, 512], strides = [1, 1]} : vector<8x512xf32> to vector<1x512xf32>
    %39 = vector.broadcast %38 : vector<1x512xf32> to vector<4x512xf32>
    %40 = arith.addf %37, %39 : vector<4x512xf32>
    %c0_8 = arith.constant 0 : index
    %c0_9 = arith.constant 0 : index
    %c0_10 = arith.constant 0 : index
    %41 = vector.load %arg2[%c0_8, %c0_9, %c0_10] : memref<5x512x512xbf16, #tpu.memory_space<vmem>>, vector<1x512x512xbf16>
    %42 = vector.shape_cast %41 : vector<1x512x512xbf16> to vector<512x512xbf16>
    %43 = arith.truncf %40 : vector<4x512xf32> to vector<4x512xbf16>
    %cst_11 = arith.constant dense<0.000000e+00> : vector<4x512xf32>
    %44 = tpu.matmul %43, %42, %cst_11 {dimension_numbers = #tpu.dot_dimension_numbers<[1], [0], [0], [1], [0, 0, 1, 1], [], []>} : vector<4x512xbf16>, vector<512x512xbf16>, vector<4x512xf32> -> vector<4x512xf32>
    %45 = arith.addf %44, %1 : vector<4x512xf32>
    %c1 = arith.constant 1 : index
    %c0_12 = arith.constant 0 : index
    %c0_13 = arith.constant 0 : index
    %46 = vector.load %arg1[%c1, %c0_12, %c0_13] : memref<5x8x512xf32, #tpu.memory_space<vmem>>, vector<1x8x512xf32>
    %47 = vector.shape_cast %46 : vector<1x8x512xf32> to vector<8x512xf32>
    %cst_14 = arith.constant 0.000000e+00 : f32
    %48 = vector.broadcast %cst_14 : f32 to vector<4x512xf32>
    %49 = arith.maximumf %45, %48 : vector<4x512xf32>
    %50 = vector.extract_strided_slice %47 {offsets = [0, 0], sizes = [1, 512], strides = [1, 1]} : vector<8x512xf32> to vector<1x512xf32>
    %51 = vector.broadcast %50 : vector<1x512xf32> to vector<4x512xf32>
    %52 = arith.mulf %49, %51 : vector<4x512xf32>
    %53 = vector.extract_strided_slice %47 {offsets = [1, 0], sizes = [1, 512], strides = [1, 1]} : vector<8x512xf32> to vector<1x512xf32>
    %54 = vector.broadcast %53 : vector<1x512xf32> to vector<4x512xf32>
    %55 = arith.addf %52, %54 : vector<4x512xf32>
    %56 = vector.extract_strided_slice %47 {offsets = [2, 0], sizes = [1, 512], strides = [1, 1]} : vector<8x512xf32> to vector<1x512xf32>
    %cst_15 = arith.constant 0.000000e+00 : f32
    %57 = vector.broadcast %cst_15 : f32 to vector<1x512xf32>
    %58 = vector.extract_strided_slice %55 {offsets = [0, 0], sizes = [3, 512], strides = [1, 1]} : vector<4x512xf32> to vector<3x512xf32>
    %59 = tpu.concatenate %57, %58 in 0 : vector<1x512xf32>, vector<3x512xf32> -> vector<4x512xf32>
    %60 = vector.broadcast %56 : vector<1x512xf32> to vector<4x512xf32>
    %61 = arith.mulf %60, %59 : vector<4x512xf32>
    %62 = vector.extract_strided_slice %47 {offsets = [3, 0], sizes = [1, 512], strides = [1, 1]} : vector<8x512xf32> to vector<1x512xf32>
    %63 = vector.broadcast %62 : vector<1x512xf32> to vector<4x512xf32>
    %64 = arith.mulf %63, %55 : vector<4x512xf32>
    %65 = arith.addf %61, %64 : vector<4x512xf32>
    %66 = vector.extract_strided_slice %47 {offsets = [4, 0], sizes = [1, 512], strides = [1, 1]} : vector<8x512xf32> to vector<1x512xf32>
    %cst_16 = arith.constant 0.000000e+00 : f32
    %67 = vector.broadcast %cst_16 : f32 to vector<1x512xf32>
    %68 = vector.extract_strided_slice %55 {offsets = [1, 0], sizes = [3, 512], strides = [1, 1]} : vector<4x512xf32> to vector<3x512xf32>
    %69 = tpu.concatenate %68, %67 in 0 : vector<3x512xf32>, vector<1x512xf32> -> vector<4x512xf32>
    %70 = vector.broadcast %66 : vector<1x512xf32> to vector<4x512xf32>
    %71 = arith.mulf %70, %69 : vector<4x512xf32>
    %72 = arith.addf %65, %71 : vector<4x512xf32>
    %73 = vector.extract_strided_slice %47 {offsets = [5, 0], sizes = [1, 512], strides = [1, 1]} : vector<8x512xf32> to vector<1x512xf32>
    %cst_17 = arith.constant 0.000000e+00 : f32
    %74 = vector.broadcast %cst_17 : f32 to vector<4x512xf32>
    %75 = arith.cmpf oge, %72, %74 : vector<4x512xf32>
    %76 = vector.broadcast %73 : vector<1x512xf32> to vector<4x512xf32>
    %77 = arith.mulf %76, %72 : vector<4x512xf32>
    %78 = arith.select %75, %72, %77 : vector<4x512xi1>, vector<4x512xf32>
    %79 = vector.extract_strided_slice %47 {offsets = [6, 0], sizes = [1, 512], strides = [1, 1]} : vector<8x512xf32> to vector<1x512xf32>
    %80 = vector.broadcast %79 : vector<1x512xf32> to vector<4x512xf32>
    %81 = arith.mulf %78, %80 : vector<4x512xf32>
    %82 = vector.extract_strided_slice %47 {offsets = [7, 0], sizes = [1, 512], strides = [1, 1]} : vector<8x512xf32> to vector<1x512xf32>
    %83 = vector.broadcast %82 : vector<1x512xf32> to vector<4x512xf32>
    %84 = arith.addf %81, %83 : vector<4x512xf32>
    %c1_18 = arith.constant 1 : index
    %c0_19 = arith.constant 0 : index
    %c0_20 = arith.constant 0 : index
    %85 = vector.load %arg2[%c1_18, %c0_19, %c0_20] : memref<5x512x512xbf16, #tpu.memory_space<vmem>>, vector<1x512x512xbf16>
    %86 = vector.shape_cast %85 : vector<1x512x512xbf16> to vector<512x512xbf16>
    %87 = arith.truncf %84 : vector<4x512xf32> to vector<4x512xbf16>
    %cst_21 = arith.constant dense<0.000000e+00> : vector<4x512xf32>
    %88 = tpu.matmul %87, %86, %cst_21 {dimension_numbers = #tpu.dot_dimension_numbers<[1], [0], [0], [1], [0, 0, 1, 1], [], []>} : vector<4x512xbf16>, vector<512x512xbf16>, vector<4x512xf32> -> vector<4x512xf32>
    %89 = arith.addf %88, %45 : vector<4x512xf32>
    %c2 = arith.constant 2 : index
    %c0_22 = arith.constant 0 : index
    %c0_23 = arith.constant 0 : index
    %90 = vector.load %arg1[%c2, %c0_22, %c0_23] : memref<5x8x512xf32, #tpu.memory_space<vmem>>, vector<1x8x512xf32>
    %91 = vector.shape_cast %90 : vector<1x8x512xf32> to vector<8x512xf32>
    %cst_24 = arith.constant 0.000000e+00 : f32
    %92 = vector.broadcast %cst_24 : f32 to vector<4x512xf32>
    %93 = arith.maximumf %89, %92 : vector<4x512xf32>
    %94 = vector.extract_strided_slice %91 {offsets = [0, 0], sizes = [1, 512], strides = [1, 1]} : vector<8x512xf32> to vector<1x512xf32>
    %95 = vector.broadcast %94 : vector<1x512xf32> to vector<4x512xf32>
    %96 = arith.mulf %93, %95 : vector<4x512xf32>
    %97 = vector.extract_strided_slice %91 {offsets = [1, 0], sizes = [1, 512], strides = [1, 1]} : vector<8x512xf32> to vector<1x512xf32>
    %98 = vector.broadcast %97 : vector<1x512xf32> to vector<4x512xf32>
    %99 = arith.addf %96, %98 : vector<4x512xf32>
    %100 = vector.extract_strided_slice %91 {offsets = [2, 0], sizes = [1, 512], strides = [1, 1]} : vector<8x512xf32> to vector<1x512xf32>
    %cst_25 = arith.constant 0.000000e+00 : f32
    %101 = vector.broadcast %cst_25 : f32 to vector<1x512xf32>
    %102 = vector.extract_strided_slice %99 {offsets = [0, 0], sizes = [3, 512], strides = [1, 1]} : vector<4x512xf32> to vector<3x512xf32>
    %103 = tpu.concatenate %101, %102 in 0 : vector<1x512xf32>, vector<3x512xf32> -> vector<4x512xf32>
    %104 = vector.broadcast %100 : vector<1x512xf32> to vector<4x512xf32>
    %105 = arith.mulf %104, %103 : vector<4x512xf32>
    %106 = vector.extract_strided_slice %91 {offsets = [3, 0], sizes = [1, 512], strides = [1, 1]} : vector<8x512xf32> to vector<1x512xf32>
    %107 = vector.broadcast %106 : vector<1x512xf32> to vector<4x512xf32>
    %108 = arith.mulf %107, %99 : vector<4x512xf32>
    %109 = arith.addf %105, %108 : vector<4x512xf32>
    %110 = vector.extract_strided_slice %91 {offsets = [4, 0], sizes = [1, 512], strides = [1, 1]} : vector<8x512xf32> to vector<1x512xf32>
    %cst_26 = arith.constant 0.000000e+00 : f32
    %111 = vector.broadcast %cst_26 : f32 to vector<1x512xf32>
    %112 = vector.extract_strided_slice %99 {offsets = [1, 0], sizes = [3, 512], strides = [1, 1]} : vector<4x512xf32> to vector<3x512xf32>
    %113 = tpu.concatenate %112, %111 in 0 : vector<3x512xf32>, vector<1x512xf32> -> vector<4x512xf32>
    %114 = vector.broadcast %110 : vector<1x512xf32> to vector<4x512xf32>
    %115 = arith.mulf %114, %113 : vector<4x512xf32>
    %116 = arith.addf %109, %115 : vector<4x512xf32>
    %117 = vector.extract_strided_slice %91 {offsets = [5, 0], sizes = [1, 512], strides = [1, 1]} : vector<8x512xf32> to vector<1x512xf32>
    %cst_27 = arith.constant 0.000000e+00 : f32
    %118 = vector.broadcast %cst_27 : f32 to vector<4x512xf32>
    %119 = arith.cmpf oge, %116, %118 : vector<4x512xf32>
    %120 = vector.broadcast %117 : vector<1x512xf32> to vector<4x512xf32>
    %121 = arith.mulf %120, %116 : vector<4x512xf32>
    %122 = arith.select %119, %116, %121 : vector<4x512xi1>, vector<4x512xf32>
    %123 = vector.extract_strided_slice %91 {offsets = [6, 0], sizes = [1, 512], strides = [1, 1]} : vector<8x512xf32> to vector<1x512xf32>
    %124 = vector.broadcast %123 : vector<1x512xf32> to vector<4x512xf32>
    %125 = arith.mulf %122, %124 : vector<4x512xf32>
    %126 = vector.extract_strided_slice %91 {offsets = [7, 0], sizes = [1, 512], strides = [1, 1]} : vector<8x512xf32> to vector<1x512xf32>
    %127 = vector.broadcast %126 : vector<1x512xf32> to vector<4x512xf32>
    %128 = arith.addf %125, %127 : vector<4x512xf32>
    %c2_28 = arith.constant 2 : index
    %c0_29 = arith.constant 0 : index
    %c0_30 = arith.constant 0 : index
    %129 = vector.load %arg2[%c2_28, %c0_29, %c0_30] : memref<5x512x512xbf16, #tpu.memory_space<vmem>>, vector<1x512x512xbf16>
    %130 = vector.shape_cast %129 : vector<1x512x512xbf16> to vector<512x512xbf16>
    %131 = arith.truncf %128 : vector<4x512xf32> to vector<4x512xbf16>
    %cst_31 = arith.constant dense<0.000000e+00> : vector<4x512xf32>
    %132 = tpu.matmul %131, %130, %cst_31 {dimension_numbers = #tpu.dot_dimension_numbers<[1], [0], [0], [1], [0, 0, 1, 1], [], []>} : vector<4x512xbf16>, vector<512x512xbf16>, vector<4x512xf32> -> vector<4x512xf32>
    %133 = arith.addf %132, %89 : vector<4x512xf32>
    %c3 = arith.constant 3 : index
    %c0_32 = arith.constant 0 : index
    %c0_33 = arith.constant 0 : index
    %134 = vector.load %arg1[%c3, %c0_32, %c0_33] : memref<5x8x512xf32, #tpu.memory_space<vmem>>, vector<1x8x512xf32>
    %135 = vector.shape_cast %134 : vector<1x8x512xf32> to vector<8x512xf32>
    %cst_34 = arith.constant 0.000000e+00 : f32
    %136 = vector.broadcast %cst_34 : f32 to vector<4x512xf32>
    %137 = arith.maximumf %133, %136 : vector<4x512xf32>
    %138 = vector.extract_strided_slice %135 {offsets = [0, 0], sizes = [1, 512], strides = [1, 1]} : vector<8x512xf32> to vector<1x512xf32>
    %139 = vector.broadcast %138 : vector<1x512xf32> to vector<4x512xf32>
    %140 = arith.mulf %137, %139 : vector<4x512xf32>
    %141 = vector.extract_strided_slice %135 {offsets = [1, 0], sizes = [1, 512], strides = [1, 1]} : vector<8x512xf32> to vector<1x512xf32>
    %142 = vector.broadcast %141 : vector<1x512xf32> to vector<4x512xf32>
    %143 = arith.addf %140, %142 : vector<4x512xf32>
    %144 = vector.extract_strided_slice %135 {offsets = [2, 0], sizes = [1, 512], strides = [1, 1]} : vector<8x512xf32> to vector<1x512xf32>
    %cst_35 = arith.constant 0.000000e+00 : f32
    %145 = vector.broadcast %cst_35 : f32 to vector<1x512xf32>
    %146 = vector.extract_strided_slice %143 {offsets = [0, 0], sizes = [3, 512], strides = [1, 1]} : vector<4x512xf32> to vector<3x512xf32>
    %147 = tpu.concatenate %145, %146 in 0 : vector<1x512xf32>, vector<3x512xf32> -> vector<4x512xf32>
    %148 = vector.broadcast %144 : vector<1x512xf32> to vector<4x512xf32>
    %149 = arith.mulf %148, %147 : vector<4x512xf32>
    %150 = vector.extract_strided_slice %135 {offsets = [3, 0], sizes = [1, 512], strides = [1, 1]} : vector<8x512xf32> to vector<1x512xf32>
    %151 = vector.broadcast %150 : vector<1x512xf32> to vector<4x512xf32>
    %152 = arith.mulf %151, %143 : vector<4x512xf32>
    %153 = arith.addf %149, %152 : vector<4x512xf32>
    %154 = vector.extract_strided_slice %135 {offsets = [4, 0], sizes = [1, 512], strides = [1, 1]} : vector<8x512xf32> to vector<1x512xf32>
    %cst_36 = arith.constant 0.000000e+00 : f32
    %155 = vector.broadcast %cst_36 : f32 to vector<1x512xf32>
    %156 = vector.extract_strided_slice %143 {offsets = [1, 0], sizes = [3, 512], strides = [1, 1]} : vector<4x512xf32> to vector<3x512xf32>
    %157 = tpu.concatenate %156, %155 in 0 : vector<3x512xf32>, vector<1x512xf32> -> vector<4x512xf32>
    %158 = vector.broadcast %154 : vector<1x512xf32> to vector<4x512xf32>
    %159 = arith.mulf %158, %157 : vector<4x512xf32>
    %160 = arith.addf %153, %159 : vector<4x512xf32>
    %161 = vector.extract_strided_slice %135 {offsets = [5, 0], sizes = [1, 512], strides = [1, 1]} : vector<8x512xf32> to vector<1x512xf32>
    %cst_37 = arith.constant 0.000000e+00 : f32
    %162 = vector.broadcast %cst_37 : f32 to vector<4x512xf32>
    %163 = arith.cmpf oge, %160, %162 : vector<4x512xf32>
    %164 = vector.broadcast %161 : vector<1x512xf32> to vector<4x512xf32>
    %165 = arith.mulf %164, %160 : vector<4x512xf32>
    %166 = arith.select %163, %160, %165 : vector<4x512xi1>, vector<4x512xf32>
    %167 = vector.extract_strided_slice %135 {offsets = [6, 0], sizes = [1, 512], strides = [1, 1]} : vector<8x512xf32> to vector<1x512xf32>
    %168 = vector.broadcast %167 : vector<1x512xf32> to vector<4x512xf32>
    %169 = arith.mulf %166, %168 : vector<4x512xf32>
    %170 = vector.extract_strided_slice %135 {offsets = [7, 0], sizes = [1, 512], strides = [1, 1]} : vector<8x512xf32> to vector<1x512xf32>
    %171 = vector.broadcast %170 : vector<1x512xf32> to vector<4x512xf32>
    %172 = arith.addf %169, %171 : vector<4x512xf32>
    %c3_38 = arith.constant 3 : index
    %c0_39 = arith.constant 0 : index
    %c0_40 = arith.constant 0 : index
    %173 = vector.load %arg2[%c3_38, %c0_39, %c0_40] : memref<5x512x512xbf16, #tpu.memory_space<vmem>>, vector<1x512x512xbf16>
    %174 = vector.shape_cast %173 : vector<1x512x512xbf16> to vector<512x512xbf16>
    %175 = arith.truncf %172 : vector<4x512xf32> to vector<4x512xbf16>
    %cst_41 = arith.constant dense<0.000000e+00> : vector<4x512xf32>
    %176 = tpu.matmul %175, %174, %cst_41 {dimension_numbers = #tpu.dot_dimension_numbers<[1], [0], [0], [1], [0, 0, 1, 1], [], []>} : vector<4x512xbf16>, vector<512x512xbf16>, vector<4x512xf32> -> vector<4x512xf32>
    %177 = arith.addf %176, %133 : vector<4x512xf32>
    %c4 = arith.constant 4 : index
    %c0_42 = arith.constant 0 : index
    %c0_43 = arith.constant 0 : index
    %178 = vector.load %arg1[%c4, %c0_42, %c0_43] : memref<5x8x512xf32, #tpu.memory_space<vmem>>, vector<1x8x512xf32>
    %179 = vector.shape_cast %178 : vector<1x8x512xf32> to vector<8x512xf32>
    %cst_44 = arith.constant 0.000000e+00 : f32
    %180 = vector.broadcast %cst_44 : f32 to vector<4x512xf32>
    %181 = arith.maximumf %177, %180 : vector<4x512xf32>
    %182 = vector.extract_strided_slice %179 {offsets = [0, 0], sizes = [1, 512], strides = [1, 1]} : vector<8x512xf32> to vector<1x512xf32>
    %183 = vector.broadcast %182 : vector<1x512xf32> to vector<4x512xf32>
    %184 = arith.mulf %181, %183 : vector<4x512xf32>
    %185 = vector.extract_strided_slice %179 {offsets = [1, 0], sizes = [1, 512], strides = [1, 1]} : vector<8x512xf32> to vector<1x512xf32>
    %186 = vector.broadcast %185 : vector<1x512xf32> to vector<4x512xf32>
    %187 = arith.addf %184, %186 : vector<4x512xf32>
    %188 = vector.extract_strided_slice %179 {offsets = [2, 0], sizes = [1, 512], strides = [1, 1]} : vector<8x512xf32> to vector<1x512xf32>
    %cst_45 = arith.constant 0.000000e+00 : f32
    %189 = vector.broadcast %cst_45 : f32 to vector<1x512xf32>
    %190 = vector.extract_strided_slice %187 {offsets = [0, 0], sizes = [3, 512], strides = [1, 1]} : vector<4x512xf32> to vector<3x512xf32>
    %191 = tpu.concatenate %189, %190 in 0 : vector<1x512xf32>, vector<3x512xf32> -> vector<4x512xf32>
    %192 = vector.broadcast %188 : vector<1x512xf32> to vector<4x512xf32>
    %193 = arith.mulf %192, %191 : vector<4x512xf32>
    %194 = vector.extract_strided_slice %179 {offsets = [3, 0], sizes = [1, 512], strides = [1, 1]} : vector<8x512xf32> to vector<1x512xf32>
    %195 = vector.broadcast %194 : vector<1x512xf32> to vector<4x512xf32>
    %196 = arith.mulf %195, %187 : vector<4x512xf32>
    %197 = arith.addf %193, %196 : vector<4x512xf32>
    %198 = vector.extract_strided_slice %179 {offsets = [4, 0], sizes = [1, 512], strides = [1, 1]} : vector<8x512xf32> to vector<1x512xf32>
    %cst_46 = arith.constant 0.000000e+00 : f32
    %199 = vector.broadcast %cst_46 : f32 to vector<1x512xf32>
    %200 = vector.extract_strided_slice %187 {offsets = [1, 0], sizes = [3, 512], strides = [1, 1]} : vector<4x512xf32> to vector<3x512xf32>
    %201 = tpu.concatenate %200, %199 in 0 : vector<3x512xf32>, vector<1x512xf32> -> vector<4x512xf32>
    %202 = vector.broadcast %198 : vector<1x512xf32> to vector<4x512xf32>
    %203 = arith.mulf %202, %201 : vector<4x512xf32>
    %204 = arith.addf %197, %203 : vector<4x512xf32>
    %205 = vector.extract_strided_slice %179 {offsets = [5, 0], sizes = [1, 512], strides = [1, 1]} : vector<8x512xf32> to vector<1x512xf32>
    %cst_47 = arith.constant 0.000000e+00 : f32
    %206 = vector.broadcast %cst_47 : f32 to vector<4x512xf32>
    %207 = arith.cmpf oge, %204, %206 : vector<4x512xf32>
    %208 = vector.broadcast %205 : vector<1x512xf32> to vector<4x512xf32>
    %209 = arith.mulf %208, %204 : vector<4x512xf32>
    %210 = arith.select %207, %204, %209 : vector<4x512xi1>, vector<4x512xf32>
    %211 = vector.extract_strided_slice %179 {offsets = [6, 0], sizes = [1, 512], strides = [1, 1]} : vector<8x512xf32> to vector<1x512xf32>
    %212 = vector.broadcast %211 : vector<1x512xf32> to vector<4x512xf32>
    %213 = arith.mulf %210, %212 : vector<4x512xf32>
    %214 = vector.extract_strided_slice %179 {offsets = [7, 0], sizes = [1, 512], strides = [1, 1]} : vector<8x512xf32> to vector<1x512xf32>
    %215 = vector.broadcast %214 : vector<1x512xf32> to vector<4x512xf32>
    %216 = arith.addf %213, %215 : vector<4x512xf32>
    %c4_48 = arith.constant 4 : index
    %c0_49 = arith.constant 0 : index
    %c0_50 = arith.constant 0 : index
    %217 = vector.load %arg2[%c4_48, %c0_49, %c0_50] : memref<5x512x512xbf16, #tpu.memory_space<vmem>>, vector<1x512x512xbf16>
    %218 = vector.shape_cast %217 : vector<1x512x512xbf16> to vector<512x512xbf16>
    %219 = arith.truncf %216 : vector<4x512xf32> to vector<4x512xbf16>
    %cst_51 = arith.constant dense<0.000000e+00> : vector<4x512xf32>
    %220 = tpu.matmul %219, %218, %cst_51 {dimension_numbers = #tpu.dot_dimension_numbers<[1], [0], [0], [1], [0, 0, 1, 1], [], []>} : vector<4x512xbf16>, vector<512x512xbf16>, vector<4x512xf32> -> vector<4x512xf32>
    %221 = arith.addf %220, %177 : vector<4x512xf32>
    %c0_52 = arith.constant 0 : index
    %c0_53 = arith.constant 0 : index
    %c0_54 = arith.constant 0 : index
    %222 = vector.load %arg4[%c0_52, %c0_53, %c0_54] : memref<1x4x512xf32, #tpu.memory_space<vmem>>, vector<1x4x512xf32>
    %223 = vector.shape_cast %222 : vector<1x4x512xf32> to vector<4x512xf32>
    %224 = vector.shape_cast %221 : vector<4x512xf32> to vector<1x4x512xf32>
    tpu.vector_store %arg4[%c0_52, %c0_53, %c0_54], %224 {strides = array<i32>} : memref<1x4x512xf32, #tpu.memory_space<vmem>>, vector<1x4x512xf32>,
    return
  }
  func.func @transform_0(%arg0: i32) -> (i32, i32, i32) {
    %c0_i32 = arith.constant 0 : i32
    %c0_i32_0 = arith.constant 0 : i32
    %c0_i32_1 = arith.constant 0 : i32
    %c0_i32_2 = arith.constant 0 : i32
    return %c0_i32, %c0_i32_0, %c0_i32_1 : i32, i32, i32
  }
  func.func @transform_1(%arg0: i32) -> (i32, i32, i32) {
    %c0_i32 = arith.constant 0 : i32
    %c0_i32_0 = arith.constant 0 : i32
    %c0_i32_1 = arith.constant 0 : i32
    %c0_i32_2 = arith.constant 0 : i32
    return %c0_i32, %c0_i32_0, %c0_i32_1 : i32, i32, i32
  }
  func.func @transform_2(%arg0: i32) -> (i32, i32, i32) {
    %c0_i32 = arith.constant 0 : i32
    %c0_i32_0 = arith.constant 0 : i32
    %c0_i32_1 = arith.constant 0 : i32
    return %arg0, %c0_i32, %c0_i32_0 : i32, i32, i32
  }
  func.func @transform_3(%arg0: i32) -> (i32, i32, i32) {
    %c0_i32 = arith.constant 0 : i32
    %c0_i32_0 = arith.constant 0 : i32
    %c0_i32_1 = arith.constant 0 : i32
    return %arg0, %c0_i32, %c0_i32_0 : i32, i32, i32
  }
}

</mosaic_0001>

<bundles_post_ra>
// kernel: tpu_custom_call.1
= control target key start
LH: loop header
LB: loop body
LE: loop exit
PB: predicated region body
PF: predicated region fallthrough
CT: control target
= control target key end

     0   :  { %8 = vsyncpa [#allocation3], 0  ;;  %s8673_s0 = inlined_call_operand.hbm [shape: f32[5,8,512], index: 0, kind: input, shape index: {}]   ;;  %s8674_s1 = inlined_call_operand.hbm [shape: bf16[5,512,512], index: 1, kind: input, shape index: {}]   ;;  %s8675_s2 = inlined_call_operand.hbm [shape: f32[2,4,512], index: 2, kind: input, shape index: {}]   ;;  %s8676_s3 = inlined_call_operand.hbm [shape: f32[2,4,512], index: 3, kind: output, shape index: {}]  }
   0x1   :  { %9 = vsyncpa [#allocation6], 0 }
   0x2   :  { %10 = vsyncpa [#allocation4], 0 }
   0x3   :  { %12 = vsyncpa [#allocation4 + $0x1], 0  ;;  %s7975_s12 = smov 0   ;;  %s7977_s13 = smov 0  }
   0x4   :  { %s7979_s14 = smov 0   ;;  %s7981_s15 = smov 0  }
   0x5 LB: > { %s7996_s16 = sadd.s32 4294967295, %s7945_s15   ;;  %s6098_s17 = sadd.s32 4294967294, %s7945_s15   ;;  %s7945_s15 = sphi %s7981_s15, %s8700_s15   ;;  %s7941_s14 = sphi %s7979_s14, %s8699_s14   ;;  %s7937_s13 = sphi %s7977_s13, %s8698_s13   ;;  %s7933_s12 = sphi %s7975_s12, %s8697_s12  }
   0x6   : > { %p80_p0 = scmp.ne.s32.totalorder %s7937_s13, %s7933_s12  ;;  %p8677_p1 = scmp.eq.s32.totalorder %s7996_s16, 0 }
   0x7   : > { %p110_p3 = scmp.eq.s32.totalorder %s6098_s17, 1  ;;  %p6099_p5 = scmp.ge.s32.totalorder %s7945_s15, 1 }
   0x8   : > { %p8005_p4 = por %p8677_p1, %p80_p0  ;;  %p117_p7 = scmp.lt.s32.totalorder %s7945_s15, 3 }
   0x9   : > { %p8010_p6 = por %p110_p3, %p80_p0  ;;  %s7947_s21 = smov [#allocation2]  }
   0xa   : > { %s8681_s18 = scalar_select %p8005_p4, 1, 0 }
   0xb   : > { %s8682_s19 = scalar_select %p8010_p6, 1, 0 }
   0xc   : > { %p8015_p8 = pnand %p6099_p5, %p117_p7  ;;  %s129_s22 = sshll.u32 %s7947_s21, 4  ;;  %s130_s22 = int_to_ptr.vmem [resolvable:$true] %s129_s22 }
   0xd   : > { %s7948_s24 = smov [#allocation5]   ;;  %s7804_s26 = scalar_lea.vmem %s130_s22, 2560 }
   0xe   : > { %s8683_s20 = scalar_select %p8015_p8, 1, 0 }
   0xf   : > { %p6770_p9 = pneg %p8015_p8  ;;  %s142_s25 = sshll.u32 %s7948_s24, 4  ;;  %s143_s25 = int_to_ptr.vmem [resolvable:$true] %s142_s25 }
  0x10   : > { %p7805_p13 = scmp.ne.s32.totalorder %s130_s22, %s7804_s26  ;;  %p7812_p5 = scmp.lt.s32.totalorder %s130_s22, %s130_s22 }
  0x11   : > { %p8024_p11 = pnand %p6770_p9, %p8677_p1  ;;  %p7813_p7 = scmp.lt.s32.totalorder %s7804_s26, %s7804_s26 }
  0x13   : > { %p7795_p12 = pneg %p8024_p11  ;;  %p7814_p10 = por %p7813_p7, %p7812_p5 }
  0x15   : > { %p7807_p0 = pnand %p7805_p13, %p7795_p12 }
  0x17   : > { %p7808_p3 = pneg %p7807_p0 }
  0x19   : > { %p7815_p9 = pnand %p7814_p10, %p7808_p3 }
  0x1b   : > { %7818 = shalt.err (!%p7815_p9)
}
  0x1c   : > { %s7949_s27 = smov 512   ;;  %s7950_s28 = smov 32  }
  0x1d   : > { %6773 = dma.hbm_to_vmem [thread:$0]  (!%p8024_p11), %s8673_s0, 2560, %s130_s22, [#allocation3], %s7949_s27, %s7949_s27, %s7950_s28  }
  0x1e   : > { %s7830_s4 = scalar_lea.vmem %s143_s25, 81920  ;;  %p7838_p2 = scmp.lt.s32.totalorder %s143_s25, %s143_s25 }
  0x1f   : > { %p7831_p1 = scmp.ne.s32.totalorder %s143_s25, %s7830_s4  ;;  %p7839_p6 = scmp.lt.s32.totalorder %s7830_s4, %s7830_s4 }
  0x21   : > { %p7833_p13 = pnand %p7831_p1, %p7795_p12  ;;  %p7840_p5 = por %p7839_p6, %p7838_p2 }
  0x23   : > { %p7834_p0 = pneg %p7833_p13 }
  0x25   : > { %p7841_p10 = pnand %p7840_p5, %p7834_p0 }
  0x27   : > { %7844 = shalt.err (!%p7841_p10)
}
  0x28   : > { %s7951_s5 = smov 256   ;;  %s7952_s6 = smov 16  }
  0x29   : > { %6776 = dma.hbm_to_vmem [thread:$0]  (!%p8024_p11), %s8674_s1, 81920, %s143_s25, [#allocation6], %s7951_s5, %s7951_s5, %s7952_s6  }
  0x2a   : > { %s8047_s9 = sadd.s32 1, %s7945_s15   ;;  %s67_s11 = sadd.s32 1, %s7941_s14 }
  0x2b   : > { %s64_s10 = ssub.s32 %s7945_s15, %s8047_s9  ;;  %p74_p2 = scmp.ne.s32.totalorder %s7941_s14, %s7937_s13 }
  0x2c   : > { %p65_p1 = scmp.eq.s32.totalorder %s64_s10, 0  ;;  %p75_p6 = scmp.eq.s32.totalorder %s7945_s15, 0 }
  0x2d   : > { %p8685_p3 = scmp.eq.s32.totalorder %s7996_s16, 1  ;;  %p6787_p9 = scmp.lt.s32.totalorder %s7945_s15, 2 }
  0x2e   : > { %s8056_s17 = scalar_select %p65_p1, %s7941_s14, %s67_s11  }
  0x2f   : > { %p76_p12 = por %p75_p6, %p74_p2  ;;  %p8060_p7 = por %p8685_p3, %p74_p2 }
  0x30   : > { %s156_s22 = sand.u32 1, %s7945_s15   ;;  %s158_s23 = sand.u32 1, %s7941_s14  }
  0x31   : > { %s8686_s21 = scalar_select %p8060_p7, 1, 0 }
  0x32   : > { %s6103_s24 = sshll.u32 %s158_s23, 4  ;;  %s6756_s25 = sshll.u32 %s7945_s15, 8 }
  0x33   : > { %s8071_s28 = scalar_lea.hbm %s8675_s2, %s6756_s25  ;;  %s160_s29 = scalar_lea.vmem [#allocation7], %s6103_s24 }
  0x34   : > { %s168_s30 = sshll.u32 %s160_s29, 4  ;;  %p8073_p11 = pnand %p6787_p9, %p76_p12  ;;  %s169_s30 = int_to_ptr.vmem [resolvable:$true] %s168_s30 }
  0x35   : > { %s157_s5 = scalar_lea.sflag [#allocation3], %s156_s22  ;;  %s7845_s6 = scalar_lea.hbm %s8071_s28, 256 }
  0x36   : > { %p7846_p13 = scmp.ne.s32.totalorder %s8071_s28, %s7845_s6  ;;  %p7847_p0 = pneg %p8073_p11 }
  0x37   : > { %s7850_s10 = scalar_lea.hbm %s8675_s2, 512  ;;  %p7851_p1 = scmp.lt.s32.totalorder %s8071_s28, %s8675_s2 }
  0x38   : > { %p7848_p5 = pnand %p7847_p0, %p7846_p13  ;;  %p7852_p2 = scmp.lt.s32.totalorder %s7850_s10, %s7845_s6 }
  0x3a   : > { %p7849_p10 = pneg %p7848_p5  ;;  %p7853_p6 = por %p7852_p2, %p7851_p1 }
  0x3c   : > { %p7854_p12 = pnand %p7853_p6, %p7849_p10 }
  0x3e   : > { %7857 = shalt.err (!%p7854_p12)
}
  0x3f   : > { %s7858_s24 = scalar_lea.vmem %s169_s30, 256  ;;  %s7953_s22 = smov [#allocation7]  }
  0x40   : > { %p7859_p3 = scmp.ne.s32.totalorder %s169_s30, %s7858_s24  ;;  %s7863_s25 = sshll.u32 %s7953_s22, 4  ;;  %s7864_s25 = int_to_ptr.vmem [resolvable:$false] %s7863_s25 }
  0x41   : > { %s7865_s26 = scalar_lea.vmem %s7864_s25, 512  ;;  %p7866_p13 = scmp.lt.s32.totalorder %s169_s30, %s7864_s25 }
  0x42   : > { %p7861_p9 = pnand %p7859_p3, %p7847_p0  ;;  %p7867_p5 = scmp.lt.s32.totalorder %s7865_s26, %s7858_s24 }
  0x44   : > { %p7862_p7 = pneg %p7861_p9  ;;  %p7868_p4 = por %p7867_p5, %p7866_p13 }
  0x46   : > { %p7869_p8 = pnand %p7868_p4, %p7862_p7 }
  0x48   : > { %7872 = shalt.err (!%p7869_p8)
}
  0x49   : > { %6780 = dma.hbm_to_vmem [thread:$0]  (!%p8073_p11), %s8071_s28, 256, %s169_s30, %s157_s5  }
  0x4a   : > { %p8688_p10 = scmp.ne.s32.totalorder %s8683_s20, 0 }
  0x4b   : > { %p8689_p1 = scmp.eq.s32.totalorder (!%p8688_p10), %s7996_s16, 0 }
  0x4c   : > { %177 = sbr.rel (%p8688_p10) target bundleno = 1582 (0x62e), region = 32 }
  0x51   : > { %7916 = dma.done.wait (%p8689_p1), [#allocation3], 2560   ;;  %p8690_p0 = pmov %p8689_p1 }
  0x53   : > { %7918 = vsyncadd (%p8690_p0), [#allocation3], 4294964736  ;;  %p8691_p2 = pmov %p8690_p0 }
  0x54   : > { %p8692_p6 = pmov %p8690_p0 }
  0x55   : > { %7920 = dma.done.wait (%p8691_p2), [#allocation6], 81920  }
  0x56   : > { %7922 = vsyncadd (%p8692_p6), [#allocation6], 4294885376  ;;  %s187_s27 = sand.u32 1, %s7996_s16   ;;  %s189_s28 = sand.u32 1, %s7937_s13  }
  0x57   : > { %s8105_s20 = sshll.u32 %s189_s28, 4  ;;  %s188_s29 = scalar_lea.sflag [#allocation3], %s187_s27 }
  0x58   : > { %s8108_s30 = scalar_lea.vmem [#allocation7], %s8105_s20  ;;  %p8693_p4 = scmp.ne.s32.totalorder %s8681_s18, 0 }
  0x5a   : > { %7924 = dma.done.wait (%p8693_p4), %s188_s29, 256  }
  0x5b   : > { %7926 = vsyncadd (%p8693_p4), %s188_s29, 4294967040  ;;  %v6829_v0 = vld [vmem:[#allocation5 + $0xe4] ss:$16 sps:$4 sm:$0xff]   ;;  %v6833_v2 = vld [vmem:[#allocation5 + $0xe0] ss:$16 sps:$4 sm:$0xff]   ;;  %v222_v36 = vlaneseq  ;;  %vm286_vm0 = vcmask 1040384  }
  0x5c   : > { %v6831_v1 = vld [vmem:[#allocation5 + $0x2e4] ss:$16 sps:$4 sm:$0xff]   ;;  %1220 = vmatprep.subr.bf16.mxu0 %v6829_v0  ;;  %v6834_v3 = vld [vmem:[#allocation5 + $0x2e0] ss:$16 sps:$4 sm:$0xff]   ;;  %v8129_v58 = vld [vmem:[#allocation2 + $0x8] sm:$0xff]  ;;  %vm345_vm1 = vcmask 1042432  }
  0x5d   : > { %1261 = vmatprep.subr.bf16.mxu1 %v6831_v1  ;;  %v6835_v4 = vld [vmem:[#allocation5 + $0xc4] ss:$16 sps:$4 sm:$0xff]   ;;  %1221 = vmatpush1.bf16.msra.mxu0 %v6833_v2  ;;  %v6839_v6 = vld [vmem:[#allocation5 + $0xc0] ss:$16 sps:$4 sm:$0xff]   ;;  %v223_v40 = vshrl.u32 %v222_v36, 7  ;;  %v215_v61 = vld [vmem:[%s8108_s30 + $0x8] sm:$0xff] }
  0x5e   : > { %1262 = vmatpush1.bf16.msra.mxu1 %v6834_v3  ;;  %v6837_v5 = vld [vmem:[#allocation5 + $0x2c4] ss:$16 sps:$4 sm:$0xff]   ;;  %1222 = vmatprep.subr.bf16.mxu0 %v6835_v4  ;;  %v6840_v7 = vld [vmem:[#allocation5 + $0x2c0] ss:$16 sps:$4 sm:$0xff]   ;;  %v8144_v3 = vld [vmem:[#allocation2 + $0x18] sm:$0xff]  ;;  %s213_s18 = scalar_lea.vmem [#allocation8], %s8105_s20 }
  0x5f   : > { %1263 = vmatprep.subr.bf16.mxu1 %v6837_v5  ;;  %v6841_v8 = vld [vmem:[#allocation5 + $0xa4] ss:$16 sps:$4 sm:$0xff]   ;;  %v6845_v10 = vld [vmem:[#allocation5 + $0xa0] ss:$16 sps:$4 sm:$0xff]   ;;  %v8114_v46 = vsub.s32 0, %v223_v40  ;;  %v8116_v48 = vsub.s32 1, %v223_v40 }
  0x60   : > { %v6843_v9 = vld [vmem:[#allocation5 + $0x2a4] ss:$16 sps:$4 sm:$0xff]   ;;  %v6846_v11 = vld [vmem:[#allocation5 + $0x2a0] ss:$16 sps:$4 sm:$0xff]   ;;  %v8118_v49 = vsub.s32 2, %v223_v40  ;;  %v8120_v51 = vsub.s32 3, %v223_v40 }
  0x61   : > { %1223 = vmatpush1.bf16.msra.mxu0 %v6839_v6  ;;  %v6847_v12 = vld [vmem:[#allocation5 + $0x84] ss:$16 sps:$4 sm:$0xff]   ;;  %v6851_v14 = vld [vmem:[#allocation5 + $0x80] ss:$16 sps:$4 sm:$0xff]   ;;  %v8122_v52 = vsub.s32 4, %v223_v40  ;;  %v8125_v56 = vsub.s32 5, %v223_v40  ;;  %v229_v0 = vrot.slane %v8129_v58, %v8114_v46  ;;  %v255_v6 = vrot.slane %v8129_v58, %v8116_v48 }
  0x62   : > { %1264 = vmatpush1.bf16.msra.mxu1 %v6840_v7  ;;  %1224 = vmatprep.subr.bf16.mxu0 %v6841_v8  ;;  %v6849_v13 = vld [vmem:[#allocation5 + $0x284] ss:$16 sps:$4 sm:$0xff]   ;;  %v6852_v15 = vld [vmem:[#allocation5 + $0x280] ss:$16 sps:$4 sm:$0xff]   ;;  %v8131_v59 = vsub.s32 6, %v223_v40  ;;  %v8133_v60 = vsub.s32 7, %v223_v40  ;;  %v298_v7 = vrot.slane %v8129_v58, %v8118_v49 }
  0x63   : > { %1265 = vmatprep.subr.bf16.mxu1 %v6843_v9  ;;  %v6853_v16 = vld [vmem:[#allocation5 + $0x64] ss:$16 sps:$4 sm:$0xff]   ;;  %v6857_v18 = vld [vmem:[#allocation5 + $0x60] ss:$16 sps:$4 sm:$0xff]   ;;  %v221_v8 = vmax.f32 %v215_v61, 0.0  ;;  %s6757_s4 = sshll.u32 %s7996_s16, 8 }
  0x64   : > { %v6855_v17 = vld [vmem:[#allocation5 + $0x264] ss:$16 sps:$4 sm:$0xff]   ;;  %v6858_v19 = vld [vmem:[#allocation5 + $0x260] ss:$16 sps:$4 sm:$0xff]   ;;  %s6009_s5 = sshll.u32 %s213_s18, 4  ;;  %s8635_s8 = scalar_lea.hbm %s8676_s3, %s6757_s4  ;;  %s6010_s5 = int_to_ptr.vmem [resolvable:$true] %s6009_s5 }
  0x65   : > { %1225 = vmatpush1.bf16.msra.mxu0 %v6845_v10  ;;  %v6859_v20 = vld [vmem:[#allocation5 + $0x44] ss:$16 sps:$4 sm:$0xff]   ;;  %v6863_v22 = vld [vmem:[#allocation5 + $0x40] ss:$16 sps:$4 sm:$0xff]   ;;  %v318_v10 = vrot.slane %v8129_v58, %v8120_v51  ;;  %s5995_s10 = scalar_lea.sflag [#allocation4], %s189_s28  ;;  %s7873_s11 = scalar_lea.vmem %s6010_s5, 256 }
  0x66   : > { %1266 = vmatpush1.bf16.msra.mxu1 %v6846_v11  ;;  %1226 = vmatprep.subr.bf16.mxu0 %v6847_v12  ;;  %v6861_v21 = vld [vmem:[#allocation5 + $0x244] ss:$16 sps:$4 sm:$0xff]   ;;  %v6864_v23 = vld [vmem:[#allocation5 + $0x240] ss:$16 sps:$4 sm:$0xff]   ;;  %v357_v11 = vrot.slane %v8129_v58, %v8122_v52  ;;  %v385_v12 = vrot.slane %v8129_v58, %v8125_v56  ;;  %p7874_p8 = scmp.ne.s32.totalorder %s6010_s5, %s7873_s11  ;;  %p8694_p7 = scmp.ne.s32.totalorder %s8686_s21, 0 }
  0x67   : > { %1267 = vmatprep.subr.bf16.mxu1 %v6849_v13  ;;  %v6865_v24 = vld [vmem:[#allocation5 + $0x24] ss:$16 sps:$4 sm:$0xff]   ;;  %v6869_v26 = vld [vmem:[#allocation5 + $0x20] ss:$16 sps:$4 sm:$0xff]   ;;  %s7954_s16 = smov [#allocation8]  }
  0x68   : > { %v6867_v25 = vld [vmem:[#allocation5 + $0x224] ss:$16 sps:$4 sm:$0xff]   ;;  %v6870_v27 = vld [vmem:[#allocation5 + $0x220] ss:$16 sps:$4 sm:$0xff]   ;;  %p7875_p11 = pnand %p7874_p8, %p8694_p7  ;;  %s7877_s23 = sshll.u32 %s7954_s16, 4  ;;  %s7878_s23 = int_to_ptr.vmem [resolvable:$false] %s7877_s23 }
  0x69   : > { %1227 = vmatpush1.bf16.msra.mxu0 %v6851_v14  ;;  %v6871_v28 = vld [vmem:[#allocation5 + $0x4] ss:$16 sps:$4 sm:$0xff]   ;;  %v6875_v30 = vld [vmem:[#allocation5] ss:$16 sps:$4 sm:$0xff]   ;;  %v409_v14 = vrot.slane %v8129_v58, %v8131_v59  ;;  %s7879_s24 = scalar_lea.vmem %s7878_s23, 512  ;;  %p7880_p3 = scmp.lt.s32.totalorder %s6010_s5, %s7878_s23 }
  0x6a   : > { %1268 = vmatpush1.bf16.msra.mxu1 %v6852_v15  ;;  %1228 = vmatprep.subr.bf16.mxu0 %v6853_v16  ;;  %v6873_v29 = vld [vmem:[#allocation5 + $0x204] ss:$16 sps:$4 sm:$0xff]   ;;  %v6876_v31 = vld [vmem:[#allocation5 + $0x200] ss:$16 sps:$4 sm:$0xff]   ;;  %v237_v16 = vrot.slane %v8144_v3, %v8114_v46  ;;  %p7876_p12 = pneg %p7875_p11  ;;  %p7881_p9 = scmp.lt.s32.totalorder %s7879_s24, %s7873_s11 }
  0x6b   : > { %1269 = vmatprep.subr.bf16.mxu1 %v6855_v17  ;;  %v6877_v32 = vld [vmem:[#allocation5 + $0x1e4] ss:$16 sps:$4 sm:$0xff]   ;;  %v6881_v34 = vld [vmem:[#allocation5 + $0x1e0] ss:$16 sps:$4 sm:$0xff]  }
  0x6c   : > { %v6879_v33 = vld [vmem:[#allocation5 + $0x3e4] ss:$16 sps:$4 sm:$0xff]   ;;  %v6882_v35 = vld [vmem:[#allocation5 + $0x3e0] ss:$16 sps:$4 sm:$0xff]   ;;  %p7882_p13 = por %p7881_p9, %p7880_p3 }
  0x6d   : > { %1229 = vmatpush1.bf16.msra.mxu0 %v6857_v18  ;;  %v6883_v37 = vld [vmem:[#allocation5 + $0x1c4] ss:$16 sps:$4 sm:$0xff]   ;;  %v6887_v39 = vld [vmem:[#allocation5 + $0x1c0] ss:$16 sps:$4 sm:$0xff]  }
  0x6e   : > { %1270 = vmatpush1.bf16.msra.mxu1 %v6858_v19  ;;  %1230 = vmatprep.subr.bf16.mxu0 %v6859_v20  ;;  %v6885_v38 = vld [vmem:[#allocation5 + $0x3c4] ss:$16 sps:$4 sm:$0xff]   ;;  %v6888_v41 = vld [vmem:[#allocation5 + $0x3c0] ss:$16 sps:$4 sm:$0xff]   ;;  %p7883_p5 = pnand %p7882_p13, %p7876_p12 }
  0x6f   : > { %1271 = vmatprep.subr.bf16.mxu1 %v6861_v21  ;;  %v6889_v42 = vld [vmem:[#allocation5 + $0x1a4] ss:$16 sps:$4 sm:$0xff]   ;;  %v6893_v44 = vld [vmem:[#allocation5 + $0x1a0] ss:$16 sps:$4 sm:$0xff]   ;;  %v263_v21 = vrot.slane %v8144_v3, %v8116_v48 }
  0x70   : > { %v6891_v43 = vld [vmem:[#allocation5 + $0x3a4] ss:$16 sps:$4 sm:$0xff]   ;;  %v6894_v45 = vld [vmem:[#allocation5 + $0x3a0] ss:$16 sps:$4 sm:$0xff]  }
  0x71   : > { %1231 = vmatpush1.bf16.msra.mxu0 %v6863_v22  ;;  %v6895_v47 = vld [vmem:[#allocation5 + $0x184] ss:$16 sps:$4 sm:$0xff]   ;;  %v6899_v53 = vld [vmem:[#allocation5 + $0x180] ss:$16 sps:$4 sm:$0xff]  }
  0x72   : > { %1272 = vmatpush1.bf16.msra.mxu1 %v6864_v23  ;;  %1232 = vmatprep.subr.bf16.mxu0 %v6865_v24  ;;  %v6897_v50 = vld [vmem:[#allocation5 + $0x384] ss:$16 sps:$4 sm:$0xff]   ;;  %v6900_v54 = vld [vmem:[#allocation5 + $0x380] ss:$16 sps:$4 sm:$0xff]   ;;  %v429_v24 = vrot.slane %v8129_v58, %v8133_v60 }
  0x73   : > { %1273 = vmatprep.subr.bf16.mxu1 %v6867_v25  ;;  %v214_v55 = vld [vmem:[%s8108_s30] sm:$0xff] }
  0x74   : > { %v8127_v57 = vld [vmem:[#allocation2] sm:$0xff]  ;;  %v220_v62 = vmax.f32 %v214_v55, 0.0  ;;  %v8142_v2 = vld [vmem:[#allocation2 + $0x10] sm:$0xff] }
  0x75   : > { %1233 = vmatpush1.bf16.msra.mxu0 %v6869_v26  ;;  %v225_v63 = vrot.slane %v8127_v57, %v8114_v46  ;;  %v251_v1 = vrot.slane %v8127_v57, %v8116_v48  ;;  %v6901_v4 = vld [vmem:[#allocation5 + $0x164] ss:$16 sps:$4 sm:$0xff]   ;;  %v233_v15 = vrot.slane %v8142_v2, %v8114_v46  ;;  %v6905_v17 = vld [vmem:[#allocation5 + $0x160] ss:$16 sps:$4 sm:$0xff]   ;;  %v259_v20 = vrot.slane %v8142_v2, %v8116_v48 }
  0x76   : > { %1274 = vmatpush1.bf16.msra.mxu1 %v6870_v27  ;;  %1234 = vmatprep.subr.bf16.mxu0 %v6871_v28  ;;  %v6903_v5 = vld [vmem:[#allocation5 + $0x364] ss:$16 sps:$4 sm:$0xff]   ;;  %v6906_v18 = vld [vmem:[#allocation5 + $0x360] ss:$16 sps:$4 sm:$0xff]   ;;  %v306_v26 = vrot.slane %v8144_v3, %v8118_v49  ;;  %v314_v40 = vrot.slane %v8127_v57, %v8120_v51 }
  0x77   : > { %1275 = vmatprep.subr.bf16.mxu1 %v6873_v29  ;;  %v242_v9 = vcombine.low %v225_v63, %v229_v0  ;;  %v268_v13 = vcombine.low %v251_v1, %v255_v6  ;;  %v6907_v22 = vld [vmem:[#allocation5 + $0x144] ss:$16 sps:$4 sm:$0xff]   ;;  %v243_v25 = vcombine.low %v233_v15, %v237_v16  ;;  %v269_v28 = vcombine.low %v259_v20, %v263_v21  ;;  %v6912_v36 = vld [vmem:[#allocation5 + $0x340] ss:$16 sps:$4 sm:$0xff]  }
  0x78   : > { %v6909_v23 = vld [vmem:[#allocation5 + $0x344] ss:$16 sps:$4 sm:$0xff]   ;;  %v326_v29 = vrot.slane %v8144_v3, %v8120_v51  ;;  %v6917_v55 = vld [vmem:[#allocation5 + $0x120] ss:$16 sps:$4 sm:$0xff]   ;;  %v425_v20 = vrot.slane %v8127_v57, %v8133_v60 }
  0x79   : > { %1235 = vmatpush1.bf16.msra.mxu0 %v6875_v30  ;;  %v246_v19 = vmul.f32 %v242_v9, %v220_v62  ;;  %v365_v30 = vrot.slane %v8144_v3, %v8122_v52  ;;  %v6918_v61 = vld [vmem:[#allocation5 + $0x320] ss:$16 sps:$4 sm:$0xff]   ;;  %v405_v9 = vrot.slane %v8127_v57, %v8131_v59 }
  0x7a   : > { %1276 = vmatpush1.bf16.msra.mxu1 %v6876_v31  ;;  %1236 = vmatprep.subr.bf16.mxu0 %v6877_v32  ;;  %v6911_v31 = vld [vmem:[#allocation5 + $0x140] ss:$16 sps:$4 sm:$0xff]   ;;  %v247_v32 = vmul.f32 %v243_v25, %v221_v8 }
  0x7b   : > { %1277 = vmatprep.subr.bf16.mxu1 %v6879_v33  ;;  %v272_v27 = vadd.f32 %v268_v13, %v246_v19  ;;  %v393_v33 = vrot.slane %v8144_v3, %v8125_v56 }
  0x7d   : > { %1237 = vmatpush2.bf16.msra.mxu0 %v6881_v34  ;;  %v417_v34 = vrot.slane %v8144_v3, %v8131_v59  ;;  %v329_v0 = vmul.f32 %v314_v40, %v272_v27 }
  0x7e   : > { %1278 = vmatpush2.bf16.msra.mxu1 %v6882_v35  ;;  %1238 = vmatprep.subr.bf16.mxu0 %v6883_v37  ;;  %v294_v35 = vrot.slane %v8127_v57, %v8118_v49  ;;  %v6913_v37 = vld [vmem:[#allocation5 + $0x124] ss:$16 sps:$4 sm:$0xff]  }
  0x7f   : > { %1279 = vmatprep.subr.bf16.mxu1 %v6885_v38  ;;  %v276_v38 = vcombine.high %v272_v27, %v272_v27 }
  0x81   : > { %1239 = vmatpush2.bf16.msra.mxu0 %v6887_v39  ;;  %v278_v39 = vrot.slane %v272_v27, 7 }
  0x82   : > { %1280 = vmatpush2.bf16.msra.mxu1 %v6888_v41  ;;  %1240 = vmatprep.subr.bf16.mxu0 %v6889_v42  ;;  %v337_v41 = vrot.slane %v272_v27, 1  ;;  %v6915_v42 = vld [vmem:[#allocation5 + $0x324] ss:$16 sps:$4 sm:$0xff]   ;;  %v302_v27 = vrot.slane %v8142_v2, %v8118_v49 }
  0x83   : > { %1281 = vmatprep.subr.bf16.mxu1 %v6891_v43  ;;  %v273_v43 = vadd.f32 %v269_v28, %v247_v32 }
  0x84   : > { %v346_v1 = vsel %vm345_vm1, %v337_v41, 0.0 }
  0x85   : > { %1241 = vmatpush2.bf16.msra.mxu0 %v6893_v44  ;;  %v353_v44 = vrot.slane %v8127_v57, %v8122_v52  ;;  %v277_v62 = vcombine.high %v273_v43, %v273_v43  ;;  %v280_v21 = vrot.slane %v273_v43, 7 }
  0x86   : > { %1282 = vmatpush2.bf16.msra.mxu1 %v6894_v45  ;;  %1242 = vmatprep.subr.bf16.mxu0 %v6895_v47  ;;  %v381_v45 = vrot.slane %v8127_v57, %v8125_v56  ;;  %v279_v47 = vrot.slane %v276_v38, 7 }
  0x87   : > { %1283 = vmatprep.subr.bf16.mxu1 %v6897_v50  ;;  %v330_v50 = vmul.f32 %v318_v10, %v276_v38  ;;  %v366_v8 = vmul.f32 %v353_v44, %v346_v1  ;;  %v6921_v10 = vld [vmem:[#allocation5 + $0x304] ss:$16 sps:$4 sm:$0xff]   ;;  %v281_v16 = vrot.slane %v277_v62, 7  ;;  %v289_v57 = vsel %vm286_vm0, 0.0, %v280_v21  ;;  %v6937_v21 = vld [vmem:[#allocation5 + $0xa8] ss:$16 sps:$4 sm:$0xff]  }
  0x89   : > { %1243 = vmatpush2.bf16.msra.mxu0 %v6899_v53  ;;  %v338_v53 = vrot.slane %v276_v38, 1  ;;  %v290_v25 = vsel %vm286_vm0, 0.0, %v281_v16  ;;  %v6927_v38 = vld [vmem:[#allocation5 + $0xec] ss:$16 sps:$4 sm:$0xff]  }
  0x8a   : > { %1284 = vmatpush2.bf16.msra.mxu1 %v6900_v54  ;;  %1244 = vmatprep.subr.bf16.mxu0 %v6901_v4  ;;  %v287_v54 = vsel %vm286_vm0, 0.0, %v278_v39  ;;  %v6919_v4 = vld [vmem:[#allocation5 + $0x104] ss:$16 sps:$4 sm:$0xff]   ;;  %v310_v28 = vmul.f32 %v306_v26, %v290_v25  ;;  %v6930_v26 = vld [vmem:[#allocation5 + $0x2ec] ss:$16 sps:$4 sm:$0xff]  }
  0x8b   : > { %1285 = vmatprep.subr.bf16.mxu1 %v6903_v5  ;;  %v307_v63 = vmul.f32 %v294_v35, %v287_v54  ;;  %v288_v5 = vsel %vm286_vm0, 0.0, %v279_v47  ;;  %v347_v6 = vsel %vm345_vm1, %v338_v53, 0.0  ;;  %v361_v47 = vrot.slane %v8142_v2, %v8122_v52  ;;  %v6940_v25 = vld [vmem:[#allocation5 + $0x2a8] ss:$16 sps:$4 sm:$0xff]  }
  0x8c   : > { %v308_v13 = vmul.f32 %v298_v7, %v288_v5  ;;  %v367_v15 = vmul.f32 %v357_v11, %v347_v6  ;;  %v322_v7 = vrot.slane %v8142_v2, %v8120_v51  ;;  %v6924_v11 = vld [vmem:[#allocation5 + $0x300] ss:$16 sps:$4 sm:$0xff]   ;;  %v413_v5 = vrot.slane %v8142_v2, %v8131_v59 }
  0x8d   : > { %1245 = vmatpush2.bf16.msra.mxu0 %v6905_v17  ;;  %v332_v17 = vmul.f32 %v326_v29, %v277_v62  ;;  %v333_v19 = vadd.f32 %v329_v0, %v307_v63 }
  0x8e   : > { %1286 = vmatpush2.bf16.msra.mxu1 %v6906_v18  ;;  %1246 = vmatprep.subr.bf16.mxu0 %v6907_v22  ;;  %v340_v18 = vrot.slane %v277_v62, 1  ;;  %v6923_v22 = vld [vmem:[#allocation5 + $0x100] ss:$16 sps:$4 sm:$0xff]   ;;  %v331_v41 = vmul.f32 %v322_v7, %v273_v43  ;;  %v437_v62 = vrot.slane %v8144_v3, %v8133_v60  ;;  %v6928_v3 = vld [vmem:[#allocation5 + $0x2e8] ss:$16 sps:$4 sm:$0xff]  }
  0x8f   : > { %1287 = vmatprep.subr.bf16.mxu1 %v6909_v23  ;;  %v334_v23 = vadd.f32 %v330_v50, %v308_v13  ;;  %v336_v39 = vadd.f32 %v332_v17, %v310_v28  ;;  %v6951_v7 = vld [vmem:[#allocation5 + $0x6c] ss:$16 sps:$4 sm:$0xff]   ;;  %v6946_v28 = vld [vmem:[#allocation5 + $0x288] ss:$16 sps:$4 sm:$0xff]  }
  0x90   : > { %v349_v29 = vsel %vm345_vm1, %v340_v18, 0.0  ;;  %v6939_v18 = vld [vmem:[#allocation5 + $0xac] ss:$16 sps:$4 sm:$0xff]  }
  0x91   : > { %1247 = vmatpush2.bf16.msra.mxu0 %v6911_v31  ;;  %v370_v31 = vadd.f32 %v366_v8, %v333_v19  ;;  %v371_v32 = vadd.f32 %v367_v15, %v334_v23  ;;  %v369_v35 = vmul.f32 %v365_v30, %v349_v29  ;;  %v6942_v23 = vld [vmem:[#allocation5 + $0x2ac] ss:$16 sps:$4 sm:$0xff]   ;;  %v6949_v29 = vld [vmem:[#allocation5 + $0x68] ss:$16 sps:$4 sm:$0xff]  }
  0x92   : > { %1288 = vmatpush2.bf16.msra.mxu1 %v6912_v36  ;;  %1248 = vmatprep.subr.bf16.mxu0 %v6913_v37  ;;  %v309_v36 = vmul.f32 %v302_v27, %v289_v57  ;;  %v339_v37 = vrot.slane %v273_v43, 1  ;;  %v389_v43 = vrot.slane %v8142_v2, %v8125_v56  ;;  %v6943_v27 = vld [vmem:[#allocation5 + $0x88] ss:$16 sps:$4 sm:$0xff]   ;;  %v6954_v57 = vld [vmem:[#allocation5 + $0x26c] ss:$16 sps:$4 sm:$0xff]  }
  0x93   : > { %1289 = vmatprep.subr.bf16.mxu1 %v6915_v42  ;;  %vm374_vm2 = vcmp.ge.f32.partialorder %v370_v31, 0.0  ;;  %v394_v40 = vmul.f32 %v381_v45, %v370_v31  ;;  %vm375_vm3 = vcmp.ge.f32.partialorder %v371_v32, 0.0  ;;  %v395_v42 = vmul.f32 %v385_v12, %v371_v32 }
  0x94   : > { %v348_v44 = vsel %vm345_vm1, %v339_v37, 0.0  ;;  %v373_v30 = vadd.f32 %v369_v35, %v336_v39  ;;  %v335_v53 = vadd.f32 %v331_v41, %v309_v36  ;;  %v6955_v35 = vld [vmem:[#allocation5 + $0x48] ss:$16 sps:$4 sm:$0xff]   ;;  %v6963_v36 = vld [vmem:[#allocation5 + $0x2c] ss:$16 sps:$4 sm:$0xff]  }
  0x95   : > { %1249 = vmatpush2.bf16.msra.mxu0 %v6917_v55  ;;  %v398_v50 = vsel %vm374_vm2, %v370_v31, %v394_v40  ;;  %v399_v54 = vsel %vm375_vm3, %v371_v32, %v395_v42  ;;  %v368_v45 = vmul.f32 %v361_v47, %v348_v44  ;;  %v6957_v31 = vld [vmem:[#allocation5 + $0x4c] ss:$16 sps:$4 sm:$0xff]   ;;  %v6952_v32 = vld [vmem:[#allocation5 + $0x268] ss:$16 sps:$4 sm:$0xff]  }
  0x96   : > { %1290 = vmatpush2.bf16.msra.mxu1 %v6918_v61  ;;  %1250 = vmatprep.subr.bf16.mxu0 %v6919_v4  ;;  %v418_v55 = vmul.f32 %v405_v9, %v398_v50  ;;  %v419_v12 = vmul.f32 %v409_v14, %v399_v54  ;;  %vm377_vm4 = vcmp.ge.f32.partialorder %v373_v30, 0.0  ;;  %v397_v61 = vmul.f32 %v393_v33, %v373_v30  ;;  %v6960_v37 = vld [vmem:[#allocation5 + $0x24c] ss:$16 sps:$4 sm:$0xff]   ;;  %v6961_v39 = vld [vmem:[#allocation5 + $0x28] ss:$16 sps:$4 sm:$0xff]  }
  0x97   : > { %1291 = vmatprep.subr.bf16.mxu1 %v6921_v10  ;;  %v372_v0 = vadd.f32 %v368_v45, %v335_v53  ;;  %v433_v9 = vrot.slane %v8142_v2, %v8133_v60  ;;  %v6925_v10 = vld [vmem:[#allocation5 + $0xe8] ss:$16 sps:$4 sm:$0xff]   ;;  %v6936_v2 = vld [vmem:[#allocation5 + $0x2cc] ss:$16 sps:$4 sm:$0xff]  }
  0x98   : > { %v438_v63 = vadd.f32 %v425_v20, %v418_v55  ;;  %v439_v1 = vadd.f32 %v429_v24, %v419_v12  ;;  %v401_v4 = vsel %vm377_vm4, %v373_v30, %v397_v61  ;;  %v6933_v24 = vld [vmem:[#allocation5 + $0xcc] ss:$16 sps:$4 sm:$0xff]   ;;  %v6934_v20 = vld [vmem:[#allocation5 + $0x2c8] ss:$16 sps:$4 sm:$0xff]  }
  0x99   : > { %1251 = vmatpush2.bf16.msra.mxu0 %v6923_v22  ;;  %v421_v14 = vmul.f32 %v417_v34, %v401_v4  ;;  %vm376_vm5 = vcmp.ge.f32.partialorder %v372_v0, 0.0  ;;  %v396_v33 = vmul.f32 %v389_v43, %v372_v0  ;;  %v6931_v34 = vld [vmem:[#allocation5 + $0xc8] ss:$16 sps:$4 sm:$0xff]   ;;  %v6945_v22 = vld [vmem:[#allocation5 + $0x8c] ss:$16 sps:$4 sm:$0xff]  }
  0x9a   : > { %1292 = vmatpush2.bf16.msra.mxu1 %v6924_v11  ;;  %1302 = vmatprep.subr.bf16.mxu0 %v6927_v38  ;;  %v8234_v6 = vpack.c.bf16 %v438_v63, %v438_v63  ;;  %v571_v8 = vpack.c.bf16 %v439_v1, %v439_v1  ;;  %v6948_v11 = vld [vmem:[#allocation5 + $0x28c] ss:$16 sps:$4 sm:$0xff]   ;;  %v6958_v38 = vld [vmem:[#allocation5 + $0x248] ss:$16 sps:$4 sm:$0xff]  }
  0x9b   : > { %1343 = vmatprep.subr.bf16.mxu1 %v6930_v26  ;;  %v441_v13 = vadd.f32 %v437_v62, %v421_v14  ;;  %v400_v58 = vsel %vm376_vm5, %v372_v0, %v396_v33  ;;  %v6969_v40 = vld [vmem:[#allocation5 + $0xc] ss:$16 sps:$4 sm:$0xff]   ;;  %v6964_v26 = vld [vmem:[#allocation5 + $0x228] ss:$16 sps:$4 sm:$0xff]  }
  0x9c   : > { %1252 = vmatprep.mubr.bf16.mxu0 %v571_v8  ;;  %v420_v15 = vmul.f32 %v413_v5, %v400_v58  ;;  %v6966_v41 = vld [vmem:[#allocation5 + $0x22c] ss:$16 sps:$4 sm:$0xff]   ;;  %v6967_v42 = vld [vmem:[#allocation5 + $0x8] ss:$16 sps:$4 sm:$0xff]  }
  0x9d   : > { %v573_v16 = vpack.c.bf16 %v441_v13, %v441_v13  ;;  %1253 = vmatmul.mubr.bf16.vlgmr.msra.gmra.mxu0 %v8234_v6  ;;  %v6972_v44 = vld [vmem:[#allocation5 + $0x20c] ss:$16 sps:$4 sm:$0xff]   ;;  %v6973_v30 = vld [vmem:[#allocation5 + $0x1e8] ss:$16 sps:$4 sm:$0xff]  }
  0x9e   : > { %v440_v17 = vadd.f32 %v433_v9, %v420_v15  ;;  %1303 = vmatpush1.bf16.msra.mxu0 %v6925_v10  ;;  %1334 = vmatprep.mubr.bf16.mxu0 %v571_v8  ;;  %v6975_v47 = vld [vmem:[#allocation5 + $0x1ec] ss:$16 sps:$4 sm:$0xff]   ;;  %v6970_v50 = vld [vmem:[#allocation5 + $0x208] ss:$16 sps:$4 sm:$0xff]  }
  0x9f   : > { %1293 = vmatprep.mubr.bf16.mxu1 %v573_v16  ;;  %1304 = vmatprep.subr.bf16.mxu0 %v6933_v24  ;;  %v6981_v53 = vld [vmem:[#allocation5 + $0x1cc] ss:$16 sps:$4 sm:$0xff]   ;;  %v6979_v55 = vld [vmem:[#allocation5 + $0x1c8] ss:$16 sps:$4 sm:$0xff]  }
  0xa0   : > { %v8239_v19 = vpack.c.bf16 %v440_v17, %v440_v17  ;;  %v6978_v54 = vld [vmem:[#allocation5 + $0x3ec] ss:$16 sps:$4 sm:$0xff]   ;;  %v6976_v45 = vld [vmem:[#allocation5 + $0x3e8] ss:$16 sps:$4 sm:$0xff]  }
  0xa1   : > { %v6987_v43 = vld [vmem:[#allocation5 + $0x1ac] ss:$16 sps:$4 sm:$0xff]   ;;  %v6985_v61 = vld [vmem:[#allocation5 + $0x1a8] ss:$16 sps:$4 sm:$0xff]  }
  0xa2   : > { %1294 = vmatmul.mubr.bf16.vlgmr.msra.gmra.mxu1 %v8239_v19  ;;  %1305 = vmatpush1.bf16.msra.mxu0 %v6931_v34  ;;  %v6984_v12 = vld [vmem:[#allocation5 + $0x3cc] ss:$16 sps:$4 sm:$0xff]   ;;  %v6982_v62 = vld [vmem:[#allocation5 + $0x3c8] ss:$16 sps:$4 sm:$0xff]  }
  0xa3   : > { %1344 = vmatpush1.bf16.msra.mxu1 %v6928_v3  ;;  %1306 = vmatprep.subr.bf16.mxu0 %v6939_v18  ;;  %v6993_v63 = vld [vmem:[#allocation5 + $0x18c] ss:$16 sps:$4 sm:$0xff]   ;;  %v6991_v1 = vld [vmem:[#allocation5 + $0x188] ss:$16 sps:$4 sm:$0xff]  }
  0xa4   : > { %1345 = vmatprep.subr.bf16.mxu1 %v6936_v2  ;;  %1375 = vmatprep.mubr.bf16.mxu1 %v573_v16  ;;  %v6990_v0 = vld [vmem:[#allocation5 + $0x3ac] ss:$16 sps:$4 sm:$0xff]   ;;  %v6988_v4 = vld [vmem:[#allocation5 + $0x3a8] ss:$16 sps:$4 sm:$0xff]  }
  0xa5   : > { %v6999_v5 = vld [vmem:[#allocation5 + $0x16c] ss:$16 sps:$4 sm:$0xff]   ;;  %v6997_v33 = vld [vmem:[#allocation5 + $0x168] ss:$16 sps:$4 sm:$0xff]  }
  0xa6   : > { %1307 = vmatpush1.bf16.msra.mxu0 %v6937_v21  ;;  %v6996_v14 = vld [vmem:[#allocation5 + $0x38c] ss:$16 sps:$4 sm:$0xff]   ;;  %v6994_v8 = vld [vmem:[#allocation5 + $0x388] ss:$16 sps:$4 sm:$0xff]  }
  0xa7   : > { %1346 = vmatpush1.bf16.msra.mxu1 %v6934_v20  ;;  %1308 = vmatprep.subr.bf16.mxu0 %v6945_v22  ;;  %v7005_v9 = vld [vmem:[#allocation5 + $0x14c] ss:$16 sps:$4 sm:$0xff]   ;;  %v7003_v13 = vld [vmem:[#allocation5 + $0x148] ss:$16 sps:$4 sm:$0xff]   ;;  %v7023_v20 = vld [vmem:[#allocation5 + $0x4e4] ss:$16 sps:$4 sm:$0xff]  }
  0xa8   : > { %1347 = vmatprep.subr.bf16.mxu1 %v6942_v23  ;;  %v7002_v10 = vld [vmem:[#allocation5 + $0x36c] ss:$16 sps:$4 sm:$0xff]   ;;  %v7000_v58 = vld [vmem:[#allocation5 + $0x368] ss:$16 sps:$4 sm:$0xff]   ;;  %v7021_v22 = vld [vmem:[#allocation5 + $0x4e0] ss:$16 sps:$4 sm:$0xff]  }
  0xa9   : > { %v7011_v24 = vld [vmem:[#allocation5 + $0x12c] ss:$16 sps:$4 sm:$0xff]   ;;  %v7009_v16 = vld [vmem:[#allocation5 + $0x128] ss:$16 sps:$4 sm:$0xff]  }
  0xaa   : > { %1309 = vmatpush1.bf16.msra.mxu0 %v6943_v27  ;;  %v7008_v15 = vld [vmem:[#allocation5 + $0x34c] ss:$16 sps:$4 sm:$0xff]   ;;  %v7006_v17 = vld [vmem:[#allocation5 + $0x348] ss:$16 sps:$4 sm:$0xff]   ;;  %v7024_v27 = vld [vmem:[#allocation5 + $0x4c0] ss:$16 sps:$4 sm:$0xff]  }
  0xab   : > { %1348 = vmatpush1.bf16.msra.mxu1 %v6940_v25  ;;  %1310 = vmatprep.subr.bf16.mxu0 %v6951_v7  ;;  %v7017_v3 = vld [vmem:[#allocation5 + $0x10c] ss:$16 sps:$4 sm:$0xff]   ;;  %v7015_v18 = vld [vmem:[#allocation5 + $0x108] ss:$16 sps:$4 sm:$0xff]   ;;  %v7026_v25 = vld [vmem:[#allocation5 + $0x4c4] ss:$16 sps:$4 sm:$0xff]  }
  0xac   : > { %1349 = vmatprep.subr.bf16.mxu1 %v6948_v11  ;;  %v7014_v34 = vld [vmem:[#allocation5 + $0x32c] ss:$16 sps:$4 sm:$0xff]   ;;  %v7012_v2 = vld [vmem:[#allocation5 + $0x328] ss:$16 sps:$4 sm:$0xff]   ;;  %v7029_v7 = vld [vmem:[#allocation5 + $0x4a4] ss:$16 sps:$4 sm:$0xff]  }
  0xad   : > { %v7020_v21 = vld [vmem:[#allocation5 + $0x30c] ss:$16 sps:$4 sm:$0xff]   ;;  %v7018_v23 = vld [vmem:[#allocation5 + $0x308] ss:$16 sps:$4 sm:$0xff]   ;;  %v7027_v11 = vld [vmem:[#allocation5 + $0x4a0] ss:$16 sps:$4 sm:$0xff]  }
  0xae   : > { %1311 = vmatpush1.bf16.msra.mxu0 %v6949_v29  ;;  %v7030_v29 = vld [vmem:[#allocation5 + $0x480] ss:$16 sps:$4 sm:$0xff]  }
  0xaf   : > { %1350 = vmatpush1.bf16.msra.mxu1 %v6946_v28  ;;  %1312 = vmatprep.subr.bf16.mxu0 %v6957_v31  ;;  %v7032_v28 = vld [vmem:[#allocation5 + $0x484] ss:$16 sps:$4 sm:$0xff]  }
  0xb0   : > { %1351 = vmatprep.subr.bf16.mxu1 %v6954_v57  ;;  %v7035_v31 = vld [vmem:[#allocation5 + $0x464] ss:$16 sps:$4 sm:$0xff]   ;;  %v7033_v57 = vld [vmem:[#allocation5 + $0x460] ss:$16 sps:$4 sm:$0xff]  }
  0xb2   : > { %1313 = vmatpush1.bf16.msra.mxu0 %v6955_v35  ;;  %v7036_v35 = vld [vmem:[#allocation5 + $0x440] ss:$16 sps:$4 sm:$0xff]  }
  0xb3   : > { %1352 = vmatpush1.bf16.msra.mxu1 %v6952_v32  ;;  %1314 = vmatprep.subr.bf16.mxu0 %v6963_v36  ;;  %v7038_v32 = vld [vmem:[#allocation5 + $0x444] ss:$16 sps:$4 sm:$0xff]   ;;  %v7039_v36 = vld [vmem:[#allocation5 + $0x420] ss:$16 sps:$4 sm:$0xff]  }
  0xb4   : > { %1353 = vmatprep.subr.bf16.mxu1 %v6960_v37  ;;  %v7044_v37 = vld [vmem:[#allocation5 + $0x404] ss:$16 sps:$4 sm:$0xff]  }
  0xb6   : > { %1315 = vmatpush1.bf16.msra.mxu0 %v6961_v39  ;;  %v7045_v39 = vld [vmem:[#allocation5 + $0x5e0] ss:$16 sps:$4 sm:$0xff]  }
  0xb7   : > { %1354 = vmatpush1.bf16.msra.mxu1 %v6958_v38  ;;  %1316 = vmatprep.subr.bf16.mxu0 %v6969_v40  ;;  %v7047_v38 = vld [vmem:[#allocation5 + $0x5e4] ss:$16 sps:$4 sm:$0xff]  }
  0xb8   : > { %1355 = vmatprep.subr.bf16.mxu1 %v6966_v41  ;;  %v7051_v40 = vld [vmem:[#allocation5 + $0x5c4] ss:$16 sps:$4 sm:$0xff]   ;;  %v7049_v41 = vld [vmem:[#allocation5 + $0x5c0] ss:$16 sps:$4 sm:$0xff]  }
  0xba   : > { %1317 = vmatpush1.bf16.msra.mxu0 %v6967_v42  ;;  %v7070_v42 = vld [vmem:[#allocation5 + $0x6e0] ss:$16 sps:$4 sm:$0xff]  }
  0xbb   : > { %1356 = vmatpush1.bf16.msra.mxu1 %v6964_v26  ;;  %1318 = vmatprep.subr.bf16.mxu0 %v6975_v47  ;;  %v7054_v26 = vld [vmem:[#allocation5 + $0x5a4] ss:$16 sps:$4 sm:$0xff]   ;;  %v7052_v47 = vld [vmem:[#allocation5 + $0x5a0] ss:$16 sps:$4 sm:$0xff]  }
  0xbc   : > { %1357 = vmatprep.subr.bf16.mxu1 %v6972_v44  ;;  %v7072_v44 = vld [vmem:[#allocation5 + $0x6e4] ss:$16 sps:$4 sm:$0xff]  }
  0xbe   : > { %1319 = vmatpush2.bf16.msra.mxu0 %v6973_v30  ;;  %v7057_v30 = vld [vmem:[#allocation5 + $0x584] ss:$16 sps:$4 sm:$0xff]  }
  0xbf   : > { %1358 = vmatpush1.bf16.msra.mxu1 %v6970_v50  ;;  %1320 = vmatprep.subr.bf16.mxu0 %v6981_v53  ;;  %v7078_v50 = vld [vmem:[#allocation5 + $0x6c4] ss:$16 sps:$4 sm:$0xff]   ;;  %v7076_v53 = vld [vmem:[#allocation5 + $0x6c0] ss:$16 sps:$4 sm:$0xff]  }
  0xc0   : > { %1359 = vmatprep.subr.bf16.mxu1 %v6978_v54  ;;  %v7055_v54 = vld [vmem:[#allocation5 + $0x580] ss:$16 sps:$4 sm:$0xff]  }
  0xc2   : > { %1321 = vmatpush2.bf16.msra.mxu0 %v6979_v55  ;;  %v7060_v55 = vld [vmem:[#allocation5 + $0x564] ss:$16 sps:$4 sm:$0xff]  }
  0xc3   : > { %1360 = vmatpush2.bf16.msra.mxu1 %v6976_v45  ;;  %1322 = vmatprep.subr.bf16.mxu0 %v6987_v43  ;;  %v7084_v45 = vld [vmem:[#allocation5 + $0x6a4] ss:$16 sps:$4 sm:$0xff]   ;;  %v7082_v43 = vld [vmem:[#allocation5 + $0x6a0] ss:$16 sps:$4 sm:$0xff]  }
  0xc4   : > { %1361 = vmatprep.subr.bf16.mxu1 %v6984_v12  ;;  %v7058_v12 = vld [vmem:[#allocation5 + $0x560] ss:$16 sps:$4 sm:$0xff]  }
  0xc6   : > { %1323 = vmatpush2.bf16.msra.mxu0 %v6985_v61  ;;  %v7063_v61 = vld [vmem:[#allocation5 + $0x544] ss:$16 sps:$4 sm:$0xff]  }
  0xc7   : > { %1362 = vmatpush2.bf16.msra.mxu1 %v6982_v62  ;;  %1324 = vmatprep.subr.bf16.mxu0 %v6993_v63  ;;  %v7090_v62 = vld [vmem:[#allocation5 + $0x684] ss:$16 sps:$4 sm:$0xff]   ;;  %v7088_v63 = vld [vmem:[#allocation5 + $0x680] ss:$16 sps:$4 sm:$0xff]  }
  0xc8   : > { %1363 = vmatprep.subr.bf16.mxu1 %v6990_v0  ;;  %v7061_v0 = vld [vmem:[#allocation5 + $0x540] ss:$16 sps:$4 sm:$0xff]  }
  0xca   : > { %1325 = vmatpush2.bf16.msra.mxu0 %v6991_v1  ;;  %v7066_v1 = vld [vmem:[#allocation5 + $0x524] ss:$16 sps:$4 sm:$0xff]  }
  0xcb   : > { %1364 = vmatpush2.bf16.msra.mxu1 %v6988_v4  ;;  %1326 = vmatprep.subr.bf16.mxu0 %v6999_v5  ;;  %v7096_v4 = vld [vmem:[#allocation5 + $0x664] ss:$16 sps:$4 sm:$0xff]   ;;  %v7094_v5 = vld [vmem:[#allocation5 + $0x660] ss:$16 sps:$4 sm:$0xff]  }
  0xcc   : > { %1365 = vmatprep.subr.bf16.mxu1 %v6996_v14  ;;  %v7064_v14 = vld [vmem:[#allocation5 + $0x520] ss:$16 sps:$4 sm:$0xff]  }
  0xce   : > { %1327 = vmatpush2.bf16.msra.mxu0 %v6997_v33  ;;  %v7069_v33 = vld [vmem:[#allocation5 + $0x504] ss:$16 sps:$4 sm:$0xff]  }
  0xcf   : > { %1366 = vmatpush2.bf16.msra.mxu1 %v6994_v8  ;;  %1328 = vmatprep.subr.bf16.mxu0 %v7005_v9  ;;  %v7102_v8 = vld [vmem:[#allocation5 + $0x644] ss:$16 sps:$4 sm:$0xff]   ;;  %v7100_v9 = vld [vmem:[#allocation5 + $0x640] ss:$16 sps:$4 sm:$0xff]  }
  0xd0   : > { %1367 = vmatprep.subr.bf16.mxu1 %v7002_v10  ;;  %v7067_v10 = vld [vmem:[#allocation5 + $0x500] ss:$16 sps:$4 sm:$0xff]  }
  0xd2   : > { %1329 = vmatpush2.bf16.msra.mxu0 %v7003_v13  ;;  %v7075_v13 = vld [vmem:[#allocation5 + $0x4ec] ss:$16 sps:$4 sm:$0xff]  }
  0xd3   : > { %1368 = vmatpush2.bf16.msra.mxu1 %v7000_v58  ;;  %1330 = vmatprep.subr.bf16.mxu0 %v7011_v24  ;;  %v7108_v58 = vld [vmem:[#allocation5 + $0x624] ss:$16 sps:$4 sm:$0xff]   ;;  %v7106_v24 = vld [vmem:[#allocation5 + $0x620] ss:$16 sps:$4 sm:$0xff]  }
  0xd4   : > { %1369 = vmatprep.subr.bf16.mxu1 %v7008_v15  ;;  %v7114_v15 = vld [vmem:[#allocation5 + $0x604] ss:$16 sps:$4 sm:$0xff]  }
  0xd6   : > { %1331 = vmatpush2.bf16.msra.mxu0 %v7009_v16  ;;  %v7112_v16 = vld [vmem:[#allocation5 + $0x600] ss:$16 sps:$4 sm:$0xff]  }
  0xd7   : > { %1370 = vmatpush2.bf16.msra.mxu1 %v7006_v17  ;;  %1332 = vmatprep.subr.bf16.mxu0 %v7017_v3  ;;  %v7120_v17 = vld [vmem:[#allocation5 + $0x7e4] ss:$16 sps:$4 sm:$0xff]   ;;  %v7118_v3 = vld [vmem:[#allocation5 + $0x7e0] ss:$16 sps:$4 sm:$0xff]  }
  0xd8   : > { %1371 = vmatprep.subr.bf16.mxu1 %v7014_v34  ;;  %v7127_v34 = vld [vmem:[#allocation5 + $0x7c4] ss:$16 sps:$4 sm:$0xff]  }
  0xda   : > { %1333 = vmatpush2.bf16.msra.mxu0 %v7015_v18  ;;  %v7125_v18 = vld [vmem:[#allocation5 + $0x7c0] ss:$16 sps:$4 sm:$0xff]  }
  0xdb   : > { %1372 = vmatpush2.bf16.msra.mxu1 %v7012_v2  ;;  %2370 = vmatprep.subr.bf16.mxu0 %v7023_v20  ;;  %v7133_v2 = vld [vmem:[#allocation5 + $0x7a4] ss:$16 sps:$4 sm:$0xff]   ;;  %v7131_v20 = vld [vmem:[#allocation5 + $0x7a0] ss:$16 sps:$4 sm:$0xff]  }
  0xdc   : > { %1373 = vmatprep.subr.bf16.mxu1 %v7020_v21  ;;  %v7139_v21 = vld [vmem:[#allocation5 + $0x784] ss:$16 sps:$4 sm:$0xff]  }
  0xdd   : > { %1335 = vmatmul.mubr.bf16.vlgmr.msra.gmra.mxu0 %v8234_v6  ;;  %v7041_v6 = vld [vmem:[#allocation5 + $0x424] ss:$16 sps:$4 sm:$0xff]  }
  0xde   : > { %2371 = vmatpush1.bf16.msra.mxu0 %v7021_v22  ;;  %v7137_v22 = vld [vmem:[#allocation5 + $0x780] ss:$16 sps:$4 sm:$0xff]  }
  0xdf   : > { %1374 = vmatpush2.bf16.msra.mxu1 %v7018_v23  ;;  %2372 = vmatprep.subr.bf16.mxu0 %v7026_v25  ;;  %v7145_v23 = vld [vmem:[#allocation5 + $0x764] ss:$16 sps:$4 sm:$0xff]   ;;  %v7143_v25 = vld [vmem:[#allocation5 + $0x760] ss:$16 sps:$4 sm:$0xff]  }
  0xe0   : > { %2411 = vmatprep.subr.bf16.mxu1 %v7072_v44 }
  0xe2   : > { %1376 = vmatmul.mubr.bf16.vlgmr.msra.gmra.mxu1 %v8239_v19  ;;  %2373 = vmatpush1.bf16.msra.mxu0 %v7024_v27  ;;  %v7042_v19 = vld [vmem:[#allocation5 + $0x400] ss:$16 sps:$4 sm:$0xff]  }
  0xe3   : > { %2374 = vmatprep.subr.bf16.mxu0 %v7029_v7  ;;  %2412 = vmatpush1.bf16.msra.mxu1 %v7070_v42  ;;  %v7149_v27 = vld [vmem:[#allocation5 + $0x740] ss:$16 sps:$4 sm:$0xff]   ;;  %v7151_v7 = vld [vmem:[#allocation5 + $0x744] ss:$16 sps:$4 sm:$0xff]  }
  0xe4   : > { %2413 = vmatprep.subr.bf16.mxu1 %v7078_v50 }
  0xe6   : > { %2375 = vmatpush1.bf16.msra.mxu0 %v7027_v11  ;;  %v7157_v11 = vld [vmem:[#allocation5 + $0x724] ss:$16 sps:$4 sm:$0xff]  }
  0xe7   : > { %2376 = vmatprep.subr.bf16.mxu0 %v7032_v28  ;;  %2414 = vmatpush1.bf16.msra.mxu1 %v7076_v53  ;;  %v7155_v28 = vld [vmem:[#allocation5 + $0x720] ss:$16 sps:$4 sm:$0xff]  }
  0xe8   : > { %2415 = vmatprep.subr.bf16.mxu1 %v7084_v45 }
  0xea   : > { %2377 = vmatpush1.bf16.msra.mxu0 %v7030_v29  ;;  %v7163_v29 = vld [vmem:[#allocation5 + $0x704] ss:$16 sps:$4 sm:$0xff]  }
  0xeb   : > { %2378 = vmatprep.subr.bf16.mxu0 %v7035_v31  ;;  %2416 = vmatpush1.bf16.msra.mxu1 %v7082_v43  ;;  %v7161_v31 = vld [vmem:[#allocation5 + $0x700] ss:$16 sps:$4 sm:$0xff]  }
  0xec   : > { %2417 = vmatprep.subr.bf16.mxu1 %v7090_v62 }
  0xee   : > { %2379 = vmatpush1.bf16.msra.mxu0 %v7033_v57  ;;  %v7169_v57 = vld [vmem:[#allocation5 + $0x6ec] ss:$16 sps:$4 sm:$0xff]  }
  0xef   : > { %2380 = vmatprep.subr.bf16.mxu0 %v7038_v32  ;;  %2418 = vmatpush1.bf16.msra.mxu1 %v7088_v63 }
  0xf0   : > { %2419 = vmatprep.subr.bf16.mxu1 %v7096_v4 }
  0xf2   : > { %2381 = vmatpush1.bf16.msra.mxu0 %v7036_v35  ;;  %v7791_v35 = vld [vmem:[%s8108_s30] sm:$0xff] }
  0xf3   : > { %2382 = vmatprep.subr.bf16.mxu0 %v7041_v6  ;;  %2420 = vmatpush1.bf16.msra.mxu1 %v7094_v5  ;;  %v1216_v6 = vcombine.high %v7791_v35, %v7791_v35 }
  0xf4   : > { %2421 = vmatprep.subr.bf16.mxu1 %v7102_v8 }
  0xf6   : > { %2383 = vmatpush1.bf16.msra.mxu0 %v7039_v36  ;;  %v1385_v36 = vld [vmem:[#allocation2 + $0x20] sm:$0xff] }
  0xf7   : > { %2384 = vmatprep.subr.bf16.mxu0 %v7044_v37  ;;  %2422 = vmatpush1.bf16.msra.mxu1 %v7100_v9  ;;  %v1396_v42 = vrot.slane %v1385_v36, %v8114_v46  ;;  %v1416_v50 = vrot.slane %v1385_v36, %v8116_v48  ;;  %v1508_v4 = vrot.slane %v1385_v36, %v8122_v52 }
  0xf8   : > { %2423 = vmatprep.subr.bf16.mxu1 %v7108_v58 }
  0xfa   : > { %2385 = vmatpush1.bf16.msra.mxu0 %v7042_v19 }
  0xfb   : > { %2386 = vmatprep.subr.bf16.mxu0 %v7047_v38  ;;  %2424 = vmatpush1.bf16.msra.mxu1 %v7106_v24 }
  0xfc   : > { %2425 = vmatprep.subr.bf16.mxu1 %v7114_v15 }
  0xfe   : > { %2387 = vmatpush2.bf16.msra.mxu0 %v7045_v39  ;;  %v1386_v39 = vld [vmem:[#allocation2 + $0x28] sm:$0xff] }
  0xff   : > { %2388 = vmatprep.subr.bf16.mxu0 %v7051_v40  ;;  %2426 = vmatpush1.bf16.msra.mxu1 %v7112_v16  ;;  %v1456_v8 = vrot.slane %v1386_v39, %v8118_v49  ;;  %v1476_v9 = vrot.slane %v1386_v39, %v8120_v51  ;;  %v1512_v24 = vrot.slane %v1386_v39, %v8122_v52 }
 0x100   : > { %2427 = vmatprep.subr.bf16.mxu1 %v7120_v17 }
 0x102   : > { %2389 = vmatpush2.bf16.msra.mxu0 %v7049_v41 }
 0x103   : > { %2390 = vmatprep.subr.bf16.mxu0 %v7054_v26  ;;  %2428 = vmatpush2.bf16.msra.mxu1 %v7118_v3 }
 0x104   : > { %2429 = vmatprep.subr.bf16.mxu1 %v7127_v34 }
 0x106   : > { %2391 = vmatpush2.bf16.msra.mxu0 %v7052_v47 }
 0x107   : > { %2392 = vmatprep.subr.bf16.mxu0 %v7057_v30  ;;  %2430 = vmatpush2.bf16.msra.mxu1 %v7125_v18  ;;  %v1536_v18 = vrot.slane %v1385_v36, %v8125_v56 }
 0x108   : > { %2431 = vmatprep.subr.bf16.mxu1 %v7133_v2 }
 0x10a   : > { %2393 = vmatpush2.bf16.msra.mxu0 %v7055_v54  ;;  %v1400_v54 = vrot.slane %v1386_v39, %v8114_v46 }
 0x10b   : > { %2394 = vmatprep.subr.bf16.mxu0 %v7060_v55  ;;  %2432 = vmatpush2.bf16.msra.mxu1 %v7131_v20 }
 0x10c   : > { %2433 = vmatprep.subr.bf16.mxu1 %v7139_v21 }
 0x10e   : > { %2395 = vmatpush2.bf16.msra.mxu0 %v7058_v12  ;;  %v1420_v12 = vrot.slane %v1386_v39, %v8116_v48 }
 0x10f   : > { %2396 = vmatprep.subr.bf16.mxu0 %v7063_v61  ;;  %2434 = vmatpush2.bf16.msra.mxu1 %v7137_v22 }
 0x110   : > { %2435 = vmatprep.subr.bf16.mxu1 %v7145_v23 }
 0x112   : > { %2397 = vmatpush2.bf16.msra.mxu0 %v7061_v0  ;;  %v1452_v0 = vrot.slane %v1385_v36, %v8118_v49 }
 0x113   : > { %2398 = vmatprep.subr.bf16.mxu0 %v7066_v1  ;;  %2436 = vmatpush2.bf16.msra.mxu1 %v7143_v25  ;;  %v1472_v1 = vrot.slane %v1385_v36, %v8120_v51 }
 0x114   : > { %2437 = vmatprep.subr.bf16.mxu1 %v7151_v7  ;;  %v1540_v7 = vrot.slane %v1386_v39, %v8125_v56 }
 0x116   : > { %2399 = vmatpush2.bf16.msra.mxu0 %v7064_v14 }
 0x117   : > { %2400 = vmatprep.subr.bf16.mxu0 %v7069_v33  ;;  %2438 = vmatpush2.bf16.msra.mxu1 %v7149_v27 }
 0x118   : > { %2439 = vmatprep.subr.bf16.mxu1 %v7157_v11  ;;  %v1560_v11 = vrot.slane %v1385_v36, %v8131_v59 }
 0x11a   : > { %2401 = vmatpush2.bf16.msra.mxu0 %v7067_v10 }
 0x11b   : > { %2452 = vmatprep.subr.bf16.mxu0 %v7075_v13  ;;  %2440 = vmatpush2.bf16.msra.mxu1 %v7155_v28 }
 0x11c   : > { %2441 = vmatprep.subr.bf16.mxu1 %v7163_v29 }
 0x11f   : > { %2442 = vmatpush2.bf16.msra.mxu1 %v7161_v31  ;;  %v1564_v31 = vrot.slane %v1386_v39, %v8131_v59 }
 0x120   : > { %2493 = vmatprep.subr.bf16.mxu1 %v7169_v57 }
 0x15d   : > { %v1254_v32 = vpop.f32.mrf.mxu0 }
 0x15e   : > { %v1255_v37 = vadd.f32 %v7791_v35, %v1254_v32  ;;  %v1580_v35 = vrot.slane %v1385_v36, %v8133_v60  ;;  %v7085_v36 = vld [vmem:[#allocation5 + $0x4a8] ss:$16 sps:$4 sm:$0xff]  }
 0x15f   : > { %v1256_v19 = vpop.f32.mrf.mxu0 }
 0x160   : > { %v1257_v38 = vadd.f32 %v1256_v19, %v1216_v6  ;;  %v1584_v6 = vrot.slane %v1386_v39, %v8133_v60  ;;  %v7093_v39 = vld [vmem:[#allocation5 + $0x48c] ss:$16 sps:$4 sm:$0xff]  }
 0x161   : > { %v1258_v40 = vpop.f32.mrf.mxu0 }
 0x162   : > { %v1295_v41 = vpop.f32.mrf.mxu1 }
 0x163   : > { %v8245_v26 = vadd.f32 %v1295_v41, %v1255_v37  ;;  %v1259_v44 = vpop.f32.mrf.mxu0 }
 0x164   : > { %v1297_v47 = vpop.f32.mrf.mxu1  ;;  %v7081_v44 = vld [vmem:[#allocation5 + $0x4cc] ss:$16 sps:$4 sm:$0xff]  }
 0x165   : > { %v1389_v30 = vmax.f32 %v8245_v26, 0.0  ;;  %v8250_v53 = vadd.f32 %v1297_v47, %v1257_v38 }
 0x166   : > { %v1299_v55 = vpop.f32.mrf.mxu1 }
 0x167   : > { %v1409_v45 = vmul.f32 %v1396_v42, %v1389_v30  ;;  %v1390_v43 = vmax.f32 %v8250_v53, 0.0  ;;  %v7073_v42 = vld [vmem:[#allocation5 + $0x4e8] ss:$16 sps:$4 sm:$0xff]  }
 0x168   : > { %v1300_v61 = vpop.f32.mrf.mxu1  ;;  %v7091_v55 = vld [vmem:[#allocation5 + $0x488] ss:$16 sps:$4 sm:$0xff]  }
 0x169   : > { %v1429_v62 = vadd.f32 %v1416_v50, %v1409_v45  ;;  %v1410_v63 = vmul.f32 %v1400_v54, %v1390_v43  ;;  %v7079_v50 = vld [vmem:[#allocation5 + $0x4c8] ss:$16 sps:$4 sm:$0xff]   ;;  %v7087_v54 = vld [vmem:[#allocation5 + $0x4ac] ss:$16 sps:$4 sm:$0xff]  }
 0x16a   : > { %v7099_v45 = vld [vmem:[#allocation5 + $0x46c] ss:$16 sps:$4 sm:$0xff]   ;;  %v7097_v43 = vld [vmem:[#allocation5 + $0x468] ss:$16 sps:$4 sm:$0xff]  }
 0x16b   : > { %v1437_v5 = vrot.slane %v1429_v62, 7  ;;  %v1493_v14 = vrot.slane %v1429_v62, 1  ;;  %v1430_v33 = vadd.f32 %v1420_v12, %v1410_v63  ;;  %v1485_v16 = vmul.f32 %v1472_v1, %v1429_v62  ;;  %v7105_v12 = vld [vmem:[#allocation5 + $0x44c] ss:$16 sps:$4 sm:$0xff]   ;;  %v7103_v61 = vld [vmem:[#allocation5 + $0x448] ss:$16 sps:$4 sm:$0xff]  }
 0x16c   : > { %v7111_v62 = vld [vmem:[#allocation5 + $0x42c] ss:$16 sps:$4 sm:$0xff]   ;;  %v7109_v63 = vld [vmem:[#allocation5 + $0x428] ss:$16 sps:$4 sm:$0xff]  }
 0x16d   : > { %v1445_v10 = vsel %vm286_vm0, 0.0, %v1437_v5  ;;  %v1501_v13 = vsel %vm345_vm1, %v1493_v14, 0.0  ;;  %v1438_v58 = vrot.slane %v1430_v33, 7  ;;  %v1494_v3 = vrot.slane %v1430_v33, 1  ;;  %v7115_v1 = vld [vmem:[#allocation5 + $0x408] ss:$16 sps:$4 sm:$0xff]  }
 0x16e   : > { %v1465_v15 = vmul.f32 %v1452_v0, %v1445_v10  ;;  %v1521_v17 = vmul.f32 %v1508_v4, %v1501_v13  ;;  %v1486_v21 = vmul.f32 %v1476_v9, %v1430_v33  ;;  %v7117_v0 = vld [vmem:[#allocation5 + $0x40c] ss:$16 sps:$4 sm:$0xff]   ;;  %v7121_v5 = vld [vmem:[#allocation5 + $0x5e8] ss:$16 sps:$4 sm:$0xff]  }
 0x16f   : > { %v1446_v34 = vsel %vm286_vm0, 0.0, %v1438_v58  ;;  %v1502_v22 = vsel %vm345_vm1, %v1494_v3, 0.0  ;;  %v7123_v4 = vld [vmem:[#allocation5 + $0x5ec] ss:$16 sps:$4 sm:$0xff]   ;;  %v8275_v58 = vld [vmem:[#allocation2 + $0x30] sm:$0xff] }
 0x170   : > { %v1489_v2 = vadd.f32 %v1485_v16, %v1465_v15  ;;  %v1466_v20 = vmul.f32 %v1456_v8, %v1446_v34  ;;  %v1522_v27 = vmul.f32 %v1512_v24, %v1502_v22  ;;  %v7792_v33 = vld [vmem:[%s8108_s30 + $0x8] sm:$0xff] }
 0x171   : > { %v1217_v8 = vcombine.high %v7792_v33, %v7792_v33  ;;  %v7130_v9 = vld [vmem:[#allocation5 + $0x5cc] ss:$16 sps:$4 sm:$0xff]   ;;  %v7128_v15 = vld [vmem:[#allocation5 + $0x5c8] ss:$16 sps:$4 sm:$0xff]  }
 0x172   : > { %v1525_v23 = vadd.f32 %v1521_v17, %v1489_v2  ;;  %v1490_v25 = vadd.f32 %v1486_v21, %v1466_v20  ;;  %v8277_v3 = vld [vmem:[#allocation2 + $0x38] sm:$0xff]  ;;  %v1404_v2 = vrot.slane %v8275_v58, %v8114_v46 }
 0x173   : > { %v7136_v34 = vld [vmem:[#allocation5 + $0x5ac] ss:$16 sps:$4 sm:$0xff]  }
 0x174   : > { %v1526_v28 = vadd.f32 %v1522_v27, %v1490_v25  ;;  %vm1529_vm6 = vcmp.ge.f32.partialorder %v1525_v23, 0.0  ;;  %v1549_v29 = vmul.f32 %v1536_v18, %v1525_v23  ;;  %v1408_v27 = vrot.slane %v8277_v3, %v8114_v46 }
 0x176   : > { %vm1530_vm7 = vcmp.ge.f32.partialorder %v1526_v28, 0.0  ;;  %v1550_v57 = vmul.f32 %v1540_v7, %v1526_v28  ;;  %v1553_v32 = vsel %vm1529_vm6, %v1525_v23, %v1549_v29  ;;  %v1424_v23 = vrot.slane %v8275_v58, %v8116_v48  ;;  %v7134_v7 = vld [vmem:[#allocation5 + $0x5a8] ss:$16 sps:$4 sm:$0xff]  }
 0x177   : > { %v1573_v37 = vmul.f32 %v1560_v11, %v1553_v32 }
 0x178   : > { %v1554_v19 = vsel %vm1530_vm7, %v1526_v28, %v1550_v57  ;;  %v7142_v28 = vld [vmem:[#allocation5 + $0x58c] ss:$16 sps:$4 sm:$0xff]   ;;  %v1428_v57 = vrot.slane %v8277_v3, %v8116_v48 }
 0x179   : > { %v1574_v38 = vmul.f32 %v1564_v31, %v1554_v19  ;;  %v1593_v40 = vadd.f32 %v1580_v35, %v1573_v37  ;;  %v7140_v37 = vld [vmem:[#allocation5 + $0x588] ss:$16 sps:$4 sm:$0xff]   ;;  %v1460_v19 = vrot.slane %v8275_v58, %v8118_v49 }
 0x17b   : > { %v1594_v41 = vadd.f32 %v1584_v6, %v1574_v38  ;;  %v8271_v30 = vpack.c.bf16 %v1593_v40, %v1593_v40  ;;  %v1480_v38 = vrot.slane %v8275_v58, %v8120_v51  ;;  %v7148_v40 = vld [vmem:[#allocation5 + $0x56c] ss:$16 sps:$4 sm:$0xff]  }
 0x17d   : > { %v1727_v47 = vpack.c.bf16 %v1594_v41, %v1594_v41 }
 0x17f   : > { %2402 = vmatprep.mubr.bf16.mxu0 %v1727_v47 }
 0x180   : > { %2403 = vmatmul.mubr.bf16.vlgmr.msra.gmra.mxu0 %v8271_v30 }
 0x181   : > { %2453 = vmatpush1.bf16.msra.mxu0 %v7073_v42  ;;  %2484 = vmatprep.mubr.bf16.mxu0 %v1727_v47  ;;  %v1484_v47 = vrot.slane %v8277_v3, %v8120_v51 }
 0x182   : > { %2454 = vmatprep.subr.bf16.mxu0 %v7081_v44 }
 0x185   : > { %2455 = vmatpush1.bf16.msra.mxu0 %v7079_v50  ;;  %v1516_v50 = vrot.slane %v8275_v58, %v8122_v52 }
 0x186   : > { %2456 = vmatprep.subr.bf16.mxu0 %v7087_v54  ;;  %v1464_v54 = vrot.slane %v8277_v3, %v8118_v49 }
 0x189   : > { %2457 = vmatpush1.bf16.msra.mxu0 %v7085_v36 }
 0x18a   : > { %2458 = vmatprep.subr.bf16.mxu0 %v7093_v39 }
 0x18d   : > { %2459 = vmatpush1.bf16.msra.mxu0 %v7091_v55 }
 0x18e   : > { %2460 = vmatprep.subr.bf16.mxu0 %v7099_v45  ;;  %v7146_v45 = vld [vmem:[#allocation5 + $0x568] ss:$16 sps:$4 sm:$0xff]  }
 0x191   : > { %2461 = vmatpush1.bf16.msra.mxu0 %v7097_v43 }
 0x192   : > { %2462 = vmatprep.subr.bf16.mxu0 %v7105_v12 }
 0x195   : > { %2463 = vmatpush1.bf16.msra.mxu0 %v7103_v61 }
 0x196   : > { %2464 = vmatprep.subr.bf16.mxu0 %v7111_v62  ;;  %v7154_v62 = vld [vmem:[#allocation5 + $0x54c] ss:$16 sps:$4 sm:$0xff]  }
 0x199   : > { %2465 = vmatpush1.bf16.msra.mxu0 %v7109_v63  ;;  %v1520_v63 = vrot.slane %v8277_v3, %v8122_v52 }
 0x19a   : > { %2466 = vmatprep.subr.bf16.mxu0 %v7117_v0 }
 0x19d   : > { %2467 = vmatpush1.bf16.msra.mxu0 %v7115_v1  ;;  %v1336_v14 = vpop.f32.mrf.mxu0 }
 0x19e   : > { %2468 = vmatprep.subr.bf16.mxu0 %v7123_v4  ;;  %v1337_v10 = vadd.f32 %v7792_v33, %v1336_v14  ;;  %v1544_v4 = vrot.slane %v8275_v58, %v8125_v56 }
 0x19f   : > { %v1338_v13 = vpop.f32.mrf.mxu0 }
 0x1a0   : > { %v1339_v24 = vadd.f32 %v1338_v13, %v1217_v8 }
 0x1a1   : > { %2469 = vmatpush2.bf16.msra.mxu0 %v7121_v5  ;;  %v1340_v16 = vpop.f32.mrf.mxu0 }
 0x1a2   : > { %v1377_v17 = vpop.f32.mrf.mxu1  ;;  %2470 = vmatprep.subr.bf16.mxu0 %v7130_v9  ;;  %v7152_v9 = vld [vmem:[#allocation5 + $0x548] ss:$16 sps:$4 sm:$0xff]   ;;  %v1548_v16 = vrot.slane %v8277_v3, %v8125_v56 }
 0x1a3   : > { %v8279_v18 = vadd.f32 %v1377_v17, %v1337_v10  ;;  %v1341_v20 = vpop.f32.mrf.mxu0  ;;  %v1568_v17 = vrot.slane %v8275_v58, %v8131_v59 }
 0x1a4   : > { %v1379_v21 = vpop.f32.mrf.mxu1  ;;  %v7158_v20 = vld [vmem:[#allocation5 + $0x528] ss:$16 sps:$4 sm:$0xff]  }
 0x1a5   : > { %v1391_v22 = vmax.f32 %v8279_v18, 0.0  ;;  %v8286_v25 = vadd.f32 %v1379_v21, %v1339_v24  ;;  %2471 = vmatpush2.bf16.msra.mxu0 %v7128_v15  ;;  %v7160_v24 = vld [vmem:[#allocation5 + $0x52c] ss:$16 sps:$4 sm:$0xff]   ;;  %v1572_v21 = vrot.slane %v8277_v3, %v8131_v59 }
 0x1a6   : > { %v1381_v11 = vpop.f32.mrf.mxu1  ;;  %2472 = vmatprep.subr.bf16.mxu0 %v7136_v34 }
 0x1a7   : > { %v1411_v29 = vmul.f32 %v1404_v2, %v1391_v22  ;;  %v1392_v31 = vmax.f32 %v8286_v25, 0.0  ;;  %v7166_v22 = vld [vmem:[#allocation5 + $0x50c] ss:$16 sps:$4 sm:$0xff]   ;;  %v1592_v11 = vrot.slane %v8277_v3, %v8133_v60 }
 0x1a8   : > { %v1382_v32 = vpop.f32.mrf.mxu1  ;;  %v7175_v3 = vld [vmem:[#allocation5 + $0x6ac] ss:$16 sps:$4 sm:$0xff]  }
 0x1a9   : > { %v1431_v35 = vadd.f32 %v1424_v23, %v1411_v29  ;;  %v1412_v6 = vmul.f32 %v1408_v27, %v1392_v31  ;;  %2473 = vmatpush2.bf16.msra.mxu0 %v7134_v7  ;;  %v1588_v7 = vrot.slane %v8275_v58, %v8133_v60  ;;  %v7164_v31 = vld [vmem:[#allocation5 + $0x508] ss:$16 sps:$4 sm:$0xff]  }
 0x1aa   : > { %2474 = vmatprep.subr.bf16.mxu0 %v7142_v28  ;;  %v7170_v58 = vld [vmem:[#allocation5 + $0x6c8] ss:$16 sps:$4 sm:$0xff]  }
 0x1ab   : > { %v1439_v41 = vrot.slane %v1431_v35, 7  ;;  %v1495_v42 = vrot.slane %v1431_v35, 1  ;;  %v1432_v44 = vadd.f32 %v1428_v57, %v1412_v6  ;;  %v1487_v12 = vmul.f32 %v1480_v38, %v1431_v35  ;;  %v7172_v38 = vld [vmem:[#allocation5 + $0x6cc] ss:$16 sps:$4 sm:$0xff]  }
 0x1ad   : > { %v1447_v36 = vsel %vm286_vm0, 0.0, %v1439_v41  ;;  %v1503_v39 = vsel %vm345_vm1, %v1495_v42, 0.0  ;;  %v1440_v55 = vrot.slane %v1432_v44, 7  ;;  %2475 = vmatpush2.bf16.msra.mxu0 %v7140_v37  ;;  %v1496_v61 = vrot.slane %v1432_v44, 1  ;;  %v7167_v37 = vld [vmem:[#allocation5 + $0x6e8] ss:$16 sps:$4 sm:$0xff]  }
 0x1ae   : > { %v1467_v43 = vmul.f32 %v1460_v19, %v1447_v36  ;;  %2476 = vmatprep.subr.bf16.mxu0 %v7148_v40  ;;  %v1488_v1 = vmul.f32 %v1484_v47, %v1432_v44  ;;  %v1523_v14 = vmul.f32 %v1516_v50, %v1503_v39  ;;  %v7173_v40 = vld [vmem:[#allocation5 + $0x6a8] ss:$16 sps:$4 sm:$0xff]   ;;  %v7178_v41 = vld [vmem:[#allocation5 + $0x68c] ss:$16 sps:$4 sm:$0xff]   ;;  %v7215_v42 = vld [vmem:[#allocation5 + $0x8e0] ss:$16 sps:$4 sm:$0xff]  }
 0x1af   : > { %v1448_v0 = vsel %vm286_vm0, 0.0, %v1440_v55  ;;  %v1504_v8 = vsel %vm345_vm1, %v1496_v61, 0.0  ;;  %v7217_v44 = vld [vmem:[#allocation5 + $0x8e4] ss:$16 sps:$4 sm:$0xff]   ;;  %v7176_v50 = vld [vmem:[#allocation5 + $0x688] ss:$16 sps:$4 sm:$0xff]  }
 0x1b0   : > { %v1491_v5 = vadd.f32 %v1487_v12, %v1467_v43  ;;  %v1468_v33 = vmul.f32 %v1464_v54, %v1448_v0  ;;  %v1524_v15 = vmul.f32 %v1520_v63, %v1504_v8  ;;  %v7220_v47 = vld [vmem:[#allocation5 + $0x8c4] ss:$16 sps:$4 sm:$0xff]   ;;  %v7218_v54 = vld [vmem:[#allocation5 + $0x8c0] ss:$16 sps:$4 sm:$0xff]   ;;  %v7179_v39 = vld [vmem:[#allocation5 + $0x668] ss:$16 sps:$4 sm:$0xff]  }
 0x1b1   : > { %2477 = vmatpush2.bf16.msra.mxu0 %v7146_v45  ;;  %v7223_v36 = vld [vmem:[#allocation5 + $0x8a4] ss:$16 sps:$4 sm:$0xff]   ;;  %v7221_v55 = vld [vmem:[#allocation5 + $0x8a0] ss:$16 sps:$4 sm:$0xff]   ;;  %v7184_v45 = vld [vmem:[#allocation5 + $0x64c] ss:$16 sps:$4 sm:$0xff]  }
 0x1b2   : > { %v1527_v10 = vadd.f32 %v1523_v14, %v1491_v5  ;;  %v1492_v13 = vadd.f32 %v1488_v1, %v1468_v33  ;;  %2478 = vmatprep.subr.bf16.mxu0 %v7154_v62  ;;  %v7226_v43 = vld [vmem:[#allocation5 + $0x884] ss:$16 sps:$4 sm:$0xff]   ;;  %v7182_v12 = vld [vmem:[#allocation5 + $0x648] ss:$16 sps:$4 sm:$0xff]   ;;  %v7224_v61 = vld [vmem:[#allocation5 + $0x880] ss:$16 sps:$4 sm:$0xff]  }
 0x1b3   : > { %v7187_v62 = vld [vmem:[#allocation5 + $0x62c] ss:$16 sps:$4 sm:$0xff]   ;;  %v7229_v63 = vld [vmem:[#allocation5 + $0x864] ss:$16 sps:$4 sm:$0xff]   ;;  %v7185_v0 = vld [vmem:[#allocation5 + $0x628] ss:$16 sps:$4 sm:$0xff]  }
 0x1b4   : > { %v1528_v34 = vadd.f32 %v1524_v15, %v1492_v13  ;;  %vm1531_vm8 = vcmp.ge.f32.partialorder %v1527_v10, 0.0  ;;  %v1551_v2 = vmul.f32 %v1544_v4, %v1527_v10  ;;  %v7227_v1 = vld [vmem:[#allocation5 + $0x860] ss:$16 sps:$4 sm:$0xff]   ;;  %v7190_v4 = vld [vmem:[#allocation5 + $0x60c] ss:$16 sps:$4 sm:$0xff]  }
 0x1b5   : > { %2479 = vmatpush2.bf16.msra.mxu0 %v7152_v9  ;;  %v7232_v5 = vld [vmem:[#allocation5 + $0x844] ss:$16 sps:$4 sm:$0xff]   ;;  %v7188_v14 = vld [vmem:[#allocation5 + $0x608] ss:$16 sps:$4 sm:$0xff]   ;;  %v7230_v33 = vld [vmem:[#allocation5 + $0x840] ss:$16 sps:$4 sm:$0xff]  }
 0x1b6   : > { %2480 = vmatprep.subr.bf16.mxu0 %v7160_v24  ;;  %vm1532_vm9 = vcmp.ge.f32.partialorder %v1528_v34, 0.0  ;;  %v1552_v23 = vmul.f32 %v1548_v16, %v1528_v34  ;;  %v1555_v27 = vsel %vm1531_vm8, %v1527_v10, %v1551_v2  ;;  %v7193_v8 = vld [vmem:[#allocation5 + $0x7ec] ss:$16 sps:$4 sm:$0xff]   ;;  %v7235_v9 = vld [vmem:[#allocation5 + $0x824] ss:$16 sps:$4 sm:$0xff]  }
 0x1b7   : > { %v1575_v28 = vmul.f32 %v1568_v17, %v1555_v27  ;;  %v7191_v10 = vld [vmem:[#allocation5 + $0x7e8] ss:$16 sps:$4 sm:$0xff]   ;;  %v7233_v13 = vld [vmem:[#allocation5 + $0x820] ss:$16 sps:$4 sm:$0xff]   ;;  %v7196_v24 = vld [vmem:[#allocation5 + $0x7cc] ss:$16 sps:$4 sm:$0xff]  }
 0x1b8   : > { %v1556_v29 = vsel %vm1532_vm9, %v1528_v34, %v1552_v23  ;;  %v7238_v15 = vld [vmem:[#allocation5 + $0x804] ss:$16 sps:$4 sm:$0xff]   ;;  %v7194_v16 = vld [vmem:[#allocation5 + $0x7c8] ss:$16 sps:$4 sm:$0xff]   ;;  %v7236_v17 = vld [vmem:[#allocation5 + $0x800] ss:$16 sps:$4 sm:$0xff]  }
 0x1b9   : > { %2481 = vmatpush2.bf16.msra.mxu0 %v7158_v20  ;;  %v1576_v57 = vmul.f32 %v1572_v21, %v1556_v29  ;;  %v1595_v32 = vadd.f32 %v1588_v7, %v1575_v28  ;;  %v7199_v34 = vld [vmem:[#allocation5 + $0x7ac] ss:$16 sps:$4 sm:$0xff]   ;;  %v7241_v2 = vld [vmem:[#allocation5 + $0x9e4] ss:$16 sps:$4 sm:$0xff]   ;;  %v7197_v20 = vld [vmem:[#allocation5 + $0x7a8] ss:$16 sps:$4 sm:$0xff]  }
 0x1ba   : > { %2482 = vmatprep.subr.bf16.mxu0 %v7166_v22  ;;  %v7239_v21 = vld [vmem:[#allocation5 + $0x9e0] ss:$16 sps:$4 sm:$0xff]   ;;  %v7202_v22 = vld [vmem:[#allocation5 + $0x78c] ss:$16 sps:$4 sm:$0xff]   ;;  %v7200_v23 = vld [vmem:[#allocation5 + $0x788] ss:$16 sps:$4 sm:$0xff]  }
 0x1bb   : > { %v1596_v35 = vadd.f32 %v1592_v11, %v1576_v57  ;;  %v8321_v19 = vpack.c.bf16 %v1595_v32, %v1595_v32  ;;  %v7205_v27 = vld [vmem:[#allocation5 + $0x76c] ss:$16 sps:$4 sm:$0xff]   ;;  %v7203_v7 = vld [vmem:[#allocation5 + $0x768] ss:$16 sps:$4 sm:$0xff]  }
 0x1bc   : > { %v7208_v11 = vld [vmem:[#allocation5 + $0x74c] ss:$16 sps:$4 sm:$0xff]   ;;  %v7206_v28 = vld [vmem:[#allocation5 + $0x748] ss:$16 sps:$4 sm:$0xff]  }
 0x1bd   : > { %2483 = vmatpush2.bf16.msra.mxu0 %v7164_v31  ;;  %v1729_v6 = vpack.c.bf16 %v1596_v35, %v1596_v35  ;;  %v7211_v29 = vld [vmem:[#allocation5 + $0x72c] ss:$16 sps:$4 sm:$0xff]   ;;  %v7209_v31 = vld [vmem:[#allocation5 + $0x728] ss:$16 sps:$4 sm:$0xff]   ;;  %v7244_v35 = vld [vmem:[#allocation5 + $0x9c4] ss:$16 sps:$4 sm:$0xff]  }
 0x1be   : > { %3520 = vmatprep.subr.bf16.mxu0 %v7217_v44  ;;  %v7214_v57 = vld [vmem:[#allocation5 + $0x70c] ss:$16 sps:$4 sm:$0xff]   ;;  %v7212_v32 = vld [vmem:[#allocation5 + $0x708] ss:$16 sps:$4 sm:$0xff]   ;;  %v7256_v44 = vld [vmem:[#allocation5 + $0x944] ss:$16 sps:$4 sm:$0xff]  }
 0x1bf   : > { %2443 = vmatprep.mubr.bf16.mxu1 %v1729_v6 }
 0x1c0   : > { %2485 = vmatmul.mubr.bf16.vlgmr.msra.gmra.mxu0 %v8271_v30  ;;  %2444 = vmatmul.mubr.bf16.vlgmr.msra.gmra.mxu1 %v8321_v19  ;;  %v7181_v30 = vld [vmem:[#allocation5 + $0x66c] ss:$16 sps:$4 sm:$0xff]  }
 0x1c1   : > { %2494 = vmatpush1.bf16.msra.mxu1 %v7167_v37  ;;  %2525 = vmatprep.mubr.bf16.mxu1 %v1729_v6  ;;  %v7242_v6 = vld [vmem:[#allocation5 + $0x9c0] ss:$16 sps:$4 sm:$0xff]   ;;  %v7247_v37 = vld [vmem:[#allocation5 + $0x9a4] ss:$16 sps:$4 sm:$0xff]  }
 0x1c2   : > { %2495 = vmatprep.subr.bf16.mxu1 %v7172_v38  ;;  %3521 = vmatpush1.bf16.msra.mxu0 %v7215_v42  ;;  %v7245_v38 = vld [vmem:[#allocation5 + $0x9a0] ss:$16 sps:$4 sm:$0xff]  }
 0x1c3   : > { %3522 = vmatprep.subr.bf16.mxu0 %v7220_v47  ;;  %v7254_v42 = vld [vmem:[#allocation5 + $0x940] ss:$16 sps:$4 sm:$0xff]   ;;  %v7259_v47 = vld [vmem:[#allocation5 + $0x924] ss:$16 sps:$4 sm:$0xff]  }
 0x1c5   : > { %2496 = vmatpush1.bf16.msra.mxu1 %v7170_v58  ;;  %v7250_v58 = vld [vmem:[#allocation5 + $0x984] ss:$16 sps:$4 sm:$0xff]  }
 0x1c6   : > { %2497 = vmatprep.subr.bf16.mxu1 %v7175_v3  ;;  %3523 = vmatpush1.bf16.msra.mxu0 %v7218_v54  ;;  %v7248_v3 = vld [vmem:[#allocation5 + $0x980] ss:$16 sps:$4 sm:$0xff]  }
 0x1c7   : > { %3524 = vmatprep.subr.bf16.mxu0 %v7223_v36  ;;  %v7257_v54 = vld [vmem:[#allocation5 + $0x920] ss:$16 sps:$4 sm:$0xff]  }
 0x1c8   : > { %v7260_v36 = vld [vmem:[#allocation5 + $0x900] ss:$16 sps:$4 sm:$0xff]  }
 0x1c9   : > { %2498 = vmatpush1.bf16.msra.mxu1 %v7173_v40  ;;  %v7253_v40 = vld [vmem:[#allocation5 + $0x964] ss:$16 sps:$4 sm:$0xff]  }
 0x1ca   : > { %2499 = vmatprep.subr.bf16.mxu1 %v7178_v41  ;;  %3525 = vmatpush1.bf16.msra.mxu0 %v7221_v55  ;;  %v7251_v41 = vld [vmem:[#allocation5 + $0x960] ss:$16 sps:$4 sm:$0xff]  }
 0x1cb   : > { %3526 = vmatprep.subr.bf16.mxu0 %v7226_v43  ;;  %v7269_v55 = vld [vmem:[#allocation5 + $0xac0] ss:$16 sps:$4 sm:$0xff]  }
 0x1cc   : > { %v7275_v43 = vld [vmem:[#allocation5 + $0xaa0] ss:$16 sps:$4 sm:$0xff]  }
 0x1cd   : > { %2500 = vmatpush1.bf16.msra.mxu1 %v7176_v50  ;;  %v7265_v50 = vld [vmem:[#allocation5 + $0xae4] ss:$16 sps:$4 sm:$0xff]  }
 0x1ce   : > { %2501 = vmatprep.subr.bf16.mxu1 %v7181_v30  ;;  %3527 = vmatpush1.bf16.msra.mxu0 %v7224_v61  ;;  %v7262_v30 = vld [vmem:[#allocation5 + $0x904] ss:$16 sps:$4 sm:$0xff]   ;;  %v7281_v61 = vld [vmem:[#allocation5 + $0xa80] ss:$16 sps:$4 sm:$0xff]  }
 0x1cf   : > { %3528 = vmatprep.subr.bf16.mxu0 %v7229_v63  ;;  %v7287_v63 = vld [vmem:[#allocation5 + $0xa60] ss:$16 sps:$4 sm:$0xff]  }
 0x1d1   : > { %2502 = vmatpush1.bf16.msra.mxu1 %v7179_v39  ;;  %v7268_v39 = vld [vmem:[#allocation5 + $0x8ec] ss:$16 sps:$4 sm:$0xff]  }
 0x1d2   : > { %2503 = vmatprep.subr.bf16.mxu1 %v7184_v45  ;;  %3529 = vmatpush1.bf16.msra.mxu0 %v7227_v1  ;;  %v7271_v45 = vld [vmem:[#allocation5 + $0xac4] ss:$16 sps:$4 sm:$0xff]   ;;  %v7293_v1 = vld [vmem:[#allocation5 + $0xa40] ss:$16 sps:$4 sm:$0xff]  }
 0x1d3   : > { %3530 = vmatprep.subr.bf16.mxu0 %v7232_v5  ;;  %v7299_v5 = vld [vmem:[#allocation5 + $0xa20] ss:$16 sps:$4 sm:$0xff]  }
 0x1d5   : > { %2504 = vmatpush1.bf16.msra.mxu1 %v7182_v12  ;;  %v7277_v12 = vld [vmem:[#allocation5 + $0xaa4] ss:$16 sps:$4 sm:$0xff]  }
 0x1d6   : > { %2505 = vmatprep.subr.bf16.mxu1 %v7187_v62  ;;  %3531 = vmatpush1.bf16.msra.mxu0 %v7230_v33  ;;  %v7283_v62 = vld [vmem:[#allocation5 + $0xa84] ss:$16 sps:$4 sm:$0xff]   ;;  %v7305_v33 = vld [vmem:[#allocation5 + $0xa00] ss:$16 sps:$4 sm:$0xff]  }
 0x1d7   : > { %3532 = vmatprep.subr.bf16.mxu0 %v7235_v9  ;;  %v7311_v9 = vld [vmem:[#allocation5 + $0xbe0] ss:$16 sps:$4 sm:$0xff]  }
 0x1d9   : > { %2506 = vmatpush1.bf16.msra.mxu1 %v7185_v0  ;;  %v7289_v0 = vld [vmem:[#allocation5 + $0xa64] ss:$16 sps:$4 sm:$0xff]  }
 0x1da   : > { %2507 = vmatprep.subr.bf16.mxu1 %v7190_v4  ;;  %3533 = vmatpush1.bf16.msra.mxu0 %v7233_v13  ;;  %v7295_v4 = vld [vmem:[#allocation5 + $0xa44] ss:$16 sps:$4 sm:$0xff]  }
 0x1db   : > { %3534 = vmatprep.subr.bf16.mxu0 %v7238_v15  ;;  %v7317_v15 = vld [vmem:[#allocation5 + $0xbc0] ss:$16 sps:$4 sm:$0xff]  }
 0x1dd   : > { %2508 = vmatpush1.bf16.msra.mxu1 %v7188_v14  ;;  %v7301_v14 = vld [vmem:[#allocation5 + $0xa24] ss:$16 sps:$4 sm:$0xff]  }
 0x1de   : > { %2509 = vmatprep.subr.bf16.mxu1 %v7193_v8  ;;  %3535 = vmatpush1.bf16.msra.mxu0 %v7236_v17  ;;  %v7307_v8 = vld [vmem:[#allocation5 + $0xa04] ss:$16 sps:$4 sm:$0xff]  }
 0x1df   : > { %3536 = vmatprep.subr.bf16.mxu0 %v7241_v2  ;;  %v7323_v2 = vld [vmem:[#allocation5 + $0xba0] ss:$16 sps:$4 sm:$0xff]  }
 0x1e1   : > { %2510 = vmatpush2.bf16.msra.mxu1 %v7191_v10  ;;  %v7313_v10 = vld [vmem:[#allocation5 + $0xbe4] ss:$16 sps:$4 sm:$0xff]  }
 0x1e2   : > { %2511 = vmatprep.subr.bf16.mxu1 %v7196_v24  ;;  %3537 = vmatpush2.bf16.msra.mxu0 %v7239_v21  ;;  %v7319_v24 = vld [vmem:[#allocation5 + $0xbc4] ss:$16 sps:$4 sm:$0xff]  }
 0x1e3   : > { %3538 = vmatprep.subr.bf16.mxu0 %v7244_v35  ;;  %v7331_v21 = vld [vmem:[#allocation5 + $0xb84] ss:$16 sps:$4 sm:$0xff]  }
 0x1e4   : > { %v8326_v35 = vld [vmem:[#allocation2 + $0x40] sm:$0xff] }
 0x1e5   : > { %2512 = vmatpush2.bf16.msra.mxu1 %v7194_v16 }
 0x1e6   : > { %2513 = vmatprep.subr.bf16.mxu1 %v7199_v34  ;;  %3539 = vmatpush2.bf16.msra.mxu0 %v7242_v6  ;;  %v7325_v34 = vld [vmem:[#allocation5 + $0xba4] ss:$16 sps:$4 sm:$0xff]  }
 0x1e7   : > { %3540 = vmatprep.subr.bf16.mxu0 %v7247_v37 }
 0x1e9   : > { %2514 = vmatpush2.bf16.msra.mxu1 %v7197_v20 }
 0x1ea   : > { %2515 = vmatprep.subr.bf16.mxu1 %v7202_v22  ;;  %3541 = vmatpush2.bf16.msra.mxu0 %v7245_v38  ;;  %v7329_v22 = vld [vmem:[#allocation5 + $0xb80] ss:$16 sps:$4 sm:$0xff]  }
 0x1eb   : > { %3542 = vmatprep.subr.bf16.mxu0 %v7250_v58  ;;  %v2536_v58 = vld [vmem:[#allocation2 + $0x48] sm:$0xff] }
 0x1ed   : > { %2516 = vmatpush2.bf16.msra.mxu1 %v7200_v23  ;;  %v7337_v23 = vld [vmem:[#allocation5 + $0xb64] ss:$16 sps:$4 sm:$0xff]  }
 0x1ee   : > { %2517 = vmatprep.subr.bf16.mxu1 %v7205_v27  ;;  %3543 = vmatpush2.bf16.msra.mxu0 %v7248_v3  ;;  %v7335_v27 = vld [vmem:[#allocation5 + $0xb60] ss:$16 sps:$4 sm:$0xff]  }
 0x1ef   : > { %3544 = vmatprep.subr.bf16.mxu0 %v7253_v40 }
 0x1f1   : > { %2518 = vmatpush2.bf16.msra.mxu1 %v7203_v7  ;;  %v7341_v7 = vld [vmem:[#allocation5 + $0xb40] ss:$16 sps:$4 sm:$0xff]  }
 0x1f2   : > { %2519 = vmatprep.subr.bf16.mxu1 %v7208_v11  ;;  %3545 = vmatpush2.bf16.msra.mxu0 %v7251_v41  ;;  %v7343_v11 = vld [vmem:[#allocation5 + $0xb44] ss:$16 sps:$4 sm:$0xff]   ;;  %v2546_v41 = vrot.slane %v8326_v35, %v8114_v46 }
 0x1f3   : > { %3546 = vmatprep.subr.bf16.mxu0 %v7256_v44 }
 0x1f5   : > { %2520 = vmatpush2.bf16.msra.mxu1 %v7206_v28  ;;  %v7347_v28 = vld [vmem:[#allocation5 + $0xb20] ss:$16 sps:$4 sm:$0xff]  }
 0x1f6   : > { %2521 = vmatprep.subr.bf16.mxu1 %v7211_v29  ;;  %3547 = vmatpush2.bf16.msra.mxu0 %v7254_v42  ;;  %v7349_v29 = vld [vmem:[#allocation5 + $0xb24] ss:$16 sps:$4 sm:$0xff]  }
 0x1f7   : > { %3548 = vmatprep.subr.bf16.mxu0 %v7259_v47 }
 0x1f9   : > { %2522 = vmatpush2.bf16.msra.mxu1 %v7209_v31  ;;  %v7353_v31 = vld [vmem:[#allocation5 + $0xb00] ss:$16 sps:$4 sm:$0xff]  }
 0x1fa   : > { %2523 = vmatprep.subr.bf16.mxu1 %v7214_v57  ;;  %3549 = vmatpush2.bf16.msra.mxu0 %v7257_v54  ;;  %v7355_v57 = vld [vmem:[#allocation5 + $0xb04] ss:$16 sps:$4 sm:$0xff]  }
 0x1fb   : > { %3550 = vmatprep.subr.bf16.mxu0 %v7262_v30 }
 0x1fd   : > { %2524 = vmatpush2.bf16.msra.mxu1 %v7212_v32  ;;  %v7361_v32 = vld [vmem:[#allocation5 + $0xaec] ss:$16 sps:$4 sm:$0xff]  }
 0x1fe   : > { %3561 = vmatprep.subr.bf16.mxu1 %v7265_v50  ;;  %3551 = vmatpush2.bf16.msra.mxu0 %v7260_v36  ;;  %v2550_v50 = vrot.slane %v2536_v58, %v8114_v46 }
 0x1ff   : > { %3602 = vmatprep.subr.bf16.mxu0 %v7268_v39  ;;  %v2570_v39 = vrot.slane %v2536_v58, %v8116_v48 }
 0x200   : > { %2526 = vmatmul.mubr.bf16.vlgmr.msra.gmra.mxu1 %v8321_v19  ;;  %v7263_v19 = vld [vmem:[#allocation5 + $0xae0] ss:$16 sps:$4 sm:$0xff]  }
 0x201   : > { %3562 = vmatpush1.bf16.msra.mxu1 %v7263_v19  ;;  %v2566_v19 = vrot.slane %v8326_v35, %v8116_v48 }
 0x202   : > { %3563 = vmatprep.subr.bf16.mxu1 %v7271_v45 }
 0x205   : > { %3564 = vmatpush1.bf16.msra.mxu1 %v7269_v55 }
 0x206   : > { %3565 = vmatprep.subr.bf16.mxu1 %v7277_v12 }
 0x209   : > { %3566 = vmatpush1.bf16.msra.mxu1 %v7275_v43 }
 0x20a   : > { %3567 = vmatprep.subr.bf16.mxu1 %v7283_v62  ;;  %v2622_v62 = vrot.slane %v8326_v35, %v8120_v51 }
 0x20d   : > { %3568 = vmatpush1.bf16.msra.mxu1 %v7281_v61  ;;  %v2602_v61 = vrot.slane %v8326_v35, %v8118_v49 }
 0x20e   : > { %3569 = vmatprep.subr.bf16.mxu1 %v7289_v0 }
 0x211   : > { %3570 = vmatpush1.bf16.msra.mxu1 %v7287_v63 }
 0x212   : > { %3571 = vmatprep.subr.bf16.mxu1 %v7295_v4  ;;  %v2626_v4 = vrot.slane %v2536_v58, %v8120_v51 }
 0x215   : > { %3572 = vmatpush1.bf16.msra.mxu1 %v7293_v1 }
 0x216   : > { %3573 = vmatprep.subr.bf16.mxu1 %v7301_v14  ;;  %v2606_v14 = vrot.slane %v2536_v58, %v8118_v49 }
 0x219   : > { %3574 = vmatpush1.bf16.msra.mxu1 %v7299_v5  ;;  %v2658_v5 = vrot.slane %v8326_v35, %v8122_v52 }
 0x21a   : > { %3575 = vmatprep.subr.bf16.mxu1 %v7307_v8 }
 0x21d   : > { %3576 = vmatpush1.bf16.msra.mxu1 %v7305_v33 }
 0x21e   : > { %3577 = vmatprep.subr.bf16.mxu1 %v7313_v10 }
 0x221   : > { %3578 = vmatpush2.bf16.msra.mxu1 %v7311_v9 }
 0x222   : > { %3579 = vmatprep.subr.bf16.mxu1 %v7319_v24 }
 0x225   : > { %3580 = vmatpush2.bf16.msra.mxu1 %v7317_v15  ;;  %v2662_v15 = vrot.slane %v2536_v58, %v8122_v52 }
 0x226   : > { %3581 = vmatprep.subr.bf16.mxu1 %v7325_v34  ;;  %v2686_v34 = vrot.slane %v8326_v35, %v8125_v56 }
 0x229   : > { %3582 = vmatpush2.bf16.msra.mxu1 %v7323_v2 }
 0x22a   : > { %3583 = vmatprep.subr.bf16.mxu1 %v7331_v21 }
 0x22d   : > { %3584 = vmatpush2.bf16.msra.mxu1 %v7329_v22 }
 0x22e   : > { %3585 = vmatprep.subr.bf16.mxu1 %v7337_v23 }
 0x231   : > { %3586 = vmatpush2.bf16.msra.mxu1 %v7335_v27 }
 0x232   : > { %3587 = vmatprep.subr.bf16.mxu1 %v7343_v11  ;;  %v2690_v11 = vrot.slane %v2536_v58, %v8125_v56 }
 0x235   : > { %3588 = vmatpush2.bf16.msra.mxu1 %v7341_v7 }
 0x236   : > { %3589 = vmatprep.subr.bf16.mxu1 %v7349_v29 }
 0x239   : > { %3590 = vmatpush2.bf16.msra.mxu1 %v7347_v28  ;;  %v2710_v28 = vrot.slane %v8326_v35, %v8131_v59 }
 0x23a   : > { %3591 = vmatprep.subr.bf16.mxu1 %v7355_v57  ;;  %v2714_v57 = vrot.slane %v2536_v58, %v8131_v59 }
 0x23d   : > { %3592 = vmatpush2.bf16.msra.mxu1 %v7353_v31 }
 0x23e   : > { %3643 = vmatprep.subr.bf16.mxu1 %v7361_v32 }
 0x240   : > { %v2404_v13 = vpop.f32.mrf.mxu0 }
 0x241   : > { %v2405_v6 = vadd.f32 %v2404_v13, %v8245_v26 }
 0x242   : > { %v2406_v16 = vpop.f32.mrf.mxu0 }
 0x243   : > { %v2407_v3 = vadd.f32 %v2406_v16, %v8250_v53 }
 0x244   : > { %v2408_v17 = vpop.f32.mrf.mxu0 }
 0x246   : > { %v2409_v20 = vpop.f32.mrf.mxu0 }
 0x280   : > { %v8329_v37 = vpop.f32.mrf.mxu0  ;;  %v2445_v38 = vpop.f32.mrf.mxu1 }
 0x281   : > { %v8332_v40 = vadd.f32 %v2445_v38, %v2405_v6  ;;  %v2730_v38 = vrot.slane %v8326_v35, %v8133_v60  ;;  %v7280_v35 = vld [vmem:[#allocation5 + $0x8ac] ss:$16 sps:$4 sm:$0xff]  }
 0x282   : > { %v8336_v42 = vpop.f32.mrf.mxu0  ;;  %v2447_v44 = vpop.f32.mrf.mxu1 }
 0x283   : > { %v2539_v47 = vmax.f32 %v8332_v40, 0.0  ;;  %v8341_v26 = vadd.f32 %v2447_v44, %v2407_v3  ;;  %v2734_v3 = vrot.slane %v2536_v58, %v8133_v60  ;;  %v7278_v58 = vld [vmem:[#allocation5 + $0x8a8] ss:$16 sps:$4 sm:$0xff]  }
 0x284   : > { %v2490_v54 = vpop.f32.mrf.mxu0  ;;  %v2449_v30 = vpop.f32.mrf.mxu1 }
 0x285   : > { %v2559_v53 = vmul.f32 %v2546_v41, %v2539_v47  ;;  %v2540_v36 = vmax.f32 %v8341_v26, 0.0  ;;  %v7266_v30 = vld [vmem:[#allocation5 + $0x8e8] ss:$16 sps:$4 sm:$0xff]  }
 0x286   : > { %v2491_v55 = vpop.f32.mrf.mxu0  ;;  %v2450_v45 = vpop.f32.mrf.mxu1 }
 0x287   : > { %v2579_v43 = vadd.f32 %v2566_v19, %v2559_v53  ;;  %v2560_v12 = vmul.f32 %v2550_v50, %v2540_v36  ;;  %v7274_v36 = vld [vmem:[#allocation5 + $0x8cc] ss:$16 sps:$4 sm:$0xff]   ;;  %v7284_v45 = vld [vmem:[#allocation5 + $0x888] ss:$16 sps:$4 sm:$0xff]  }
 0x288   : > { %v7286_v55 = vld [vmem:[#allocation5 + $0x88c] ss:$16 sps:$4 sm:$0xff]  }
 0x289   : > { %v2587_v63 = vrot.slane %v2579_v43, 7  ;;  %v2643_v0 = vrot.slane %v2579_v43, 1  ;;  %v2580_v1 = vadd.f32 %v2570_v39, %v2560_v12  ;;  %v2635_v13 = vmul.f32 %v2622_v62, %v2579_v43  ;;  %v7272_v39 = vld [vmem:[#allocation5 + $0x8c8] ss:$16 sps:$4 sm:$0xff]   ;;  %v7292_v43 = vld [vmem:[#allocation5 + $0x86c] ss:$16 sps:$4 sm:$0xff]  }
 0x28a   : > { %v7290_v12 = vld [vmem:[#allocation5 + $0x868] ss:$16 sps:$4 sm:$0xff]  }
 0x28b   : > { %v2595_v33 = vsel %vm286_vm0, 0.0, %v2587_v63  ;;  %v2651_v8 = vsel %vm345_vm1, %v2643_v0, 0.0  ;;  %v2588_v9 = vrot.slane %v2580_v1, 7  ;;  %v2644_v24 = vrot.slane %v2580_v1, 1  ;;  %v7296_v62 = vld [vmem:[#allocation5 + $0x848] ss:$16 sps:$4 sm:$0xff]  }
 0x28c   : > { %v2615_v10 = vmul.f32 %v2602_v61, %v2595_v33  ;;  %v2636_v17 = vmul.f32 %v2626_v4, %v2580_v1  ;;  %v2671_v20 = vmul.f32 %v2658_v5, %v2651_v8  ;;  %v7298_v61 = vld [vmem:[#allocation5 + $0x84c] ss:$16 sps:$4 sm:$0xff]   ;;  %v7302_v0 = vld [vmem:[#allocation5 + $0x828] ss:$16 sps:$4 sm:$0xff]   ;;  %v8371_v8 = vld [vmem:[#allocation2 + $0x50] sm:$0xff] }
 0x28d   : > { %v2596_v16 = vsel %vm286_vm0, 0.0, %v2588_v9  ;;  %v2652_v22 = vsel %vm345_vm1, %v2644_v24, 0.0  ;;  %v7304_v63 = vld [vmem:[#allocation5 + $0x82c] ss:$16 sps:$4 sm:$0xff]   ;;  %v7308_v4 = vld [vmem:[#allocation5 + $0x808] ss:$16 sps:$4 sm:$0xff]   ;;  %v2487_v9 = vadd.f32 %v8329_v37, %v8279_v18  ;;  %v2574_v18 = vrot.slane %v8371_v8, %v8116_v48 }
 0x28e   : > { %v2639_v2 = vadd.f32 %v2635_v13, %v2615_v10  ;;  %v2616_v21 = vmul.f32 %v2606_v14, %v2596_v16  ;;  %v2672_v7 = vmul.f32 %v2662_v15, %v2652_v22  ;;  %v7310_v1 = vld [vmem:[#allocation5 + $0x80c] ss:$16 sps:$4 sm:$0xff]   ;;  %v7314_v14 = vld [vmem:[#allocation5 + $0x9e8] ss:$16 sps:$4 sm:$0xff]   ;;  %v2489_v16 = vadd.f32 %v8336_v42, %v8286_v25 }
 0x28f   : > { %v7316_v5 = vld [vmem:[#allocation5 + $0x9ec] ss:$16 sps:$4 sm:$0xff]   ;;  %v7320_v10 = vld [vmem:[#allocation5 + $0x9c8] ss:$16 sps:$4 sm:$0xff]  }
 0x290   : > { %v2675_v23 = vadd.f32 %v2671_v20, %v2639_v2  ;;  %v2640_v27 = vadd.f32 %v2636_v17, %v2616_v21  ;;  %v7322_v33 = vld [vmem:[#allocation5 + $0x9cc] ss:$16 sps:$4 sm:$0xff]   ;;  %v7326_v22 = vld [vmem:[#allocation5 + $0x9a8] ss:$16 sps:$4 sm:$0xff]  }
 0x291   : > { %v8375_v24 = vld [vmem:[#allocation2 + $0x58] sm:$0xff] }
 0x292   : > { %v2676_v29 = vadd.f32 %v2672_v7, %v2640_v27  ;;  %vm2679_vm10 = vcmp.ge.f32.partialorder %v2675_v23, 0.0  ;;  %v2699_v31 = vmul.f32 %v2686_v34, %v2675_v23  ;;  %v7328_v15 = vld [vmem:[#allocation5 + $0x9ac] ss:$16 sps:$4 sm:$0xff]   ;;  %v2554_v34 = vrot.slane %v8371_v8, %v8114_v46 }
 0x293   : > { %v2558_v21 = vrot.slane %v8375_v24, %v8114_v46  ;;  %v7334_v25 = vld [vmem:[#allocation5 + $0x98c] ss:$16 sps:$4 sm:$0xff]   ;;  %v2578_v7 = vrot.slane %v8375_v24, %v8116_v48 }
 0x294   : > { %vm2680_vm11 = vcmp.ge.f32.partialorder %v2676_v29, 0.0  ;;  %v2700_v32 = vmul.f32 %v2690_v11, %v2676_v29  ;;  %v2703_v6 = vsel %vm2679_vm10, %v2675_v23, %v2699_v31  ;;  %v7332_v31 = vld [vmem:[#allocation5 + $0x988] ss:$16 sps:$4 sm:$0xff]  }
 0x295   : > { %v2723_v41 = vmul.f32 %v2710_v28, %v2703_v6  ;;  %v7340_v6 = vld [vmem:[#allocation5 + $0x96c] ss:$16 sps:$4 sm:$0xff]  }
 0x296   : > { %v2704_v44 = vsel %vm2680_vm11, %v2676_v29, %v2700_v32  ;;  %v2630_v32 = vrot.slane %v8371_v8, %v8120_v51 }
 0x297   : > { %v2724_v47 = vmul.f32 %v2714_v57, %v2704_v44  ;;  %v2743_v19 = vadd.f32 %v2730_v38, %v2723_v41  ;;  %v2610_v57 = vrot.slane %v8371_v8, %v8118_v49  ;;  %v2634_v44 = vrot.slane %v8375_v24, %v8120_v51 }
 0x299   : > { %v2744_v50 = vadd.f32 %v2734_v3, %v2724_v47  ;;  %v8368_v53 = vpack.c.bf16 %v2743_v19, %v2743_v19  ;;  %v2666_v47 = vrot.slane %v8371_v8, %v8122_v52  ;;  %v2614_v19 = vrot.slane %v8375_v24, %v8118_v49 }
 0x29b   : > { %v2877_v54 = vpack.c.bf16 %v2744_v50, %v2744_v50 }
 0x29d   : > { %3552 = vmatprep.mubr.bf16.mxu0 %v2877_v54 }
 0x29e   : > { %3553 = vmatmul.mubr.bf16.vlgmr.msra.gmra.mxu0 %v8368_v53 }
 0x29f   : > { %3603 = vmatpush1.bf16.msra.mxu0 %v7266_v30  ;;  %3634 = vmatprep.mubr.bf16.mxu0 %v2877_v54 }
 0x2a0   : > { %3604 = vmatprep.subr.bf16.mxu0 %v7274_v36  ;;  %v7338_v36 = vld [vmem:[#allocation5 + $0x968] ss:$16 sps:$4 sm:$0xff]  }
 0x2a3   : > { %3605 = vmatpush1.bf16.msra.mxu0 %v7272_v39 }
 0x2a4   : > { %3606 = vmatprep.subr.bf16.mxu0 %v7280_v35 }
 0x2a7   : > { %3607 = vmatpush1.bf16.msra.mxu0 %v7278_v58 }
 0x2a8   : > { %3608 = vmatprep.subr.bf16.mxu0 %v7286_v55  ;;  %v7346_v55 = vld [vmem:[#allocation5 + $0x94c] ss:$16 sps:$4 sm:$0xff]  }
 0x2ab   : > { %3609 = vmatpush1.bf16.msra.mxu0 %v7284_v45  ;;  %v2670_v45 = vrot.slane %v8375_v24, %v8122_v52 }
 0x2ac   : > { %3610 = vmatprep.subr.bf16.mxu0 %v7292_v43 }
 0x2af   : > { %3611 = vmatpush1.bf16.msra.mxu0 %v7290_v12 }
 0x2b0   : > { %3612 = vmatprep.subr.bf16.mxu0 %v7298_v61  ;;  %v2694_v61 = vrot.slane %v8371_v8, %v8125_v56 }
 0x2b3   : > { %3613 = vmatpush1.bf16.msra.mxu0 %v7296_v62 }
 0x2b4   : > { %3614 = vmatprep.subr.bf16.mxu0 %v7304_v63 }
 0x2b7   : > { %3615 = vmatpush1.bf16.msra.mxu0 %v7302_v0 }
 0x2b8   : > { %3616 = vmatprep.subr.bf16.mxu0 %v7310_v1 }
 0x2bb   : > { %3617 = vmatpush1.bf16.msra.mxu0 %v7308_v4  ;;  %v7344_v4 = vld [vmem:[#allocation5 + $0x948] ss:$16 sps:$4 sm:$0xff]  }
 0x2bc   : > { %3618 = vmatprep.subr.bf16.mxu0 %v7316_v5 }
 0x2bf   : > { %3619 = vmatpush2.bf16.msra.mxu0 %v7314_v14 }
 0x2c0   : > { %v2527_v13 = vpop.f32.mrf.mxu1  ;;  %3620 = vmatprep.subr.bf16.mxu0 %v7322_v33  ;;  %v7352_v33 = vld [vmem:[#allocation5 + $0x92c] ss:$16 sps:$4 sm:$0xff]  }
 0x2c1   : > { %v8379_v17 = vadd.f32 %v2527_v13, %v2487_v9  ;;  %v2718_v13 = vrot.slane %v8371_v8, %v8131_v59 }
 0x2c2   : > { %v2529_v2 = vpop.f32.mrf.mxu1 }
 0x2c3   : > { %v2541_v20 = vmax.f32 %v8379_v17, 0.0  ;;  %v8386_v37 = vadd.f32 %v2529_v2, %v2489_v16  ;;  %3621 = vmatpush2.bf16.msra.mxu0 %v7320_v10  ;;  %v2698_v10 = vrot.slane %v8375_v24, %v8125_v56  ;;  %v2722_v2 = vrot.slane %v8375_v24, %v8131_v59 }
 0x2c4   : > { %v2531_v23 = vpop.f32.mrf.mxu1  ;;  %3622 = vmatprep.subr.bf16.mxu0 %v7328_v15 }
 0x2c5   : > { %v2561_v42 = vmul.f32 %v2554_v34, %v2541_v20  ;;  %v2542_v27 = vmax.f32 %v8386_v37, 0.0  ;;  %v7350_v34 = vld [vmem:[#allocation5 + $0x928] ss:$16 sps:$4 sm:$0xff]   ;;  %v7358_v20 = vld [vmem:[#allocation5 + $0x90c] ss:$16 sps:$4 sm:$0xff]   ;;  %v2742_v23 = vrot.slane %v8375_v24, %v8133_v60 }
 0x2c6   : > { %v2532_v11 = vpop.f32.mrf.mxu1  ;;  %v7367_v24 = vld [vmem:[#allocation5 + $0xaac] ss:$16 sps:$4 sm:$0xff]  }
 0x2c7   : > { %v2581_v28 = vadd.f32 %v2574_v18, %v2561_v42  ;;  %v2562_v29 = vmul.f32 %v2558_v21, %v2542_v27  ;;  %3623 = vmatpush2.bf16.msra.mxu0 %v7326_v22  ;;  %v2738_v22 = vrot.slane %v8371_v8, %v8133_v60  ;;  %v7356_v27 = vld [vmem:[#allocation5 + $0x908] ss:$16 sps:$4 sm:$0xff]  }
 0x2c8   : > { %3624 = vmatprep.subr.bf16.mxu0 %v7334_v25  ;;  %v7362_v8 = vld [vmem:[#allocation5 + $0xac8] ss:$16 sps:$4 sm:$0xff]  }
 0x2c9   : > { %v2589_v38 = vrot.slane %v2581_v28, 7  ;;  %v2645_v3 = vrot.slane %v2581_v28, 1  ;;  %v2582_v41 = vadd.f32 %v2578_v7, %v2562_v29  ;;  %v2637_v35 = vmul.f32 %v2630_v32, %v2581_v28  ;;  %v7364_v32 = vld [vmem:[#allocation5 + $0xacc] ss:$16 sps:$4 sm:$0xff]  }
 0x2cb   : > { %v2597_v50 = vsel %vm286_vm0, 0.0, %v2589_v38  ;;  %v2653_v54 = vsel %vm345_vm1, %v2645_v3, 0.0  ;;  %v2590_v30 = vrot.slane %v2582_v41, 7  ;;  %3625 = vmatpush2.bf16.msra.mxu0 %v7332_v31  ;;  %v2646_v58 = vrot.slane %v2582_v41, 1  ;;  %v7359_v31 = vld [vmem:[#allocation5 + $0xae8] ss:$16 sps:$4 sm:$0xff]  }
 0x2cc   : > { %v2617_v39 = vmul.f32 %v2610_v57, %v2597_v50  ;;  %3626 = vmatprep.subr.bf16.mxu0 %v7340_v6  ;;  %v2638_v12 = vmul.f32 %v2634_v44, %v2582_v41  ;;  %v2673_v63 = vmul.f32 %v2666_v47, %v2653_v54  ;;  %v7365_v6 = vld [vmem:[#allocation5 + $0xaa8] ss:$16 sps:$4 sm:$0xff]   ;;  %v7370_v38 = vld [vmem:[#allocation5 + $0xa8c] ss:$16 sps:$4 sm:$0xff]   ;;  %v7407_v3 = vld [vmem:[#allocation5 + $0xce0] ss:$16 sps:$4 sm:$0xff]  }
 0x2cd   : > { %v2598_v43 = vsel %vm286_vm0, 0.0, %v2590_v30  ;;  %v2654_v1 = vsel %vm345_vm1, %v2646_v58, 0.0  ;;  %v7409_v41 = vld [vmem:[#allocation5 + $0xce4] ss:$16 sps:$4 sm:$0xff]   ;;  %v7368_v47 = vld [vmem:[#allocation5 + $0xa88] ss:$16 sps:$4 sm:$0xff]  }
 0x2ce   : > { %v2641_v62 = vadd.f32 %v2637_v35, %v2617_v39  ;;  %v2618_v0 = vmul.f32 %v2614_v19, %v2598_v43  ;;  %v2674_v9 = vmul.f32 %v2670_v45, %v2654_v1  ;;  %v7412_v44 = vld [vmem:[#allocation5 + $0xcc4] ss:$16 sps:$4 sm:$0xff]   ;;  %v7410_v19 = vld [vmem:[#allocation5 + $0xcc0] ss:$16 sps:$4 sm:$0xff]   ;;  %v7373_v50 = vld [vmem:[#allocation5 + $0xa6c] ss:$16 sps:$4 sm:$0xff]  }
 0x2cf   : > { %3627 = vmatpush2.bf16.msra.mxu0 %v7338_v36  ;;  %v7371_v54 = vld [vmem:[#allocation5 + $0xa68] ss:$16 sps:$4 sm:$0xff]   ;;  %v7413_v30 = vld [vmem:[#allocation5 + $0xca0] ss:$16 sps:$4 sm:$0xff]   ;;  %v7376_v36 = vld [vmem:[#allocation5 + $0xa4c] ss:$16 sps:$4 sm:$0xff]  }
 0x2d0   : > { %v2677_v5 = vadd.f32 %v2673_v63, %v2641_v62  ;;  %v2642_v14 = vadd.f32 %v2638_v12, %v2618_v0  ;;  %3628 = vmatprep.subr.bf16.mxu0 %v7346_v55  ;;  %v7418_v39 = vld [vmem:[#allocation5 + $0xc84] ss:$16 sps:$4 sm:$0xff]   ;;  %v7374_v35 = vld [vmem:[#allocation5 + $0xa48] ss:$16 sps:$4 sm:$0xff]   ;;  %v7416_v58 = vld [vmem:[#allocation5 + $0xc80] ss:$16 sps:$4 sm:$0xff]  }
 0x2d1   : > { %v7379_v55 = vld [vmem:[#allocation5 + $0xa2c] ss:$16 sps:$4 sm:$0xff]   ;;  %v7421_v45 = vld [vmem:[#allocation5 + $0xc64] ss:$16 sps:$4 sm:$0xff]   ;;  %v7377_v43 = vld [vmem:[#allocation5 + $0xa28] ss:$16 sps:$4 sm:$0xff]  }
 0x2d2   : > { %v2678_v15 = vadd.f32 %v2674_v9, %v2642_v14  ;;  %vm2681_vm12 = vcmp.ge.f32.partialorder %v2677_v5, 0.0  ;;  %v2701_v16 = vmul.f32 %v2694_v61, %v2677_v5  ;;  %v7419_v12 = vld [vmem:[#allocation5 + $0xc60] ss:$16 sps:$4 sm:$0xff]   ;;  %v7382_v61 = vld [vmem:[#allocation5 + $0xa0c] ss:$16 sps:$4 sm:$0xff]  }
 0x2d3   : > { %3629 = vmatpush2.bf16.msra.mxu0 %v7344_v4  ;;  %v7424_v62 = vld [vmem:[#allocation5 + $0xc44] ss:$16 sps:$4 sm:$0xff]   ;;  %v7380_v63 = vld [vmem:[#allocation5 + $0xa08] ss:$16 sps:$4 sm:$0xff]   ;;  %v7422_v0 = vld [vmem:[#allocation5 + $0xc40] ss:$16 sps:$4 sm:$0xff]  }
 0x2d4   : > { %3630 = vmatprep.subr.bf16.mxu0 %v7352_v33  ;;  %vm2682_vm13 = vcmp.ge.f32.partialorder %v2678_v15, 0.0  ;;  %v2702_v18 = vmul.f32 %v2698_v10, %v2678_v15  ;;  %v2705_v21 = vsel %vm2681_vm12, %v2677_v5, %v2701_v16  ;;  %v7385_v1 = vld [vmem:[#allocation5 + $0xbec] ss:$16 sps:$4 sm:$0xff]   ;;  %v7427_v4 = vld [vmem:[#allocation5 + $0xc24] ss:$16 sps:$4 sm:$0xff]  }
 0x2d5   : > { %v2725_v25 = vmul.f32 %v2718_v13, %v2705_v21  ;;  %v7383_v5 = vld [vmem:[#allocation5 + $0xbe8] ss:$16 sps:$4 sm:$0xff]   ;;  %v7425_v14 = vld [vmem:[#allocation5 + $0xc20] ss:$16 sps:$4 sm:$0xff]   ;;  %v7388_v33 = vld [vmem:[#allocation5 + $0xbcc] ss:$16 sps:$4 sm:$0xff]  }
 0x2d6   : > { %v2706_v42 = vsel %vm2682_vm13, %v2678_v15, %v2702_v18  ;;  %v7430_v9 = vld [vmem:[#allocation5 + $0xc04] ss:$16 sps:$4 sm:$0xff]   ;;  %v7386_v10 = vld [vmem:[#allocation5 + $0xbc8] ss:$16 sps:$4 sm:$0xff]   ;;  %v7428_v13 = vld [vmem:[#allocation5 + $0xc00] ss:$16 sps:$4 sm:$0xff]  }
 0x2d7   : > { %3631 = vmatpush2.bf16.msra.mxu0 %v7350_v34  ;;  %v2726_v7 = vmul.f32 %v2722_v2, %v2706_v42  ;;  %v2745_v11 = vadd.f32 %v2738_v22, %v2725_v25  ;;  %v7391_v15 = vld [vmem:[#allocation5 + $0xbac] ss:$16 sps:$4 sm:$0xff]   ;;  %v7433_v16 = vld [vmem:[#allocation5 + $0xde4] ss:$16 sps:$4 sm:$0xff]   ;;  %v7389_v34 = vld [vmem:[#allocation5 + $0xba8] ss:$16 sps:$4 sm:$0xff]  }
 0x2d8   : > { %3632 = vmatprep.subr.bf16.mxu0 %v7358_v20  ;;  %v7431_v2 = vld [vmem:[#allocation5 + $0xde0] ss:$16 sps:$4 sm:$0xff]   ;;  %v7394_v20 = vld [vmem:[#allocation5 + $0xb8c] ss:$16 sps:$4 sm:$0xff]   ;;  %v7392_v18 = vld [vmem:[#allocation5 + $0xb88] ss:$16 sps:$4 sm:$0xff]  }
 0x2d9   : > { %v2746_v28 = vadd.f32 %v2742_v23, %v2726_v7  ;;  %v8421_v57 = vpack.c.bf16 %v2745_v11, %v2745_v11  ;;  %v7397_v21 = vld [vmem:[#allocation5 + $0xb6c] ss:$16 sps:$4 sm:$0xff]   ;;  %v7395_v22 = vld [vmem:[#allocation5 + $0xb68] ss:$16 sps:$4 sm:$0xff]  }
 0x2da   : > { %v7400_v23 = vld [vmem:[#allocation5 + $0xb4c] ss:$16 sps:$4 sm:$0xff]   ;;  %v7398_v25 = vld [vmem:[#allocation5 + $0xb48] ss:$16 sps:$4 sm:$0xff]  }
 0x2db   : > { %3633 = vmatpush2.bf16.msra.mxu0 %v7356_v27  ;;  %v2879_v29 = vpack.c.bf16 %v2746_v28, %v2746_v28  ;;  %v7403_v42 = vld [vmem:[#allocation5 + $0xb2c] ss:$16 sps:$4 sm:$0xff]   ;;  %v7401_v27 = vld [vmem:[#allocation5 + $0xb28] ss:$16 sps:$4 sm:$0xff]   ;;  %v7436_v28 = vld [vmem:[#allocation5 + $0xdc4] ss:$16 sps:$4 sm:$0xff]  }
 0x2dc   : > { %4670 = vmatprep.subr.bf16.mxu0 %v7409_v41  ;;  %v7406_v7 = vld [vmem:[#allocation5 + $0xb0c] ss:$16 sps:$4 sm:$0xff]   ;;  %v7404_v11 = vld [vmem:[#allocation5 + $0xb08] ss:$16 sps:$4 sm:$0xff]   ;;  %v7448_v41 = vld [vmem:[#allocation5 + $0xd44] ss:$16 sps:$4 sm:$0xff]  }
 0x2dd   : > { %3593 = vmatprep.mubr.bf16.mxu1 %v2879_v29 }
 0x2de   : > { %3594 = vmatmul.mubr.bf16.vlgmr.msra.gmra.mxu1 %v8421_v57  ;;  %3635 = vmatmul.mubr.bf16.vlgmr.msra.gmra.mxu0 %v8368_v53  ;;  %v7415_v53 = vld [vmem:[#allocation5 + $0xca4] ss:$16 sps:$4 sm:$0xff]  }
 0x2df   : > { %3644 = vmatpush1.bf16.msra.mxu1 %v7359_v31  ;;  %3675 = vmatprep.mubr.bf16.mxu1 %v2879_v29  ;;  %v7434_v29 = vld [vmem:[#allocation5 + $0xdc0] ss:$16 sps:$4 sm:$0xff]   ;;  %v7439_v31 = vld [vmem:[#allocation5 + $0xda4] ss:$16 sps:$4 sm:$0xff]  }
 0x2e0   : > { %3645 = vmatprep.subr.bf16.mxu1 %v7364_v32  ;;  %4671 = vmatpush1.bf16.msra.mxu0 %v7407_v3  ;;  %v7437_v32 = vld [vmem:[#allocation5 + $0xda0] ss:$16 sps:$4 sm:$0xff]  }
 0x2e1   : > { %4672 = vmatprep.subr.bf16.mxu0 %v7412_v44  ;;  %v7446_v3 = vld [vmem:[#allocation5 + $0xd40] ss:$16 sps:$4 sm:$0xff]   ;;  %v7451_v44 = vld [vmem:[#allocation5 + $0xd24] ss:$16 sps:$4 sm:$0xff]  }
 0x2e3   : > { %3646 = vmatpush1.bf16.msra.mxu1 %v7362_v8  ;;  %v7442_v8 = vld [vmem:[#allocation5 + $0xd84] ss:$16 sps:$4 sm:$0xff]  }
 0x2e4   : > { %3647 = vmatprep.subr.bf16.mxu1 %v7367_v24  ;;  %4673 = vmatpush1.bf16.msra.mxu0 %v7410_v19  ;;  %v7440_v24 = vld [vmem:[#allocation5 + $0xd80] ss:$16 sps:$4 sm:$0xff]  }
 0x2e5   : > { %4674 = vmatprep.subr.bf16.mxu0 %v7415_v53  ;;  %v7449_v19 = vld [vmem:[#allocation5 + $0xd20] ss:$16 sps:$4 sm:$0xff]  }
 0x2e6   : > { %v7452_v53 = vld [vmem:[#allocation5 + $0xd00] ss:$16 sps:$4 sm:$0xff]  }
 0x2e7   : > { %3648 = vmatpush1.bf16.msra.mxu1 %v7365_v6  ;;  %v7445_v6 = vld [vmem:[#allocation5 + $0xd64] ss:$16 sps:$4 sm:$0xff]  }
 0x2e8   : > { %3649 = vmatprep.subr.bf16.mxu1 %v7370_v38  ;;  %4675 = vmatpush1.bf16.msra.mxu0 %v7413_v30  ;;  %v7443_v38 = vld [vmem:[#allocation5 + $0xd60] ss:$16 sps:$4 sm:$0xff]  }
 0x2e9   : > { %4676 = vmatprep.subr.bf16.mxu0 %v7418_v39  ;;  %v7461_v30 = vld [vmem:[#allocation5 + $0xec0] ss:$16 sps:$4 sm:$0xff]  }
 0x2ea   : > { %v7467_v39 = vld [vmem:[#allocation5 + $0xea0] ss:$16 sps:$4 sm:$0xff]  }
 0x2eb   : > { %3650 = vmatpush1.bf16.msra.mxu1 %v7368_v47  ;;  %v7457_v47 = vld [vmem:[#allocation5 + $0xee4] ss:$16 sps:$4 sm:$0xff]  }
 0x2ec   : > { %3651 = vmatprep.subr.bf16.mxu1 %v7373_v50  ;;  %4677 = vmatpush1.bf16.msra.mxu0 %v7416_v58  ;;  %v7454_v50 = vld [vmem:[#allocation5 + $0xd04] ss:$16 sps:$4 sm:$0xff]   ;;  %v7473_v58 = vld [vmem:[#allocation5 + $0xe80] ss:$16 sps:$4 sm:$0xff]  }
 0x2ed   : > { %4678 = vmatprep.subr.bf16.mxu0 %v7421_v45  ;;  %v7479_v45 = vld [vmem:[#allocation5 + $0xe60] ss:$16 sps:$4 sm:$0xff]  }
 0x2ef   : > { %3652 = vmatpush1.bf16.msra.mxu1 %v7371_v54  ;;  %v7460_v54 = vld [vmem:[#allocation5 + $0xcec] ss:$16 sps:$4 sm:$0xff]  }
 0x2f0   : > { %3653 = vmatprep.subr.bf16.mxu1 %v7376_v36  ;;  %4679 = vmatpush1.bf16.msra.mxu0 %v7419_v12  ;;  %v7463_v36 = vld [vmem:[#allocation5 + $0xec4] ss:$16 sps:$4 sm:$0xff]   ;;  %v7485_v12 = vld [vmem:[#allocation5 + $0xe40] ss:$16 sps:$4 sm:$0xff]  }
 0x2f1   : > { %4680 = vmatprep.subr.bf16.mxu0 %v7424_v62  ;;  %v7491_v62 = vld [vmem:[#allocation5 + $0xe20] ss:$16 sps:$4 sm:$0xff]  }
 0x2f3   : > { %3654 = vmatpush1.bf16.msra.mxu1 %v7374_v35  ;;  %v7469_v35 = vld [vmem:[#allocation5 + $0xea4] ss:$16 sps:$4 sm:$0xff]  }
 0x2f4   : > { %3655 = vmatprep.subr.bf16.mxu1 %v7379_v55  ;;  %4681 = vmatpush1.bf16.msra.mxu0 %v7422_v0  ;;  %v7475_v55 = vld [vmem:[#allocation5 + $0xe84] ss:$16 sps:$4 sm:$0xff]   ;;  %v7497_v0 = vld [vmem:[#allocation5 + $0xe00] ss:$16 sps:$4 sm:$0xff]  }
 0x2f5   : > { %4682 = vmatprep.subr.bf16.mxu0 %v7427_v4  ;;  %v7503_v4 = vld [vmem:[#allocation5 + $0xfe0] ss:$16 sps:$4 sm:$0xff]  }
 0x2f7   : > { %3656 = vmatpush1.bf16.msra.mxu1 %v7377_v43  ;;  %v7481_v43 = vld [vmem:[#allocation5 + $0xe64] ss:$16 sps:$4 sm:$0xff]  }
 0x2f8   : > { %3657 = vmatprep.subr.bf16.mxu1 %v7382_v61  ;;  %4683 = vmatpush1.bf16.msra.mxu0 %v7425_v14  ;;  %v7487_v61 = vld [vmem:[#allocation5 + $0xe44] ss:$16 sps:$4 sm:$0xff]  }
 0x2f9   : > { %4684 = vmatprep.subr.bf16.mxu0 %v7430_v9  ;;  %v7511_v14 = vld [vmem:[#allocation5 + $0xfc4] ss:$16 sps:$4 sm:$0xff]   ;;  %v7509_v9 = vld [vmem:[#allocation5 + $0xfc0] ss:$16 sps:$4 sm:$0xff]  }
 0x2fb   : > { %3658 = vmatpush1.bf16.msra.mxu1 %v7380_v63  ;;  %v7493_v63 = vld [vmem:[#allocation5 + $0xe24] ss:$16 sps:$4 sm:$0xff]  }
 0x2fc   : > { %3659 = vmatprep.subr.bf16.mxu1 %v7385_v1  ;;  %4685 = vmatpush1.bf16.msra.mxu0 %v7428_v13  ;;  %v7499_v1 = vld [vmem:[#allocation5 + $0xe04] ss:$16 sps:$4 sm:$0xff]  }
 0x2fd   : > { %4686 = vmatprep.subr.bf16.mxu0 %v7433_v16  ;;  %v7515_v16 = vld [vmem:[#allocation5 + $0xfa0] ss:$16 sps:$4 sm:$0xff]  }
 0x2ff   : > { %3660 = vmatpush2.bf16.msra.mxu1 %v7383_v5  ;;  %v7505_v5 = vld [vmem:[#allocation5 + $0xfe4] ss:$16 sps:$4 sm:$0xff]  }
 0x300   : > { %3661 = vmatprep.subr.bf16.mxu1 %v7388_v33  ;;  %4687 = vmatpush2.bf16.msra.mxu0 %v7431_v2  ;;  %v7523_v2 = vld [vmem:[#allocation5 + $0xf84] ss:$16 sps:$4 sm:$0xff]  }
 0x301   : > { %4688 = vmatprep.subr.bf16.mxu0 %v7436_v28  ;;  %v8426_v28 = vld [vmem:[#allocation2 + $0x60] sm:$0xff] }
 0x303   : > { %3662 = vmatpush2.bf16.msra.mxu1 %v7386_v10 }
 0x304   : > { %3663 = vmatprep.subr.bf16.mxu1 %v7391_v15  ;;  %4689 = vmatpush2.bf16.msra.mxu0 %v7434_v29  ;;  %v7517_v15 = vld [vmem:[#allocation5 + $0xfa4] ss:$16 sps:$4 sm:$0xff]  }
 0x305   : > { %4690 = vmatprep.subr.bf16.mxu0 %v7439_v31 }
 0x307   : > { %3664 = vmatpush2.bf16.msra.mxu1 %v7389_v34 }
 0x308   : > { %3665 = vmatprep.subr.bf16.mxu1 %v7394_v20  ;;  %4691 = vmatpush2.bf16.msra.mxu0 %v7437_v32  ;;  %v7521_v20 = vld [vmem:[#allocation5 + $0xf80] ss:$16 sps:$4 sm:$0xff]  }
 0x309   : > { %4692 = vmatprep.subr.bf16.mxu0 %v7442_v8  ;;  %v3686_v8 = vld [vmem:[#allocation2 + $0x68] sm:$0xff] }
 0x30b   : > { %3666 = vmatpush2.bf16.msra.mxu1 %v7392_v18  ;;  %v7529_v18 = vld [vmem:[#allocation5 + $0xf64] ss:$16 sps:$4 sm:$0xff]  }
 0x30c   : > { %3667 = vmatprep.subr.bf16.mxu1 %v7397_v21  ;;  %4693 = vmatpush2.bf16.msra.mxu0 %v7440_v24  ;;  %v7527_v21 = vld [vmem:[#allocation5 + $0xf60] ss:$16 sps:$4 sm:$0xff]  }
 0x30d   : > { %4694 = vmatprep.subr.bf16.mxu0 %v7445_v6 }
 0x30f   : > { %3668 = vmatpush2.bf16.msra.mxu1 %v7395_v22  ;;  %v7533_v22 = vld [vmem:[#allocation5 + $0xf40] ss:$16 sps:$4 sm:$0xff]  }
 0x310   : > { %3669 = vmatprep.subr.bf16.mxu1 %v7400_v23  ;;  %4695 = vmatpush2.bf16.msra.mxu0 %v7443_v38  ;;  %v7535_v23 = vld [vmem:[#allocation5 + $0xf44] ss:$16 sps:$4 sm:$0xff]   ;;  %v3696_v38 = vrot.slane %v8426_v28, %v8114_v46 }
 0x311   : > { %4696 = vmatprep.subr.bf16.mxu0 %v7448_v41 }
 0x313   : > { %3670 = vmatpush2.bf16.msra.mxu1 %v7398_v25  ;;  %v7539_v25 = vld [vmem:[#allocation5 + $0xf20] ss:$16 sps:$4 sm:$0xff]  }
 0x314   : > { %3671 = vmatprep.subr.bf16.mxu1 %v7403_v42  ;;  %4697 = vmatpush2.bf16.msra.mxu0 %v7446_v3  ;;  %v7541_v42 = vld [vmem:[#allocation5 + $0xf24] ss:$16 sps:$4 sm:$0xff]  }
 0x315   : > { %4698 = vmatprep.subr.bf16.mxu0 %v7451_v44 }
 0x317   : > { %3672 = vmatpush2.bf16.msra.mxu1 %v7401_v27  ;;  %v7545_v27 = vld [vmem:[#allocation5 + $0xf00] ss:$16 sps:$4 sm:$0xff]  }
 0x318   : > { %3673 = vmatprep.subr.bf16.mxu1 %v7406_v7  ;;  %4699 = vmatpush2.bf16.msra.mxu0 %v7449_v19  ;;  %v7547_v7 = vld [vmem:[#allocation5 + $0xf04] ss:$16 sps:$4 sm:$0xff]  }
 0x319   : > { %4700 = vmatprep.subr.bf16.mxu0 %v7454_v50 }
 0x31b   : > { %3674 = vmatpush2.bf16.msra.mxu1 %v7404_v11  ;;  %v7553_v11 = vld [vmem:[#allocation5 + $0xeec] ss:$16 sps:$4 sm:$0xff]  }
 0x31c   : > { %4711 = vmatprep.subr.bf16.mxu1 %v7457_v47  ;;  %4701 = vmatpush2.bf16.msra.mxu0 %v7452_v53  ;;  %v3700_v47 = vrot.slane %v3686_v8, %v8114_v46 }
 0x31d   : > { %4752 = vmatprep.subr.bf16.mxu0 %v7460_v54  ;;  %v3720_v54 = vrot.slane %v3686_v8, %v8116_v48 }
 0x31e   : > { %3676 = vmatmul.mubr.bf16.vlgmr.msra.gmra.mxu1 %v8421_v57  ;;  %v7455_v57 = vld [vmem:[#allocation5 + $0xee0] ss:$16 sps:$4 sm:$0xff]  }
 0x31f   : > { %4712 = vmatpush1.bf16.msra.mxu1 %v7455_v57  ;;  %v3716_v57 = vrot.slane %v8426_v28, %v8116_v48 }
 0x320   : > { %4713 = vmatprep.subr.bf16.mxu1 %v7463_v36 }
 0x323   : > { %4714 = vmatpush1.bf16.msra.mxu1 %v7461_v30 }
 0x324   : > { %4715 = vmatprep.subr.bf16.mxu1 %v7469_v35 }
 0x327   : > { %4716 = vmatpush1.bf16.msra.mxu1 %v7467_v39 }
 0x328   : > { %4717 = vmatprep.subr.bf16.mxu1 %v7475_v55  ;;  %v3772_v55 = vrot.slane %v8426_v28, %v8120_v51 }
 0x32b   : > { %4718 = vmatpush1.bf16.msra.mxu1 %v7473_v58  ;;  %v3752_v58 = vrot.slane %v8426_v28, %v8118_v49 }
 0x32c   : > { %4719 = vmatprep.subr.bf16.mxu1 %v7481_v43 }
 0x32f   : > { %4720 = vmatpush1.bf16.msra.mxu1 %v7479_v45 }
 0x330   : > { %4721 = vmatprep.subr.bf16.mxu1 %v7487_v61  ;;  %v3776_v61 = vrot.slane %v3686_v8, %v8120_v51 }
 0x333   : > { %4722 = vmatpush1.bf16.msra.mxu1 %v7485_v12 }
 0x334   : > { %4723 = vmatprep.subr.bf16.mxu1 %v7493_v63  ;;  %v3756_v63 = vrot.slane %v3686_v8, %v8118_v49 }
 0x337   : > { %4724 = vmatpush1.bf16.msra.mxu1 %v7491_v62  ;;  %v3808_v62 = vrot.slane %v8426_v28, %v8122_v52 }
 0x338   : > { %4725 = vmatprep.subr.bf16.mxu1 %v7499_v1 }
 0x33b   : > { %4726 = vmatpush1.bf16.msra.mxu1 %v7497_v0 }
 0x33c   : > { %4727 = vmatprep.subr.bf16.mxu1 %v7505_v5 }
 0x33f   : > { %4728 = vmatpush2.bf16.msra.mxu1 %v7503_v4 }
 0x340   : > { %4729 = vmatprep.subr.bf16.mxu1 %v7511_v14 }
 0x343   : > { %4730 = vmatpush2.bf16.msra.mxu1 %v7509_v9  ;;  %v3812_v9 = vrot.slane %v3686_v8, %v8122_v52 }
 0x344   : > { %4731 = vmatprep.subr.bf16.mxu1 %v7517_v15  ;;  %v3836_v15 = vrot.slane %v8426_v28, %v8125_v56 }
 0x347   : > { %4732 = vmatpush2.bf16.msra.mxu1 %v7515_v16 }
 0x348   : > { %4733 = vmatprep.subr.bf16.mxu1 %v7523_v2 }
 0x34b   : > { %4734 = vmatpush2.bf16.msra.mxu1 %v7521_v20 }
 0x34c   : > { %4735 = vmatprep.subr.bf16.mxu1 %v7529_v18 }
 0x34f   : > { %4736 = vmatpush2.bf16.msra.mxu1 %v7527_v21 }
 0x350   : > { %4737 = vmatprep.subr.bf16.mxu1 %v7535_v23  ;;  %v3840_v23 = vrot.slane %v3686_v8, %v8125_v56 }
 0x353   : > { %4738 = vmatpush2.bf16.msra.mxu1 %v7533_v22 }
 0x354   : > { %4739 = vmatprep.subr.bf16.mxu1 %v7541_v42 }
 0x357   : > { %4740 = vmatpush2.bf16.msra.mxu1 %v7539_v25  ;;  %v3860_v25 = vrot.slane %v8426_v28, %v8131_v59 }
 0x358   : > { %4741 = vmatprep.subr.bf16.mxu1 %v7547_v7  ;;  %v3864_v7 = vrot.slane %v3686_v8, %v8131_v59 }
 0x35b   : > { %4742 = vmatpush2.bf16.msra.mxu1 %v7545_v27 }
 0x35c   : > { %4793 = vmatprep.subr.bf16.mxu1 %v7553_v11 }
 0x35e   : > { %v3554_v33 = vpop.f32.mrf.mxu0 }
 0x35f   : > { %v3555_v29 = vadd.f32 %v3554_v33, %v8332_v40 }
 0x360   : > { %v3556_v10 = vpop.f32.mrf.mxu0 }
 0x361   : > { %v3557_v24 = vadd.f32 %v3556_v10, %v8341_v26 }
 0x362   : > { %v3558_v13 = vpop.f32.mrf.mxu0 }
 0x364   : > { %v3559_v34 = vpop.f32.mrf.mxu0 }
 0x39e   : > { %v3595_v31 = vpop.f32.mrf.mxu1  ;;  %v8429_v32 = vpop.f32.mrf.mxu0 }
 0x39f   : > { %v8432_v6 = vadd.f32 %v3595_v31, %v3555_v29  ;;  %v3880_v31 = vrot.slane %v8426_v28, %v8133_v60  ;;  %v7472_v28 = vld [vmem:[#allocation5 + $0xcac] ss:$16 sps:$4 sm:$0xff]  }
 0x3a0   : > { %v3597_v3 = vpop.f32.mrf.mxu1  ;;  %v8436_v41 = vpop.f32.mrf.mxu0 }
 0x3a1   : > { %v3689_v44 = vmax.f32 %v8432_v6, 0.0  ;;  %v8441_v40 = vadd.f32 %v3597_v3, %v3557_v24  ;;  %v3884_v24 = vrot.slane %v3686_v8, %v8133_v60  ;;  %v7470_v8 = vld [vmem:[#allocation5 + $0xca8] ss:$16 sps:$4 sm:$0xff]  }
 0x3a2   : > { %v3599_v19 = vpop.f32.mrf.mxu1  ;;  %v3640_v50 = vpop.f32.mrf.mxu0 }
 0x3a3   : > { %v3709_v26 = vmul.f32 %v3696_v38, %v3689_v44  ;;  %v3690_v53 = vmax.f32 %v8441_v40, 0.0  ;;  %v7458_v50 = vld [vmem:[#allocation5 + $0xce8] ss:$16 sps:$4 sm:$0xff]  }
 0x3a4   : > { %v3600_v30 = vpop.f32.mrf.mxu1  ;;  %v3641_v36 = vpop.f32.mrf.mxu0 }
 0x3a5   : > { %v3729_v39 = vadd.f32 %v3716_v57, %v3709_v26  ;;  %v3710_v35 = vmul.f32 %v3700_v47, %v3690_v53  ;;  %v7466_v53 = vld [vmem:[#allocation5 + $0xccc] ss:$16 sps:$4 sm:$0xff]   ;;  %v7476_v36 = vld [vmem:[#allocation5 + $0xc88] ss:$16 sps:$4 sm:$0xff]  }
 0x3a6   : > { %v7478_v30 = vld [vmem:[#allocation5 + $0xc8c] ss:$16 sps:$4 sm:$0xff]  }
 0x3a7   : > { %v3737_v45 = vrot.slane %v3729_v39, 7  ;;  %v3793_v43 = vrot.slane %v3729_v39, 1  ;;  %v3730_v12 = vadd.f32 %v3720_v54, %v3710_v35  ;;  %v3785_v14 = vmul.f32 %v3772_v55, %v3729_v39  ;;  %v7464_v54 = vld [vmem:[#allocation5 + $0xcc8] ss:$16 sps:$4 sm:$0xff]   ;;  %v7484_v39 = vld [vmem:[#allocation5 + $0xc6c] ss:$16 sps:$4 sm:$0xff]  }
 0x3a8   : > { %v7482_v35 = vld [vmem:[#allocation5 + $0xc68] ss:$16 sps:$4 sm:$0xff]  }
 0x3a9   : > { %v3745_v0 = vsel %vm286_vm0, 0.0, %v3737_v45  ;;  %v3801_v1 = vsel %vm345_vm1, %v3793_v43, 0.0  ;;  %v3738_v4 = vrot.slane %v3730_v12, 7  ;;  %v3794_v33 = vrot.slane %v3730_v12, 1  ;;  %v7488_v55 = vld [vmem:[#allocation5 + $0xc48] ss:$16 sps:$4 sm:$0xff]  }
 0x3aa   : > { %v3765_v5 = vmul.f32 %v3752_v58, %v3745_v0  ;;  %v3786_v13 = vmul.f32 %v3776_v61, %v3730_v12  ;;  %v3821_v34 = vmul.f32 %v3808_v62, %v3801_v1  ;;  %v7490_v58 = vld [vmem:[#allocation5 + $0xc4c] ss:$16 sps:$4 sm:$0xff]   ;;  %v7494_v43 = vld [vmem:[#allocation5 + $0xc28] ss:$16 sps:$4 sm:$0xff]   ;;  %v8471_v1 = vld [vmem:[#allocation2 + $0x70] sm:$0xff] }
 0x3ab   : > { %v3746_v10 = vsel %vm286_vm0, 0.0, %v3738_v4  ;;  %v3802_v20 = vsel %vm345_vm1, %v3794_v33, 0.0  ;;  %v7496_v45 = vld [vmem:[#allocation5 + $0xc2c] ss:$16 sps:$4 sm:$0xff]   ;;  %v7500_v61 = vld [vmem:[#allocation5 + $0xc08] ss:$16 sps:$4 sm:$0xff]   ;;  %v3637_v4 = vadd.f32 %v8429_v32, %v8379_v17  ;;  %v3724_v17 = vrot.slane %v8471_v1, %v8116_v48 }
 0x3ac   : > { %v3789_v16 = vadd.f32 %v3785_v14, %v3765_v5  ;;  %v3766_v2 = vmul.f32 %v3756_v63, %v3746_v10  ;;  %v3822_v22 = vmul.f32 %v3812_v9, %v3802_v20  ;;  %v7502_v12 = vld [vmem:[#allocation5 + $0xc0c] ss:$16 sps:$4 sm:$0xff]   ;;  %v7506_v63 = vld [vmem:[#allocation5 + $0xde8] ss:$16 sps:$4 sm:$0xff]   ;;  %v3639_v10 = vadd.f32 %v8436_v41, %v8386_v37 }
 0x3ad   : > { %v7508_v62 = vld [vmem:[#allocation5 + $0xdec] ss:$16 sps:$4 sm:$0xff]   ;;  %v7512_v5 = vld [vmem:[#allocation5 + $0xdc8] ss:$16 sps:$4 sm:$0xff]  }
 0x3ae   : > { %v3825_v18 = vadd.f32 %v3821_v34, %v3789_v16  ;;  %v3790_v21 = vadd.f32 %v3786_v13, %v3766_v2  ;;  %v7514_v0 = vld [vmem:[#allocation5 + $0xdcc] ss:$16 sps:$4 sm:$0xff]   ;;  %v7518_v20 = vld [vmem:[#allocation5 + $0xda8] ss:$16 sps:$4 sm:$0xff]  }
 0x3af   : > { %v8475_v33 = vld [vmem:[#allocation2 + $0x78] sm:$0xff] }
 0x3b0   : > { %v3826_v42 = vadd.f32 %v3822_v22, %v3790_v21  ;;  %vm3829_vm14 = vcmp.ge.f32.partialorder %v3825_v18, 0.0  ;;  %v3849_v27 = vmul.f32 %v3836_v15, %v3825_v18  ;;  %v7520_v9 = vld [vmem:[#allocation5 + $0xdac] ss:$16 sps:$4 sm:$0xff]   ;;  %v3704_v15 = vrot.slane %v8471_v1, %v8114_v46 }
 0x3b1   : > { %v3708_v2 = vrot.slane %v8475_v33, %v8114_v46  ;;  %v7526_v37 = vld [vmem:[#allocation5 + $0xd8c] ss:$16 sps:$4 sm:$0xff]   ;;  %v3728_v22 = vrot.slane %v8475_v33, %v8116_v48 }
 0x3b2   : > { %vm3830_vm15 = vcmp.ge.f32.partialorder %v3826_v42, 0.0  ;;  %v3850_v11 = vmul.f32 %v3840_v23, %v3826_v42  ;;  %v3853_v29 = vsel %vm3829_vm14, %v3825_v18, %v3849_v27  ;;  %v7524_v27 = vld [vmem:[#allocation5 + $0xd88] ss:$16 sps:$4 sm:$0xff]  }
 0x3b3   : > { %v3873_v38 = vmul.f32 %v3860_v25, %v3853_v29  ;;  %v7532_v29 = vld [vmem:[#allocation5 + $0xd6c] ss:$16 sps:$4 sm:$0xff]  }
 0x3b4   : > { %v3854_v3 = vsel %vm3830_vm15, %v3826_v42, %v3850_v11  ;;  %v3780_v11 = vrot.slane %v8471_v1, %v8120_v51 }
 0x3b5   : > { %v3874_v44 = vmul.f32 %v3864_v7, %v3854_v3  ;;  %v3893_v57 = vadd.f32 %v3880_v31, %v3873_v38  ;;  %v3760_v7 = vrot.slane %v8471_v1, %v8118_v49  ;;  %v3784_v3 = vrot.slane %v8475_v33, %v8120_v51 }
 0x3b7   : > { %v3894_v47 = vadd.f32 %v3884_v24, %v3874_v44  ;;  %v8468_v26 = vpack.c.bf16 %v3893_v57, %v3893_v57  ;;  %v3816_v44 = vrot.slane %v8471_v1, %v8122_v52  ;;  %v3764_v57 = vrot.slane %v8475_v33, %v8118_v49 }
 0x3b9   : > { %v4027_v19 = vpack.c.bf16 %v3894_v47, %v3894_v47 }
 0x3bb   : > { %4702 = vmatprep.mubr.bf16.mxu0 %v4027_v19 }
 0x3bc   : > { %4703 = vmatmul.mubr.bf16.vlgmr.msra.gmra.mxu0 %v8468_v26 }
 0x3bd   : > { %4753 = vmatpush1.bf16.msra.mxu0 %v7458_v50  ;;  %4784 = vmatprep.mubr.bf16.mxu0 %v4027_v19 }
 0x3be   : > { %4754 = vmatprep.subr.bf16.mxu0 %v7466_v53  ;;  %v7530_v53 = vld [vmem:[#allocation5 + $0xd68] ss:$16 sps:$4 sm:$0xff]  }
 0x3c1   : > { %4755 = vmatpush1.bf16.msra.mxu0 %v7464_v54 }
 0x3c2   : > { %4756 = vmatprep.subr.bf16.mxu0 %v7472_v28 }
 0x3c5   : > { %4757 = vmatpush1.bf16.msra.mxu0 %v7470_v8 }
 0x3c6   : > { %4758 = vmatprep.subr.bf16.mxu0 %v7478_v30  ;;  %v7538_v30 = vld [vmem:[#allocation5 + $0xd4c] ss:$16 sps:$4 sm:$0xff]  }
 0x3c9   : > { %4759 = vmatpush1.bf16.msra.mxu0 %v7476_v36  ;;  %v3820_v36 = vrot.slane %v8475_v33, %v8122_v52 }
 0x3ca   : > { %4760 = vmatprep.subr.bf16.mxu0 %v7484_v39 }
 0x3cd   : > { %4761 = vmatpush1.bf16.msra.mxu0 %v7482_v35 }
 0x3ce   : > { %4762 = vmatprep.subr.bf16.mxu0 %v7490_v58  ;;  %v3844_v58 = vrot.slane %v8471_v1, %v8125_v56 }
 0x3d1   : > { %4763 = vmatpush1.bf16.msra.mxu0 %v7488_v55 }
 0x3d2   : > { %4764 = vmatprep.subr.bf16.mxu0 %v7496_v45 }
 0x3d5   : > { %4765 = vmatpush1.bf16.msra.mxu0 %v7494_v43 }
 0x3d6   : > { %4766 = vmatprep.subr.bf16.mxu0 %v7502_v12 }
 0x3d9   : > { %4767 = vmatpush1.bf16.msra.mxu0 %v7500_v61  ;;  %v7536_v61 = vld [vmem:[#allocation5 + $0xd48] ss:$16 sps:$4 sm:$0xff]  }
 0x3da   : > { %4768 = vmatprep.subr.bf16.mxu0 %v7508_v62 }
 0x3dd   : > { %4769 = vmatpush2.bf16.msra.mxu0 %v7506_v63 }
 0x3de   : > { %v3677_v14 = vpop.f32.mrf.mxu1  ;;  %4770 = vmatprep.subr.bf16.mxu0 %v7514_v0  ;;  %v7544_v0 = vld [vmem:[#allocation5 + $0xd2c] ss:$16 sps:$4 sm:$0xff]  }
 0x3df   : > { %v8479_v13 = vadd.f32 %v3677_v14, %v3637_v4  ;;  %v3868_v14 = vrot.slane %v8471_v1, %v8131_v59 }
 0x3e0   : > { %v3679_v16 = vpop.f32.mrf.mxu1 }
 0x3e1   : > { %v3691_v34 = vmax.f32 %v8479_v13, 0.0  ;;  %v8486_v32 = vadd.f32 %v3679_v16, %v3639_v10  ;;  %4771 = vmatpush2.bf16.msra.mxu0 %v7512_v5  ;;  %v3848_v5 = vrot.slane %v8475_v33, %v8125_v56  ;;  %v3872_v16 = vrot.slane %v8475_v33, %v8131_v59 }
 0x3e2   : > { %v3681_v18 = vpop.f32.mrf.mxu1  ;;  %4772 = vmatprep.subr.bf16.mxu0 %v7520_v9 }
 0x3e3   : > { %v3711_v41 = vmul.f32 %v3704_v15, %v3691_v34  ;;  %v3692_v21 = vmax.f32 %v8486_v32, 0.0  ;;  %v7542_v15 = vld [vmem:[#allocation5 + $0xd28] ss:$16 sps:$4 sm:$0xff]   ;;  %v7550_v34 = vld [vmem:[#allocation5 + $0xd0c] ss:$16 sps:$4 sm:$0xff]   ;;  %v3892_v18 = vrot.slane %v8475_v33, %v8133_v60 }
 0x3e4   : > { %v3682_v23 = vpop.f32.mrf.mxu1  ;;  %v7559_v33 = vld [vmem:[#allocation5 + $0xeac] ss:$16 sps:$4 sm:$0xff]  }
 0x3e5   : > { %v3731_v25 = vadd.f32 %v3724_v17, %v3711_v41  ;;  %v3712_v42 = vmul.f32 %v3708_v2, %v3692_v21  ;;  %4773 = vmatpush2.bf16.msra.mxu0 %v7518_v20  ;;  %v3888_v20 = vrot.slane %v8471_v1, %v8133_v60  ;;  %v7548_v21 = vld [vmem:[#allocation5 + $0xd08] ss:$16 sps:$4 sm:$0xff]  }
 0x3e6   : > { %4774 = vmatprep.subr.bf16.mxu0 %v7526_v37  ;;  %v7554_v1 = vld [vmem:[#allocation5 + $0xec8] ss:$16 sps:$4 sm:$0xff]  }
 0x3e7   : > { %v3739_v31 = vrot.slane %v3731_v25, 7  ;;  %v3795_v24 = vrot.slane %v3731_v25, 1  ;;  %v3732_v38 = vadd.f32 %v3728_v22, %v3712_v42  ;;  %v3787_v28 = vmul.f32 %v3780_v11, %v3731_v25  ;;  %v7556_v11 = vld [vmem:[#allocation5 + $0xecc] ss:$16 sps:$4 sm:$0xff]  }
 0x3e9   : > { %v3747_v47 = vsel %vm286_vm0, 0.0, %v3739_v31  ;;  %v3803_v19 = vsel %vm345_vm1, %v3795_v24, 0.0  ;;  %v3740_v50 = vrot.slane %v3732_v38, 7  ;;  %4775 = vmatpush2.bf16.msra.mxu0 %v7524_v27  ;;  %v3796_v8 = vrot.slane %v3732_v38, 1  ;;  %v7551_v27 = vld [vmem:[#allocation5 + $0xee8] ss:$16 sps:$4 sm:$0xff]  }
 0x3ea   : > { %v3767_v54 = vmul.f32 %v3760_v7, %v3747_v47  ;;  %4776 = vmatprep.subr.bf16.mxu0 %v7532_v29  ;;  %v3788_v35 = vmul.f32 %v3784_v3, %v3732_v38  ;;  %v3823_v45 = vmul.f32 %v3816_v44, %v3803_v19  ;;  %v7557_v29 = vld [vmem:[#allocation5 + $0xea8] ss:$16 sps:$4 sm:$0xff]   ;;  %v7562_v31 = vld [vmem:[#allocation5 + $0xe8c] ss:$16 sps:$4 sm:$0xff]   ;;  %v7599_v24 = vld [vmem:[#allocation5 + $0x10e0] ss:$16 sps:$4 sm:$0xff]  }
 0x3eb   : > { %v3748_v39 = vsel %vm286_vm0, 0.0, %v3740_v50  ;;  %v3804_v12 = vsel %vm345_vm1, %v3796_v8, 0.0  ;;  %v7601_v38 = vld [vmem:[#allocation5 + $0x10e4] ss:$16 sps:$4 sm:$0xff]   ;;  %v7560_v44 = vld [vmem:[#allocation5 + $0xe88] ss:$16 sps:$4 sm:$0xff]  }
 0x3ec   : > { %v3791_v55 = vadd.f32 %v3787_v28, %v3767_v54  ;;  %v3768_v43 = vmul.f32 %v3764_v57, %v3748_v39  ;;  %v3824_v4 = vmul.f32 %v3820_v36, %v3804_v12  ;;  %v7604_v3 = vld [vmem:[#allocation5 + $0x10c4] ss:$16 sps:$4 sm:$0xff]   ;;  %v7602_v57 = vld [vmem:[#allocation5 + $0x10c0] ss:$16 sps:$4 sm:$0xff]   ;;  %v7565_v47 = vld [vmem:[#allocation5 + $0xe6c] ss:$16 sps:$4 sm:$0xff]  }
 0x3ed   : > { %4777 = vmatpush2.bf16.msra.mxu0 %v7530_v53  ;;  %v7563_v19 = vld [vmem:[#allocation5 + $0xe68] ss:$16 sps:$4 sm:$0xff]   ;;  %v7605_v50 = vld [vmem:[#allocation5 + $0x10a0] ss:$16 sps:$4 sm:$0xff]   ;;  %v7568_v53 = vld [vmem:[#allocation5 + $0xe4c] ss:$16 sps:$4 sm:$0xff]  }
 0x3ee   : > { %v3827_v62 = vadd.f32 %v3823_v45, %v3791_v55  ;;  %v3792_v63 = vadd.f32 %v3788_v35, %v3768_v43  ;;  %4778 = vmatprep.subr.bf16.mxu0 %v7538_v30  ;;  %v7610_v54 = vld [vmem:[#allocation5 + $0x1084] ss:$16 sps:$4 sm:$0xff]   ;;  %v7566_v28 = vld [vmem:[#allocation5 + $0xe48] ss:$16 sps:$4 sm:$0xff]   ;;  %v7608_v8 = vld [vmem:[#allocation5 + $0x1080] ss:$16 sps:$4 sm:$0xff]  }
 0x3ef   : > { %v7571_v30 = vld [vmem:[#allocation5 + $0xe2c] ss:$16 sps:$4 sm:$0xff]   ;;  %v7613_v36 = vld [vmem:[#allocation5 + $0x1064] ss:$16 sps:$4 sm:$0xff]   ;;  %v7569_v39 = vld [vmem:[#allocation5 + $0xe28] ss:$16 sps:$4 sm:$0xff]  }
 0x3f0   : > { %v3828_v9 = vadd.f32 %v3824_v4, %v3792_v63  ;;  %vm3831_vm2 = vcmp.ge.f32.partialorder %v3827_v62, 0.0  ;;  %v3851_v10 = vmul.f32 %v3844_v58, %v3827_v62  ;;  %v7611_v35 = vld [vmem:[#allocation5 + $0x1060] ss:$16 sps:$4 sm:$0xff]   ;;  %v7574_v58 = vld [vmem:[#allocation5 + $0xe0c] ss:$16 sps:$4 sm:$0xff]  }
 0x3f1   : > { %4779 = vmatpush2.bf16.msra.mxu0 %v7536_v61  ;;  %v7616_v55 = vld [vmem:[#allocation5 + $0x1044] ss:$16 sps:$4 sm:$0xff]   ;;  %v7572_v45 = vld [vmem:[#allocation5 + $0xe08] ss:$16 sps:$4 sm:$0xff]   ;;  %v7614_v43 = vld [vmem:[#allocation5 + $0x1040] ss:$16 sps:$4 sm:$0xff]  }
 0x3f2   : > { %4780 = vmatprep.subr.bf16.mxu0 %v7544_v0  ;;  %vm3832_vm3 = vcmp.ge.f32.partialorder %v3828_v9, 0.0  ;;  %v3852_v17 = vmul.f32 %v3848_v5, %v3828_v9  ;;  %v3855_v2 = vsel %vm3831_vm2, %v3827_v62, %v3851_v10  ;;  %v7577_v12 = vld [vmem:[#allocation5 + $0xfec] ss:$16 sps:$4 sm:$0xff]   ;;  %v7619_v61 = vld [vmem:[#allocation5 + $0x1024] ss:$16 sps:$4 sm:$0xff]  }
 0x3f3   : > { %v3875_v37 = vmul.f32 %v3868_v14, %v3855_v2  ;;  %v7575_v62 = vld [vmem:[#allocation5 + $0xfe8] ss:$16 sps:$4 sm:$0xff]   ;;  %v7617_v63 = vld [vmem:[#allocation5 + $0x1020] ss:$16 sps:$4 sm:$0xff]   ;;  %v7580_v0 = vld [vmem:[#allocation5 + $0xfcc] ss:$16 sps:$4 sm:$0xff]  }
 0x3f4   : > { %v3856_v41 = vsel %vm3832_vm3, %v3828_v9, %v3852_v17  ;;  %v7622_v4 = vld [vmem:[#allocation5 + $0x1004] ss:$16 sps:$4 sm:$0xff]   ;;  %v7578_v5 = vld [vmem:[#allocation5 + $0xfc8] ss:$16 sps:$4 sm:$0xff]   ;;  %v7620_v14 = vld [vmem:[#allocation5 + $0x1000] ss:$16 sps:$4 sm:$0xff]  }
 0x3f5   : > { %4781 = vmatpush2.bf16.msra.mxu0 %v7542_v15  ;;  %v3876_v22 = vmul.f32 %v3872_v16, %v3856_v41  ;;  %v3895_v23 = vadd.f32 %v3888_v20, %v3875_v37  ;;  %v7583_v9 = vld [vmem:[#allocation5 + $0xfac] ss:$16 sps:$4 sm:$0xff]   ;;  %v7625_v10 = vld [vmem:[#allocation5 + $0x11e4] ss:$16 sps:$4 sm:$0xff]   ;;  %v7581_v15 = vld [vmem:[#allocation5 + $0xfa8] ss:$16 sps:$4 sm:$0xff]  }
 0x3f6   : > { %4782 = vmatprep.subr.bf16.mxu0 %v7550_v34  ;;  %v7623_v16 = vld [vmem:[#allocation5 + $0x11e0] ss:$16 sps:$4 sm:$0xff]   ;;  %v7586_v34 = vld [vmem:[#allocation5 + $0xf8c] ss:$16 sps:$4 sm:$0xff]   ;;  %v7584_v17 = vld [vmem:[#allocation5 + $0xf88] ss:$16 sps:$4 sm:$0xff]  }
 0x3f7   : > { %v3896_v25 = vadd.f32 %v3892_v18, %v3876_v22  ;;  %v8521_v7 = vpack.c.bf16 %v3895_v23, %v3895_v23  ;;  %v7589_v2 = vld [vmem:[#allocation5 + $0xf6c] ss:$16 sps:$4 sm:$0xff]   ;;  %v7587_v20 = vld [vmem:[#allocation5 + $0xf68] ss:$16 sps:$4 sm:$0xff]  }
 0x3f8   : > { %v7592_v18 = vld [vmem:[#allocation5 + $0xf4c] ss:$16 sps:$4 sm:$0xff]   ;;  %v7590_v37 = vld [vmem:[#allocation5 + $0xf48] ss:$16 sps:$4 sm:$0xff]  }
 0x3f9   : > { %4783 = vmatpush2.bf16.msra.mxu0 %v7548_v21  ;;  %v4029_v42 = vpack.c.bf16 %v3896_v25, %v3896_v25  ;;  %v7595_v41 = vld [vmem:[#allocation5 + $0xf2c] ss:$16 sps:$4 sm:$0xff]   ;;  %v7593_v21 = vld [vmem:[#allocation5 + $0xf28] ss:$16 sps:$4 sm:$0xff]   ;;  %v7628_v25 = vld [vmem:[#allocation5 + $0x11c4] ss:$16 sps:$4 sm:$0xff]  }
 0x3fa   : > { %5820 = vmatprep.subr.bf16.mxu0 %v7601_v38  ;;  %v7598_v22 = vld [vmem:[#allocation5 + $0xf0c] ss:$16 sps:$4 sm:$0xff]   ;;  %v7596_v23 = vld [vmem:[#allocation5 + $0xf08] ss:$16 sps:$4 sm:$0xff]   ;;  %v7640_v38 = vld [vmem:[#allocation5 + $0x1144] ss:$16 sps:$4 sm:$0xff]  }
 0x3fb   : > { %4743 = vmatprep.mubr.bf16.mxu1 %v4029_v42 }
 0x3fc   : > { %4744 = vmatmul.mubr.bf16.vlgmr.msra.gmra.mxu1 %v8521_v7  ;;  %4785 = vmatmul.mubr.bf16.vlgmr.msra.gmra.mxu0 %v8468_v26  ;;  %v7607_v26 = vld [vmem:[#allocation5 + $0x10a4] ss:$16 sps:$4 sm:$0xff]  }
 0x3fd   : > { %4794 = vmatpush1.bf16.msra.mxu1 %v7551_v27  ;;  %4825 = vmatprep.mubr.bf16.mxu1 %v4029_v42  ;;  %v7626_v42 = vld [vmem:[#allocation5 + $0x11c0] ss:$16 sps:$4 sm:$0xff]   ;;  %v7631_v27 = vld [vmem:[#allocation5 + $0x11a4] ss:$16 sps:$4 sm:$0xff]  }
 0x3fe   : > { %4795 = vmatprep.subr.bf16.mxu1 %v7556_v11  ;;  %5821 = vmatpush1.bf16.msra.mxu0 %v7599_v24  ;;  %v7629_v11 = vld [vmem:[#allocation5 + $0x11a0] ss:$16 sps:$4 sm:$0xff]  }
 0x3ff   : > { %5822 = vmatprep.subr.bf16.mxu0 %v7604_v3  ;;  %v7638_v24 = vld [vmem:[#allocation5 + $0x1140] ss:$16 sps:$4 sm:$0xff]   ;;  %v7643_v3 = vld [vmem:[#allocation5 + $0x1124] ss:$16 sps:$4 sm:$0xff]  }
 0x401   : > { %4796 = vmatpush1.bf16.msra.mxu1 %v7554_v1  ;;  %v7634_v1 = vld [vmem:[#allocation5 + $0x1184] ss:$16 sps:$4 sm:$0xff]  }
 0x402   : > { %4797 = vmatprep.subr.bf16.mxu1 %v7559_v33  ;;  %5823 = vmatpush1.bf16.msra.mxu0 %v7602_v57  ;;  %v7632_v33 = vld [vmem:[#allocation5 + $0x1180] ss:$16 sps:$4 sm:$0xff]  }
 0x403   : > { %5824 = vmatprep.subr.bf16.mxu0 %v7607_v26  ;;  %v7641_v57 = vld [vmem:[#allocation5 + $0x1120] ss:$16 sps:$4 sm:$0xff]  }
 0x404   : > { %v7644_v26 = vld [vmem:[#allocation5 + $0x1100] ss:$16 sps:$4 sm:$0xff]  }
 0x405   : > { %4798 = vmatpush1.bf16.msra.mxu1 %v7557_v29  ;;  %v7637_v29 = vld [vmem:[#allocation5 + $0x1164] ss:$16 sps:$4 sm:$0xff]  }
 0x406   : > { %4799 = vmatprep.subr.bf16.mxu1 %v7562_v31  ;;  %5825 = vmatpush1.bf16.msra.mxu0 %v7605_v50  ;;  %v7635_v31 = vld [vmem:[#allocation5 + $0x1160] ss:$16 sps:$4 sm:$0xff]  }
 0x407   : > { %5826 = vmatprep.subr.bf16.mxu0 %v7610_v54  ;;  %v7653_v50 = vld [vmem:[#allocation5 + $0x12c0] ss:$16 sps:$4 sm:$0xff]  }
 0x408   : > { %v7659_v54 = vld [vmem:[#allocation5 + $0x12a0] ss:$16 sps:$4 sm:$0xff]  }
 0x409   : > { %4800 = vmatpush1.bf16.msra.mxu1 %v7560_v44  ;;  %v7649_v44 = vld [vmem:[#allocation5 + $0x12e4] ss:$16 sps:$4 sm:$0xff]  }
 0x40a   : > { %4801 = vmatprep.subr.bf16.mxu1 %v7565_v47  ;;  %5827 = vmatpush1.bf16.msra.mxu0 %v7608_v8  ;;  %v7646_v47 = vld [vmem:[#allocation5 + $0x1104] ss:$16 sps:$4 sm:$0xff]   ;;  %v7665_v8 = vld [vmem:[#allocation5 + $0x1280] ss:$16 sps:$4 sm:$0xff]  }
 0x40b   : > { %5828 = vmatprep.subr.bf16.mxu0 %v7613_v36  ;;  %v7671_v36 = vld [vmem:[#allocation5 + $0x1260] ss:$16 sps:$4 sm:$0xff]  }
 0x40d   : > { %4802 = vmatpush1.bf16.msra.mxu1 %v7563_v19  ;;  %v7652_v19 = vld [vmem:[#allocation5 + $0x10ec] ss:$16 sps:$4 sm:$0xff]  }
 0x40e   : > { %4803 = vmatprep.subr.bf16.mxu1 %v7568_v53  ;;  %5829 = vmatpush1.bf16.msra.mxu0 %v7611_v35  ;;  %v7655_v53 = vld [vmem:[#allocation5 + $0x12c4] ss:$16 sps:$4 sm:$0xff]   ;;  %v7677_v35 = vld [vmem:[#allocation5 + $0x1240] ss:$16 sps:$4 sm:$0xff]  }
 0x40f   : > { %5830 = vmatprep.subr.bf16.mxu0 %v7616_v55  ;;  %v7683_v55 = vld [vmem:[#allocation5 + $0x1220] ss:$16 sps:$4 sm:$0xff]  }
 0x411   : > { %4804 = vmatpush1.bf16.msra.mxu1 %v7566_v28  ;;  %v7661_v28 = vld [vmem:[#allocation5 + $0x12a4] ss:$16 sps:$4 sm:$0xff]  }
 0x412   : > { %4805 = vmatprep.subr.bf16.mxu1 %v7571_v30  ;;  %5831 = vmatpush1.bf16.msra.mxu0 %v7614_v43  ;;  %v7667_v30 = vld [vmem:[#allocation5 + $0x1284] ss:$16 sps:$4 sm:$0xff]   ;;  %v7689_v43 = vld [vmem:[#allocation5 + $0x1200] ss:$16 sps:$4 sm:$0xff]  }
 0x413   : > { %5832 = vmatprep.subr.bf16.mxu0 %v7619_v61  ;;  %v7695_v61 = vld [vmem:[#allocation5 + $0x13e0] ss:$16 sps:$4 sm:$0xff]  }
 0x415   : > { %4806 = vmatpush1.bf16.msra.mxu1 %v7569_v39  ;;  %v7673_v39 = vld [vmem:[#allocation5 + $0x1264] ss:$16 sps:$4 sm:$0xff]  }
 0x416   : > { %4807 = vmatprep.subr.bf16.mxu1 %v7574_v58  ;;  %5833 = vmatpush1.bf16.msra.mxu0 %v7617_v63  ;;  %v7679_v58 = vld [vmem:[#allocation5 + $0x1244] ss:$16 sps:$4 sm:$0xff]  }
 0x417   : > { %5834 = vmatprep.subr.bf16.mxu0 %v7622_v4  ;;  %v7703_v63 = vld [vmem:[#allocation5 + $0x13c4] ss:$16 sps:$4 sm:$0xff]   ;;  %v7701_v4 = vld [vmem:[#allocation5 + $0x13c0] ss:$16 sps:$4 sm:$0xff]  }
 0x419   : > { %4808 = vmatpush1.bf16.msra.mxu1 %v7572_v45  ;;  %v7685_v45 = vld [vmem:[#allocation5 + $0x1224] ss:$16 sps:$4 sm:$0xff]  }
 0x41a   : > { %4809 = vmatprep.subr.bf16.mxu1 %v7577_v12  ;;  %5835 = vmatpush1.bf16.msra.mxu0 %v7620_v14  ;;  %v7691_v12 = vld [vmem:[#allocation5 + $0x1204] ss:$16 sps:$4 sm:$0xff]  }
 0x41b   : > { %5836 = vmatprep.subr.bf16.mxu0 %v7625_v10  ;;  %v7707_v10 = vld [vmem:[#allocation5 + $0x13a0] ss:$16 sps:$4 sm:$0xff]  }
 0x41d   : > { %4810 = vmatpush2.bf16.msra.mxu1 %v7575_v62  ;;  %v7697_v62 = vld [vmem:[#allocation5 + $0x13e4] ss:$16 sps:$4 sm:$0xff]  }
 0x41e   : > { %4811 = vmatprep.subr.bf16.mxu1 %v7580_v0  ;;  %5837 = vmatpush2.bf16.msra.mxu0 %v7623_v16  ;;  %v7715_v16 = vld [vmem:[#allocation5 + $0x1384] ss:$16 sps:$4 sm:$0xff]  }
 0x41f   : > { %5838 = vmatprep.subr.bf16.mxu0 %v7628_v25  ;;  %v8526_v25 = vld [vmem:[#allocation2 + $0x80] sm:$0xff] }
 0x421   : > { %4812 = vmatpush2.bf16.msra.mxu1 %v7578_v5 }
 0x422   : > { %4813 = vmatprep.subr.bf16.mxu1 %v7583_v9  ;;  %5839 = vmatpush2.bf16.msra.mxu0 %v7626_v42  ;;  %v7709_v9 = vld [vmem:[#allocation5 + $0x13a4] ss:$16 sps:$4 sm:$0xff]  }
 0x423   : > { %5840 = vmatprep.subr.bf16.mxu0 %v7631_v27 }
 0x425   : > { %4814 = vmatpush2.bf16.msra.mxu1 %v7581_v15 }
 0x426   : > { %4815 = vmatprep.subr.bf16.mxu1 %v7586_v34  ;;  %5841 = vmatpush2.bf16.msra.mxu0 %v7629_v11  ;;  %v7713_v34 = vld [vmem:[#allocation5 + $0x1380] ss:$16 sps:$4 sm:$0xff]  }
 0x427   : > { %5842 = vmatprep.subr.bf16.mxu0 %v7634_v1  ;;  %v4836_v1 = vld [vmem:[#allocation2 + $0x88] sm:$0xff] }
 0x429   : > { %4816 = vmatpush2.bf16.msra.mxu1 %v7584_v17  ;;  %v7721_v17 = vld [vmem:[#allocation5 + $0x1364] ss:$16 sps:$4 sm:$0xff]  }
 0x42a   : > { %4817 = vmatprep.subr.bf16.mxu1 %v7589_v2  ;;  %5843 = vmatpush2.bf16.msra.mxu0 %v7632_v33  ;;  %v7719_v2 = vld [vmem:[#allocation5 + $0x1360] ss:$16 sps:$4 sm:$0xff]  }
 0x42b   : > { %5844 = vmatprep.subr.bf16.mxu0 %v7637_v29 }
 0x42d   : > { %4818 = vmatpush2.bf16.msra.mxu1 %v7587_v20  ;;  %v7725_v20 = vld [vmem:[#allocation5 + $0x1340] ss:$16 sps:$4 sm:$0xff]  }
 0x42e   : > { %4819 = vmatprep.subr.bf16.mxu1 %v7592_v18  ;;  %5845 = vmatpush2.bf16.msra.mxu0 %v7635_v31  ;;  %v7727_v18 = vld [vmem:[#allocation5 + $0x1344] ss:$16 sps:$4 sm:$0xff]   ;;  %v4846_v31 = vrot.slane %v8526_v25, %v8114_v46 }
 0x42f   : > { %5846 = vmatprep.subr.bf16.mxu0 %v7640_v38 }
 0x431   : > { %4820 = vmatpush2.bf16.msra.mxu1 %v7590_v37  ;;  %v7731_v37 = vld [vmem:[#allocation5 + $0x1320] ss:$16 sps:$4 sm:$0xff]  }
 0x432   : > { %4821 = vmatprep.subr.bf16.mxu1 %v7595_v41  ;;  %5847 = vmatpush2.bf16.msra.mxu0 %v7638_v24  ;;  %v7733_v41 = vld [vmem:[#allocation5 + $0x1324] ss:$16 sps:$4 sm:$0xff]  }
 0x433   : > { %5848 = vmatprep.subr.bf16.mxu0 %v7643_v3 }
 0x435   : > { %4822 = vmatpush2.bf16.msra.mxu1 %v7593_v21  ;;  %v7737_v21 = vld [vmem:[#allocation5 + $0x1300] ss:$16 sps:$4 sm:$0xff]  }
 0x436   : > { %4823 = vmatprep.subr.bf16.mxu1 %v7598_v22  ;;  %5849 = vmatpush2.bf16.msra.mxu0 %v7641_v57  ;;  %v7739_v22 = vld [vmem:[#allocation5 + $0x1304] ss:$16 sps:$4 sm:$0xff]  }
 0x437   : > { %5850 = vmatprep.subr.bf16.mxu0 %v7646_v47 }
 0x439   : > { %4824 = vmatpush2.bf16.msra.mxu1 %v7596_v23  ;;  %v7745_v23 = vld [vmem:[#allocation5 + $0x12ec] ss:$16 sps:$4 sm:$0xff]  }
 0x43a   : > { %5861 = vmatprep.subr.bf16.mxu1 %v7649_v44  ;;  %5851 = vmatpush2.bf16.msra.mxu0 %v7644_v26  ;;  %v4850_v44 = vrot.slane %v4836_v1, %v8114_v46 }
 0x43b   : > { %5902 = vmatprep.subr.bf16.mxu0 %v7652_v19  ;;  %v4870_v19 = vrot.slane %v4836_v1, %v8116_v48 }
 0x43c   : > { %4826 = vmatmul.mubr.bf16.vlgmr.msra.gmra.mxu1 %v8521_v7  ;;  %v7647_v7 = vld [vmem:[#allocation5 + $0x12e0] ss:$16 sps:$4 sm:$0xff]  }
 0x43d   : > { %5862 = vmatpush1.bf16.msra.mxu1 %v7647_v7  ;;  %v4866_v7 = vrot.slane %v8526_v25, %v8116_v48 }
 0x43e   : > { %5863 = vmatprep.subr.bf16.mxu1 %v7655_v53 }
 0x441   : > { %5864 = vmatpush1.bf16.msra.mxu1 %v7653_v50 }
 0x442   : > { %5865 = vmatprep.subr.bf16.mxu1 %v7661_v28 }
 0x445   : > { %5866 = vmatpush1.bf16.msra.mxu1 %v7659_v54 }
 0x446   : > { %5867 = vmatprep.subr.bf16.mxu1 %v7667_v30  ;;  %v4922_v30 = vrot.slane %v8526_v25, %v8120_v51 }
 0x449   : > { %5868 = vmatpush1.bf16.msra.mxu1 %v7665_v8  ;;  %v4902_v8 = vrot.slane %v8526_v25, %v8118_v49 }
 0x44a   : > { %5869 = vmatprep.subr.bf16.mxu1 %v7673_v39 }
 0x44d   : > { %5870 = vmatpush1.bf16.msra.mxu1 %v7671_v36 }
 0x44e   : > { %5871 = vmatprep.subr.bf16.mxu1 %v7679_v58  ;;  %v4926_v58 = vrot.slane %v4836_v1, %v8120_v51 }
 0x451   : > { %5872 = vmatpush1.bf16.msra.mxu1 %v7677_v35 }
 0x452   : > { %5873 = vmatprep.subr.bf16.mxu1 %v7685_v45  ;;  %v4906_v45 = vrot.slane %v4836_v1, %v8118_v49 }
 0x455   : > { %5874 = vmatpush1.bf16.msra.mxu1 %v7683_v55  ;;  %v4958_v55 = vrot.slane %v8526_v25, %v8122_v52 }
 0x456   : > { %5875 = vmatprep.subr.bf16.mxu1 %v7691_v12 }
 0x459   : > { %5876 = vmatpush1.bf16.msra.mxu1 %v7689_v43 }
 0x45a   : > { %5877 = vmatprep.subr.bf16.mxu1 %v7697_v62 }
 0x45d   : > { %5878 = vmatpush2.bf16.msra.mxu1 %v7695_v61 }
 0x45e   : > { %5879 = vmatprep.subr.bf16.mxu1 %v7703_v63 }
 0x461   : > { %5880 = vmatpush2.bf16.msra.mxu1 %v7701_v4  ;;  %v4962_v4 = vrot.slane %v4836_v1, %v8122_v52 }
 0x462   : > { %5881 = vmatprep.subr.bf16.mxu1 %v7709_v9  ;;  %v4986_v9 = vrot.slane %v8526_v25, %v8125_v56 }
 0x465   : > { %5882 = vmatpush2.bf16.msra.mxu1 %v7707_v10 }
 0x466   : > { %5883 = vmatprep.subr.bf16.mxu1 %v7715_v16 }
 0x469   : > { %5884 = vmatpush2.bf16.msra.mxu1 %v7713_v34 }
 0x46a   : > { %5885 = vmatprep.subr.bf16.mxu1 %v7721_v17 }
 0x46d   : > { %5886 = vmatpush2.bf16.msra.mxu1 %v7719_v2 }
 0x46e   : > { %5887 = vmatprep.subr.bf16.mxu1 %v7727_v18  ;;  %v4990_v18 = vrot.slane %v4836_v1, %v8125_v56 }
 0x471   : > { %5888 = vmatpush2.bf16.msra.mxu1 %v7725_v20 }
 0x472   : > { %5889 = vmatprep.subr.bf16.mxu1 %v7733_v41 }
 0x475   : > { %5890 = vmatpush2.bf16.msra.mxu1 %v7731_v37  ;;  %v5010_v37 = vrot.slane %v8526_v25, %v8131_v59 }
 0x476   : > { %5891 = vmatprep.subr.bf16.mxu1 %v7739_v22  ;;  %v5014_v22 = vrot.slane %v4836_v1, %v8131_v59 }
 0x479   : > { %5892 = vmatpush2.bf16.msra.mxu1 %v7737_v21 }
 0x47a   : > { %5943 = vmatprep.subr.bf16.mxu1 %v7745_v23 }
 0x47c   : > { %v4704_v0 = vpop.f32.mrf.mxu0 }
 0x47d   : > { %v4705_v42 = vadd.f32 %v4704_v0, %v8432_v6 }
 0x47e   : > { %v4706_v5 = vpop.f32.mrf.mxu0 }
 0x47f   : > { %v4707_v33 = vadd.f32 %v4706_v5, %v8441_v40 }
 0x480   : > { %v4708_v14 = vpop.f32.mrf.mxu0 }
 0x482   : > { %v4709_v15 = vpop.f32.mrf.mxu0 }
 0x4bc   : > { %v4745_v27 = vpop.f32.mrf.mxu1  ;;  %v8529_v11 = vpop.f32.mrf.mxu0 }
 0x4bd   : > { %v8532_v29 = vadd.f32 %v4745_v27, %v4705_v42  ;;  %v5030_v27 = vrot.slane %v8526_v25, %v8133_v60  ;;  %v7664_v25 = vld [vmem:[#allocation5 + $0x10ac] ss:$16 sps:$4 sm:$0xff]  }
 0x4be   : > { %v4747_v24 = vpop.f32.mrf.mxu1  ;;  %v8536_v38 = vpop.f32.mrf.mxu0 }
 0x4bf   : > { %v4839_v3 = vmax.f32 %v8532_v29, 0.0  ;;  %v8541_v6 = vadd.f32 %v4747_v24, %v4707_v33  ;;  %v5034_v33 = vrot.slane %v4836_v1, %v8133_v60  ;;  %v7662_v1 = vld [vmem:[#allocation5 + $0x10a8] ss:$16 sps:$4 sm:$0xff]  }
 0x4c0   : > { %v4749_v57 = vpop.f32.mrf.mxu1  ;;  %v4790_v47 = vpop.f32.mrf.mxu0 }
 0x4c1   : > { %v4859_v40 = vmul.f32 %v4846_v31, %v4839_v3  ;;  %v4840_v26 = vmax.f32 %v8541_v6, 0.0  ;;  %v7650_v47 = vld [vmem:[#allocation5 + $0x10e8] ss:$16 sps:$4 sm:$0xff]  }
 0x4c2   : > { %v4750_v50 = vpop.f32.mrf.mxu1  ;;  %v4791_v53 = vpop.f32.mrf.mxu0 }
 0x4c3   : > { %v4879_v54 = vadd.f32 %v4866_v7, %v4859_v40  ;;  %v4860_v28 = vmul.f32 %v4850_v44, %v4840_v26  ;;  %v7658_v26 = vld [vmem:[#allocation5 + $0x10cc] ss:$16 sps:$4 sm:$0xff]   ;;  %v7668_v53 = vld [vmem:[#allocation5 + $0x1088] ss:$16 sps:$4 sm:$0xff]  }
 0x4c4   : > { %v7670_v50 = vld [vmem:[#allocation5 + $0x108c] ss:$16 sps:$4 sm:$0xff]  }
 0x4c5   : > { %v4887_v36 = vrot.slane %v4879_v54, 7  ;;  %v4943_v39 = vrot.slane %v4879_v54, 1  ;;  %v4880_v35 = vadd.f32 %v4870_v19, %v4860_v28  ;;  %v4935_v63 = vmul.f32 %v4922_v30, %v4879_v54  ;;  %v7656_v19 = vld [vmem:[#allocation5 + $0x10c8] ss:$16 sps:$4 sm:$0xff]   ;;  %v7676_v54 = vld [vmem:[#allocation5 + $0x106c] ss:$16 sps:$4 sm:$0xff]  }
 0x4c6   : > { %v7674_v28 = vld [vmem:[#allocation5 + $0x1068] ss:$16 sps:$4 sm:$0xff]  }
 0x4c7   : > { %v4895_v43 = vsel %vm286_vm0, 0.0, %v4887_v36  ;;  %v4951_v12 = vsel %vm345_vm1, %v4943_v39, 0.0  ;;  %v4888_v61 = vrot.slane %v4880_v35, 7  ;;  %v4944_v0 = vrot.slane %v4880_v35, 1  ;;  %v7680_v30 = vld [vmem:[#allocation5 + $0x1048] ss:$16 sps:$4 sm:$0xff]  }
 0x4c8   : > { %v4915_v62 = vmul.f32 %v4902_v8, %v4895_v43  ;;  %v4936_v14 = vmul.f32 %v4926_v58, %v4880_v35  ;;  %v4971_v15 = vmul.f32 %v4958_v55, %v4951_v12  ;;  %v7682_v8 = vld [vmem:[#allocation5 + $0x104c] ss:$16 sps:$4 sm:$0xff]   ;;  %v7686_v39 = vld [vmem:[#allocation5 + $0x1028] ss:$16 sps:$4 sm:$0xff]   ;;  %v8571_v12 = vld [vmem:[#allocation2 + $0x90] sm:$0xff] }
 0x4c9   : > { %v4896_v5 = vsel %vm286_vm0, 0.0, %v4888_v61  ;;  %v4952_v34 = vsel %vm345_vm1, %v4944_v0, 0.0  ;;  %v7688_v36 = vld [vmem:[#allocation5 + $0x102c] ss:$16 sps:$4 sm:$0xff]   ;;  %v7692_v58 = vld [vmem:[#allocation5 + $0x1008] ss:$16 sps:$4 sm:$0xff]   ;;  %v4787_v61 = vadd.f32 %v8529_v11, %v8479_v13  ;;  %v4874_v13 = vrot.slane %v8571_v12, %v8116_v48 }
 0x4ca   : > { %v4939_v10 = vadd.f32 %v4935_v63, %v4915_v62  ;;  %v4916_v16 = vmul.f32 %v4906_v45, %v4896_v5  ;;  %v4972_v20 = vmul.f32 %v4962_v4, %v4952_v34  ;;  %v7694_v35 = vld [vmem:[#allocation5 + $0x100c] ss:$16 sps:$4 sm:$0xff]   ;;  %v7698_v45 = vld [vmem:[#allocation5 + $0x11e8] ss:$16 sps:$4 sm:$0xff]   ;;  %v4789_v5 = vadd.f32 %v8536_v38, %v8486_v32 }
 0x4cb   : > { %v7700_v55 = vld [vmem:[#allocation5 + $0x11ec] ss:$16 sps:$4 sm:$0xff]   ;;  %v7704_v62 = vld [vmem:[#allocation5 + $0x11c8] ss:$16 sps:$4 sm:$0xff]  }
 0x4cc   : > { %v4975_v17 = vadd.f32 %v4971_v15, %v4939_v10  ;;  %v4940_v2 = vadd.f32 %v4936_v14, %v4916_v16  ;;  %v7706_v43 = vld [vmem:[#allocation5 + $0x11cc] ss:$16 sps:$4 sm:$0xff]   ;;  %v7710_v34 = vld [vmem:[#allocation5 + $0x11a8] ss:$16 sps:$4 sm:$0xff]  }
 0x4cd   : > { %v8575_v0 = vld [vmem:[#allocation2 + $0x98] sm:$0xff] }
 0x4ce   : > { %v4976_v41 = vadd.f32 %v4972_v20, %v4940_v2  ;;  %vm4979_vm4 = vcmp.ge.f32.partialorder %v4975_v17, 0.0  ;;  %v4999_v21 = vmul.f32 %v4986_v9, %v4975_v17  ;;  %v7712_v4 = vld [vmem:[#allocation5 + $0x11ac] ss:$16 sps:$4 sm:$0xff]   ;;  %v4854_v9 = vrot.slane %v8571_v12, %v8114_v46 }
 0x4cf   : > { %v4858_v16 = vrot.slane %v8575_v0, %v8114_v46  ;;  %v7718_v32 = vld [vmem:[#allocation5 + $0x118c] ss:$16 sps:$4 sm:$0xff]   ;;  %v4878_v20 = vrot.slane %v8575_v0, %v8116_v48  ;;  %v4930_v46 = vrot.slane %v8571_v12, %v8120_v51  ;;  %v4966_v48 = vrot.slane %v8571_v12, %v8122_v52 }
 0x4d0   : > { %vm4980_vm5 = vcmp.ge.f32.partialorder %v4976_v41, 0.0  ;;  %v5000_v23 = vmul.f32 %v4990_v18, %v4976_v41  ;;  %v5003_v42 = vsel %vm4979_vm4, %v4975_v17, %v4999_v21  ;;  %v7716_v21 = vld [vmem:[#allocation5 + $0x1188] ss:$16 sps:$4 sm:$0xff]  }
 0x4d1   : > { %v5023_v31 = vmul.f32 %v5010_v37, %v5003_v42 }
 0x4d2   : > { %v5004_v24 = vsel %vm4980_vm5, %v4976_v41, %v5000_v23  ;;  %v7724_v23 = vld [vmem:[#allocation5 + $0x116c] ss:$16 sps:$4 sm:$0xff]  }
 0x4d3   : > { %v5024_v3 = vmul.f32 %v5014_v22, %v5004_v24  ;;  %v5043_v7 = vadd.f32 %v5030_v27, %v5023_v31  ;;  %v4910_v22 = vrot.slane %v8571_v12, %v8118_v49  ;;  %v4934_v31 = vrot.slane %v8575_v0, %v8120_v51 }
 0x4d4   : > { %v4914_v24 = vrot.slane %v8575_v0, %v8118_v49  ;;  %v4970_v51 = vrot.slane %v8575_v0, %v8122_v52  ;;  %v4994_v49 = vrot.slane %v8571_v12, %v8125_v56  ;;  %v4998_v52 = vrot.slane %v8575_v0, %v8125_v56 }
 0x4d5   : > { %v5044_v44 = vadd.f32 %v5034_v33, %v5024_v3  ;;  %v8568_v40 = vpack.c.bf16 %v5043_v7, %v5043_v7  ;;  %v5042_v56 = vrot.slane %v8575_v0, %v8133_v60 }
 0x4d7   : > { %v5177_v57 = vpack.c.bf16 %v5044_v44, %v5044_v44 }
 0x4d9   : > { %5852 = vmatprep.mubr.bf16.mxu0 %v5177_v57 }
 0x4da   : > { %5853 = vmatmul.mubr.bf16.vlgmr.msra.gmra.mxu0 %v8568_v40 }
 0x4db   : > { %5903 = vmatpush1.bf16.msra.mxu0 %v7650_v47  ;;  %5934 = vmatprep.mubr.bf16.mxu0 %v5177_v57  ;;  %v7722_v57 = vld [vmem:[#allocation5 + $0x1168] ss:$16 sps:$4 sm:$0xff]  }
 0x4dc   : > { %5904 = vmatprep.subr.bf16.mxu0 %v7658_v26 }
 0x4df   : > { %5905 = vmatpush1.bf16.msra.mxu0 %v7656_v19 }
 0x4e0   : > { %5906 = vmatprep.subr.bf16.mxu0 %v7664_v25  ;;  %v7730_v25 = vld [vmem:[#allocation5 + $0x114c] ss:$16 sps:$4 sm:$0xff]  }
 0x4e3   : > { %5907 = vmatpush1.bf16.msra.mxu0 %v7662_v1 }
 0x4e4   : > { %5908 = vmatprep.subr.bf16.mxu0 %v7670_v50 }
 0x4e7   : > { %5909 = vmatpush1.bf16.msra.mxu0 %v7668_v53 }
 0x4e8   : > { %5910 = vmatprep.subr.bf16.mxu0 %v7676_v54 }
 0x4eb   : > { %5911 = vmatpush1.bf16.msra.mxu0 %v7674_v28 }
 0x4ec   : > { %5912 = vmatprep.subr.bf16.mxu0 %v7682_v8 }
 0x4ef   : > { %5913 = vmatpush1.bf16.msra.mxu0 %v7680_v30  ;;  %v7728_v30 = vld [vmem:[#allocation5 + $0x1148] ss:$16 sps:$4 sm:$0xff]  }
 0x4f0   : > { %5914 = vmatprep.subr.bf16.mxu0 %v7688_v36 }
 0x4f3   : > { %5915 = vmatpush1.bf16.msra.mxu0 %v7686_v39 }
 0x4f4   : > { %5916 = vmatprep.subr.bf16.mxu0 %v7694_v35  ;;  %v7736_v35 = vld [vmem:[#allocation5 + $0x112c] ss:$16 sps:$4 sm:$0xff]  }
 0x4f7   : > { %5917 = vmatpush1.bf16.msra.mxu0 %v7692_v58 }
 0x4f8   : > { %5918 = vmatprep.subr.bf16.mxu0 %v7700_v55  ;;  %v5018_v55 = vrot.slane %v8571_v12, %v8131_v59 }
 0x4fb   : > { %5919 = vmatpush2.bf16.msra.mxu0 %v7698_v45 }
 0x4fc   : > { %v4827_v63 = vpop.f32.mrf.mxu1  ;;  %5920 = vmatprep.subr.bf16.mxu0 %v7706_v43 }
 0x4fd   : > { %v8579_v14 = vadd.f32 %v4827_v63, %v4787_v61  ;;  %v7734_v61 = vld [vmem:[#allocation5 + $0x1128] ss:$16 sps:$4 sm:$0xff]   ;;  %v7742_v63 = vld [vmem:[#allocation5 + $0x110c] ss:$16 sps:$4 sm:$0xff]  }
 0x4fe   : > { %v4829_v10 = vpop.f32.mrf.mxu1 }
 0x4ff   : > { %v4841_v15 = vmax.f32 %v8579_v14, 0.0  ;;  %v8586_v11 = vadd.f32 %v4829_v10, %v4789_v5  ;;  %5921 = vmatpush2.bf16.msra.mxu0 %v7704_v62  ;;  %v5022_v62 = vrot.slane %v8575_v0, %v8131_v59  ;;  %v7749_v0 = vld [vmem:[#allocation5 + $0x12a8] ss:$16 sps:$4 sm:$0xff]  }
 0x500   : > { %v4831_v17 = vpop.f32.mrf.mxu1  ;;  %5922 = vmatprep.subr.bf16.mxu0 %v7712_v4 }
 0x501   : > { %v4861_v38 = vmul.f32 %v4854_v9, %v4841_v15  ;;  %v4842_v2 = vmax.f32 %v8586_v11, 0.0  ;;  %v5038_v9 = vrot.slane %v8571_v12, %v8133_v60  ;;  %v7746_v60 = vld [vmem:[#allocation5 + $0x12c8] ss:$16 sps:$4 sm:$0xff]   ;;  %v7751_v12 = vld [vmem:[#allocation5 + $0x12ac] ss:$16 sps:$4 sm:$0xff]  }
 0x502   : > { %v4832_v18 = vpop.f32.mrf.mxu1 }
 0x503   : > { %v4881_v37 = vadd.f32 %v4874_v13, %v4861_v38  ;;  %v4862_v41 = vmul.f32 %v4858_v16, %v4842_v2  ;;  %5923 = vmatpush2.bf16.msra.mxu0 %v7710_v34  ;;  %v7740_v13 = vld [vmem:[#allocation5 + $0x1108] ss:$16 sps:$4 sm:$0xff]   ;;  %v7748_v2 = vld [vmem:[#allocation5 + $0x12cc] ss:$16 sps:$4 sm:$0xff]  }
 0x504   : > { %5924 = vmatprep.subr.bf16.mxu0 %v7718_v32  ;;  %v7743_v32 = vld [vmem:[#allocation5 + $0x12e8] ss:$16 sps:$4 sm:$0xff]  }
 0x505   : > { %v4889_v42 = vrot.slane %v4881_v37, 7  ;;  %v4945_v27 = vrot.slane %v4881_v37, 1  ;;  %v4882_v33 = vadd.f32 %v4878_v20, %v4862_v41  ;;  %v4937_v26 = vmul.f32 %v4930_v46, %v4881_v37  ;;  %v7754_v20 = vld [vmem:[#allocation5 + $0x128c] ss:$16 sps:$4 sm:$0xff]   ;;  %v7752_v18 = vld [vmem:[#allocation5 + $0x1288] ss:$16 sps:$4 sm:$0xff]  }
 0x506   : > { %v7757_v37 = vld [vmem:[#allocation5 + $0x126c] ss:$16 sps:$4 sm:$0xff]   ;;  %v7755_v41 = vld [vmem:[#allocation5 + $0x1268] ss:$16 sps:$4 sm:$0xff]  }
 0x507   : > { %v4897_v3 = vsel %vm286_vm0, 0.0, %v4889_v42  ;;  %v4953_v7 = vsel %vm345_vm1, %v4945_v27, 0.0  ;;  %v4890_v44 = vrot.slane %v4882_v33, 7  ;;  %5925 = vmatpush2.bf16.msra.mxu0 %v7716_v21  ;;  %v4946_v19 = vrot.slane %v4882_v33, 1  ;;  %v7760_v21 = vld [vmem:[#allocation5 + $0x124c] ss:$16 sps:$4 sm:$0xff]  }
 0x508   : > { %v4917_v47 = vmul.f32 %v4910_v22, %v4897_v3  ;;  %5926 = vmatprep.subr.bf16.mxu0 %v7724_v23  ;;  %v4938_v50 = vmul.f32 %v4934_v31, %v4882_v33  ;;  %v4973_v54 = vmul.f32 %v4966_v48, %v4953_v7  ;;  %v7758_v22 = vld [vmem:[#allocation5 + $0x1248] ss:$16 sps:$4 sm:$0xff]   ;;  %v7766_v23 = vld [vmem:[#allocation5 + $0x120c] ss:$16 sps:$4 sm:$0xff]  }
 0x509   : > { %v4898_v1 = vsel %vm286_vm0, 0.0, %v4890_v44  ;;  %v4954_v8 = vsel %vm345_vm1, %v4946_v19, 0.0  ;;  %v7761_v46 = vld [vmem:[#allocation5 + $0x1228] ss:$16 sps:$4 sm:$0xff]   ;;  %v7769_v27 = vld [vmem:[#allocation5 + $0x13ec] ss:$16 sps:$4 sm:$0xff]  }
 0x50a   : > { %v4941_v53 = vadd.f32 %v4937_v26, %v4917_v47  ;;  %v4918_v28 = vmul.f32 %v4914_v24, %v4898_v1  ;;  %v4974_v58 = vmul.f32 %v4970_v51, %v4954_v8  ;;  %v7764_v42 = vld [vmem:[#allocation5 + $0x1208] ss:$16 sps:$4 sm:$0xff]   ;;  %v7772_v31 = vld [vmem:[#allocation5 + $0x13cc] ss:$16 sps:$4 sm:$0xff]  }
 0x50b   : > { %5927 = vmatpush2.bf16.msra.mxu0 %v7722_v57  ;;  %v7767_v33 = vld [vmem:[#allocation5 + $0x13e8] ss:$16 sps:$4 sm:$0xff]   ;;  %v7775_v24 = vld [vmem:[#allocation5 + $0x13ac] ss:$16 sps:$4 sm:$0xff]  }
 0x50c   : > { %v4977_v36 = vadd.f32 %v4973_v54, %v4941_v53  ;;  %v4942_v39 = vadd.f32 %v4938_v50, %v4918_v28  ;;  %5928 = vmatprep.subr.bf16.mxu0 %v7730_v25  ;;  %v7770_v48 = vld [vmem:[#allocation5 + $0x13c8] ss:$16 sps:$4 sm:$0xff]   ;;  %v7778_v7 = vld [vmem:[#allocation5 + $0x138c] ss:$16 sps:$4 sm:$0xff]  }
 0x50d   : > { %v7773_v3 = vld [vmem:[#allocation5 + $0x13a8] ss:$16 sps:$4 sm:$0xff]   ;;  %v7781_v57 = vld [vmem:[#allocation5 + $0x136c] ss:$16 sps:$4 sm:$0xff]  }
 0x50e   : > { %v4978_v45 = vadd.f32 %v4974_v58, %v4942_v39  ;;  %vm4981_vm0 = vcmp.ge.f32.partialorder %v4977_v36, 0.0  ;;  %v5001_v43 = vmul.f32 %v4994_v49, %v4977_v36  ;;  %v7776_v44 = vld [vmem:[#allocation5 + $0x1388] ss:$16 sps:$4 sm:$0xff]   ;;  %v7784_v26 = vld [vmem:[#allocation5 + $0x134c] ss:$16 sps:$4 sm:$0xff]  }
 0x50f   : > { %5929 = vmatpush2.bf16.msra.mxu0 %v7728_v30  ;;  %v7779_v47 = vld [vmem:[#allocation5 + $0x1368] ss:$16 sps:$4 sm:$0xff]   ;;  %v7787_v25 = vld [vmem:[#allocation5 + $0x132c] ss:$16 sps:$4 sm:$0xff]  }
 0x510   : > { %5930 = vmatprep.subr.bf16.mxu0 %v7736_v35  ;;  %vm4982_vm1 = vcmp.ge.f32.partialorder %v4978_v45, 0.0  ;;  %v5002_v4 = vmul.f32 %v4998_v52, %v4978_v45  ;;  %v5005_v5 = vsel %vm4981_vm0, %v4977_v36, %v5001_v43  ;;  %v7782_v19 = vld [vmem:[#allocation5 + $0x1348] ss:$16 sps:$4 sm:$0xff]   ;;  %v7790_v1 = vld [vmem:[#allocation5 + $0x130c] ss:$16 sps:$4 sm:$0xff]  }
 0x511   : > { %v5025_v10 = vmul.f32 %v5018_v55, %v5005_v5  ;;  %v7785_v51 = vld [vmem:[#allocation5 + $0x1328] ss:$16 sps:$4 sm:$0xff]  }
 0x512   : > { %v5006_v15 = vsel %vm4982_vm1, %v4978_v45, %v5002_v4  ;;  %v7788_v50 = vld [vmem:[#allocation5 + $0x1308] ss:$16 sps:$4 sm:$0xff]  }
 0x513   : > { %5931 = vmatpush2.bf16.msra.mxu0 %v7734_v61  ;;  %v5026_v16 = vmul.f32 %v5022_v62, %v5006_v15  ;;  %v5045_v34 = vadd.f32 %v5038_v9, %v5025_v10 }
 0x514   : > { %5932 = vmatprep.subr.bf16.mxu0 %v7742_v63 }
 0x515   : > { %v5046_v17 = vadd.f32 %v5042_v56, %v5026_v16  ;;  %v8621_v38 = vpack.c.bf16 %v5045_v34, %v5045_v34 }
 0x517   : > { %5933 = vmatpush2.bf16.msra.mxu0 %v7740_v13  ;;  %v5179_v59 = vpack.c.bf16 %v5046_v17, %v5046_v17 }
 0x519   : > { %5893 = vmatprep.mubr.bf16.mxu1 %v5179_v59 }
 0x51a   : > { %5894 = vmatmul.mubr.bf16.vlgmr.msra.gmra.mxu1 %v8621_v38  ;;  %5935 = vmatmul.mubr.bf16.vlgmr.msra.gmra.mxu0 %v8568_v40  ;;  %v7763_v40 = vld [vmem:[#allocation5 + $0x122c] ss:$16 sps:$4 sm:$0xff]  }
 0x51b   : > { %5944 = vmatpush1.bf16.msra.mxu1 %v7743_v32  ;;  %5975 = vmatprep.mubr.bf16.mxu1 %v5179_v59 }
 0x51c   : > { %5945 = vmatprep.subr.bf16.mxu1 %v7748_v2 }
 0x51f   : > { %5946 = vmatpush1.bf16.msra.mxu1 %v7746_v60 }
 0x520   : > { %5947 = vmatprep.subr.bf16.mxu1 %v7751_v12 }
 0x523   : > { %5948 = vmatpush1.bf16.msra.mxu1 %v7749_v0 }
 0x524   : > { %5949 = vmatprep.subr.bf16.mxu1 %v7754_v20 }
 0x527   : > { %5950 = vmatpush1.bf16.msra.mxu1 %v7752_v18 }
 0x528   : > { %5951 = vmatprep.subr.bf16.mxu1 %v7757_v37 }
 0x52b   : > { %5952 = vmatpush1.bf16.msra.mxu1 %v7755_v41 }
 0x52c   : > { %5953 = vmatprep.subr.bf16.mxu1 %v7760_v21 }
 0x52f   : > { %5954 = vmatpush1.bf16.msra.mxu1 %v7758_v22 }
 0x530   : > { %5955 = vmatprep.subr.bf16.mxu1 %v7763_v40 }
 0x533   : > { %5956 = vmatpush1.bf16.msra.mxu1 %v7761_v46 }
 0x534   : > { %5957 = vmatprep.subr.bf16.mxu1 %v7766_v23 }
 0x537   : > { %5958 = vmatpush1.bf16.msra.mxu1 %v7764_v42 }
 0x538   : > { %5959 = vmatprep.subr.bf16.mxu1 %v7769_v27 }
 0x53b   : > { %5960 = vmatpush2.bf16.msra.mxu1 %v7767_v33 }
 0x53c   : > { %5961 = vmatprep.subr.bf16.mxu1 %v7772_v31 }
 0x53f   : > { %5962 = vmatpush2.bf16.msra.mxu1 %v7770_v48 }
 0x540   : > { %5963 = vmatprep.subr.bf16.mxu1 %v7775_v24 }
 0x543   : > { %5964 = vmatpush2.bf16.msra.mxu1 %v7773_v3 }
 0x544   : > { %5965 = vmatprep.subr.bf16.mxu1 %v7778_v7 }
 0x547   : > { %5966 = vmatpush2.bf16.msra.mxu1 %v7776_v44 }
 0x548   : > { %5967 = vmatprep.subr.bf16.mxu1 %v7781_v57 }
 0x54b   : > { %5968 = vmatpush2.bf16.msra.mxu1 %v7779_v47 }
 0x54c   : > { %5969 = vmatprep.subr.bf16.mxu1 %v7784_v26 }
 0x54f   : > { %5970 = vmatpush2.bf16.msra.mxu1 %v7782_v19 }
 0x550   : > { %5971 = vmatprep.subr.bf16.mxu1 %v7787_v25 }
 0x553   : > { %5972 = vmatpush2.bf16.msra.mxu1 %v7785_v51 }
 0x554   : > { %5973 = vmatprep.subr.bf16.mxu1 %v7790_v1 }
 0x557   : > { %5974 = vmatpush2.bf16.msra.mxu1 %v7788_v50 }
 0x55a   : > { %5976 = vmatmul.mubr.bf16.vlgmr.msra.gmra.mxu1 %v8621_v38 }
 0x59a   : > { %v5854_v49 = vpop.f32.mrf.mxu0 }
 0x59b   : > { %v5855_v36 = vadd.f32 %v5854_v49, %v8532_v29 }
 0x59c   : > { %v5856_v53 = vpop.f32.mrf.mxu0 }
 0x59d   : > { %v5857_v39 = vadd.f32 %v5856_v53, %v8541_v6 }
 0x59e   : > { %v5858_v54 = vpop.f32.mrf.mxu0 }
 0x5a0   : > { %v5859_v28 = vpop.f32.mrf.mxu0 }
 0x5da   : > { %v5895_v8 = vpop.f32.mrf.mxu1  ;;  %v5936_v30 = vpop.f32.mrf.mxu0 }
 0x5db   : > { %v5896_v52 = vadd.f32 %v5895_v8, %v5855_v36  ;;  %v5937_v5 = vadd.f32 %v5936_v30, %v8579_v14 }
 0x5dc   : > { %v5897_v35 = vpop.f32.mrf.mxu1  ;;  %v5938_v58 = vpop.f32.mrf.mxu0 }
 0x5dd   : > { %v5898_v55 = vadd.f32 %v5897_v35, %v5857_v39  ;;  %v5939_v29 = vadd.f32 %v5938_v58, %v8586_v11 }
 0x5de   : > { %v5899_v45 = vpop.f32.mrf.mxu1  ;;  %v5940_v43 = vpop.f32.mrf.mxu0 }
 0x5df   : > { %v5988_v61 = vcombine.low %v5896_v52, %v5898_v55 }
 0x5e0   : > { %v5900_v62 = vpop.f32.mrf.mxu1  ;;  %v5941_v63 = vpop.f32.mrf.mxu0 }
 0x5e1   : > { %5992 = vst [vmem:[%s213_s18] sm:$0xff] %v5988_v61 }
 0x61a   : > { %v5977_v4 = vpop.f32.mrf.mxu1 }
 0x61b   : > { %v5978_v9 = vadd.f32 %v5977_v4, %v5937_v5 }
 0x61c   : > { %v5979_v6 = vpop.f32.mrf.mxu1 }
 0x61d   : > { %v5980_v56 = vadd.f32 %v5979_v6, %v5939_v29 }
 0x61e   : > { %v5981_v10 = vpop.f32.mrf.mxu1 }
 0x61f   : > { %v5989_v15 = vcombine.low %v5978_v9, %v5980_v56 }
 0x620   : > { %v5982_v13 = vpop.f32.mrf.mxu1 }
 0x621   : > { %5993 = vst [vmem:[%s213_s18 + $0x8] sm:$0xff] %v5989_v15 }
 0x622   : > { %7886 = shalt.err (!%p7883_p5)
}
 0x623   : > { %s7887_s22 = scalar_lea.hbm %s8635_s8, 256  ;;  %s7891_s27 = scalar_lea.hbm %s8676_s3, 512 }
 0x624   : > { %p7888_p10 = scmp.ne.s32.totalorder %s8635_s8, %s7887_s22  ;;  %p7892_p2 = scmp.lt.s32.totalorder %s8635_s8, %s8676_s3 }
 0x625   : > { %p7893_p6 = scmp.lt.s32.totalorder %s7891_s27, %s7887_s22 }
 0x626   : > { %p7889_p1 = pnand %p7888_p10, %p8694_p7 }
 0x627   : > { %p7894_p4 = por %p7893_p6, %p7892_p2 }
 0x628   : > { %p7890_p0 = pneg %p7889_p1 }
 0x62a   : > { %p7895_p8 = pnand %p7894_p4, %p7890_p0 }
 0x62c   : > { %7898 = shalt.err (!%p7895_p8)
}
 0x62d   : > { %6768 = dma.vmem_to_hbm [thread:$0]  (%p8694_p7), %s6010_s5, 256, %s8635_s8, %s5995_s10  }
 0x62e PF: > { %s6021_s29 = sand.u32 1, %s7933_s12   ;;  %p8695_p11 = scmp.ne.s32.totalorder %s8682_s19, 0 }
 0x62f   : > { %p8696_p12 = scmp.ge.s32.totalorder %s7945_s15, 2  ;;  %s6022_s30 = scalar_lea.sflag [#allocation4], %s6021_s29 }
 0x631   : > { %p6782_p3 = pnand %p8696_p12, %p8695_p11 }
 0x633   : > { %p6783_p9 = pneg %p6782_p3 }
 0x635   : > { %7928 = dma.done.wait (%p6783_p9), %s6022_s30, 256  }
 0x636   : > { %7930 = vsyncadd (%p6783_p9), %s6022_s30, 4294967040  ;;  %p15_p13 = scmp.ge.s32.totalorder %s8047_s9, 4   ;;  %s8697_s12 = smov %s7937_s13 }
 0x637   : > { %s8698_s13 = smov %s7941_s14  ;;  %s8699_s14 = smov %s8056_s17 }
 0x638   : > { %s8700_s15 = smov %s8047_s9  ;;  %17 = sbr.rel (!%p15_p13) target bundleno = 5 (0x5), region = 92 }
 0x63d   :  { %6027 = vsyncpa [#allocation3], 1 }
 0x63e   :  { %6029 = vsyncpa [#allocation3 + $0x1], 1 }
 0x63f   :  { %6030 = vsyncpa [#allocation6], 1 }
 0x640   :  { %6031 = vsyncpa [#allocation4], 1 }
 0x641   :  { %6033 = vsyncpa [#allocation4 + $0x1], 1 }

</bundles_post_ra>
